<compile_context>
chip_gen: v5e
topology: v5e:2x2
jax: 0.10.0
libtpu: 0.0.40
codegen_flags: <defaults>
</compile_context>

<pallas_src>
import functools
import math

import jax
import jax.numpy as jnp
from jax import lax
from jax.experimental import pallas as pl
from jax.experimental.pallas import tpu as pltpu

LN_EPS = 1e-5                       # PyTorch nn.LayerNorm default
_VMEM_LIMIT = 32 * 1024 * 1024      # explicit scoped-VMEM budget (v5e/v6e/v7x safe)


def _ln(x, g, b):
    """Row-wise LayerNorm over the last axis (f32 math)."""
    mu = jnp.mean(x, axis=-1, keepdims=True)
    var = jnp.mean((x - mu) * (x - mu), axis=-1, keepdims=True)
    return (x - mu) * lax.rsqrt(var + LN_EPS) * g + b


# --------------------------- input projection ------------------------------
# x (C, T, idim) per batch -> e (T, C*U).  The (C,T)->(T,C) layout change is
# absorbed into lane offsets of the output block: no HBM transpose.

def _in_proj_kernel(x_ref, w_ref, b_ref, o_ref):
    C = x_ref.shape[0]
    U = w_ref.shape[1]
    w = w_ref[...].astype(jnp.float32)
    b = b_ref[...].astype(jnp.float32)
    for c in range(C):
        xc = x_ref[c].astype(jnp.float32)                        # (T, idim)
        yc = jnp.dot(xc, w, preferred_element_type=jnp.float32) + b
        o_ref[:, c * U:(c + 1) * U] = yc.astype(o_ref.dtype)


def input_projection(x, w, b):
    B, C, T, idim = x.shape
    U = w.shape[1]
    return pl.pallas_call(
        _in_proj_kernel,
        out_shape=jax.ShapeDtypeStruct((B, T, C * U), x.dtype),
        grid=(B,),
        in_specs=[
            pl.BlockSpec((None, C, T, idim), lambda i: (i, 0, 0, 0)),
            pl.BlockSpec((idim, U), lambda i: (0, 0)),
            pl.BlockSpec((1, U), lambda i: (0, 0)),
        ],
        out_specs=pl.BlockSpec((None, T, C * U), lambda i: (i, 0, 0)),
        compiler_params=pltpu.CompilerParams(
            dimension_semantics=("parallel",),
            vmem_limit_bytes=_VMEM_LIMIT),
    )(x, w, b.reshape(1, U))


# ----------------- fused attention block (one call / layer) ----------------
# LN1 + fused QKV projection + co-attention + output projection + residual.

def _att_block_kernel(e_ref, g1_ref, b1_ref, wqkv_ref, bqkv_ref, wo_ref,
                      bo_ref, o_ref, *, n_units, h):
    U = n_units
    T, CU = e_ref.shape
    C = CU // U
    dk = U // h
    scale = 1.0 / math.sqrt(C * dk)          # PyTorch: _d_k = d_k * nch

    g1 = g1_ref[...].astype(jnp.float32)
    b1 = b1_ref[...].astype(jnp.float32)
    wqkv = wqkv_ref[...].astype(jnp.float32)
    bqkv = bqkv_ref[...].astype(jnp.float32)
    wo = wo_ref[...].astype(jnp.float32)
    bo = bo_ref[...].astype(jnp.float32)

    # LN1 + fused QKV projection, per channel (rows are (t, c) U-vectors).
    ys, qs, ks, vs = [], [], [], []
    for c in range(C):
        x_c = e_ref[:, c * U:(c + 1) * U].astype(jnp.float32)    # (T, U)
        y_c = _ln(x_c, g1, b1)
        qkv_c = jnp.dot(y_c, wqkv, preferred_element_type=jnp.float32) + bqkv
        ys.append(y_c)
        qs.append(qkv_c[:, 0 * U:1 * U])
        ks.append(qkv_c[:, 1 * U:2 * U])
        vs.append(qkv_c[:, 2 * U:3 * U])

    # Attention probabilities: one (T, T) map per head, shared by all channels.
    # Head hh of the PyTorch reshape(B, T, h, C*d_k) covers the contiguous
    # range [hh*C*dk, (hh+1)*C*dk) of the (c, u)-flattened feature axis, i.e.
    # combined indices m = c*h + h' with m in [hh*C, (hh+1)*C).  The dot
    # product over that range is the sum of per-(c, h') piece dot products.
    ps = []
    for hh in range(h):
        s = None
        for m in range(hh * C, (hh + 1) * C):
            c, hp = divmod(m, h)
            q_piece = qs[c][:, hp * dk:(hp + 1) * dk]            # (T, dk)
            k_piece = ks[c][:, hp * dk:(hp + 1) * dk]            # (T, dk)
            part = lax.dot_general(q_piece, k_piece,
                                   (((1,), (1,)), ((), ())),
                                   preferred_element_type=jnp.float32)
            s = part if s is None else s + part
        s = s * scale
        s = s - jnp.max(s, axis=-1, keepdims=True)
        p = jnp.exp(s)
        p = p * pl.reciprocal(jnp.sum(p, axis=-1, keepdims=True), approx=True)
        ps.append(p)                                             # (T, T)

    # Context + output projection + residual (residual base = LN1 output).
    # O-projection accumulated as sum over heads of ctx_h @ Wo[head rows, :].
    for c in range(C):
        acc = ys[c] + bo                                         # (T, U)
        for hh in range(h):
            ctx = jnp.dot(ps[hh], vs[c][:, hh * dk:(hh + 1) * dk],
                          preferred_element_type=jnp.float32)    # (T, dk)
            acc = acc + jnp.dot(ctx, wo[hh * dk:(hh + 1) * dk, :],
                                preferred_element_type=jnp.float32)
        o_ref[:, c * U:(c + 1) * U] = acc.astype(o_ref.dtype)


def attention_block(e, g1, b1, wqkv, bqkv, wo, bo, *, n_units, h):
    B, T, CU = e.shape
    U = n_units
    kern = functools.partial(_att_block_kernel, n_units=n_units, h=h)
    return pl.pallas_call(
        kern,
        out_shape=jax.ShapeDtypeStruct((B, T, CU), e.dtype),
        grid=(B,),
        in_specs=[
            pl.BlockSpec((None, T, CU), lambda i: (i, 0, 0)),
            pl.BlockSpec((1, U), lambda i: (0, 0)),
            pl.BlockSpec((1, U), lambda i: (0, 0)),
            pl.BlockSpec((U, 3 * U), lambda i: (0, 0)),
            pl.BlockSpec((1, 3 * U), lambda i: (0, 0)),
            pl.BlockSpec((U, U), lambda i: (0, 0)),
            pl.BlockSpec((1, U), lambda i: (0, 0)),
        ],
        out_specs=pl.BlockSpec((None, T, CU), lambda i: (i, 0, 0)),
        compiler_params=pltpu.CompilerParams(
            dimension_semantics=("parallel",),
            vmem_limit_bytes=_VMEM_LIMIT),
    )(e, g1.reshape(1, U), b1.reshape(1, U), wqkv, bqkv.reshape(1, 3 * U),
      wo, bo.reshape(1, U))


# ------------------- fused FFN block (one call / layer) --------------------
# LN2 + linear/ReLU/linear + residual, row-tiled over B*T*C.

def _ffn_block_kernel(x_ref, g2_ref, bt2_ref, w1_ref, b1_ref, w2_ref, b2_ref,
                      o_ref):
    x = x_ref[...].astype(jnp.float32)
    z = _ln(x, g2_ref[...].astype(jnp.float32),
            bt2_ref[...].astype(jnp.float32))
    h1 = jnp.dot(z, w1_ref[...].astype(jnp.float32),
                 preferred_element_type=jnp.float32) + b1_ref[...]
    h1 = jnp.maximum(h1, 0.0)                       # stays f32 into 2nd matmul
    out = jnp.dot(h1, w2_ref[...].astype(jnp.float32),
                  preferred_element_type=jnp.float32) + b2_ref[...]
    o_ref[...] = (z + out).astype(o_ref.dtype)


def _row_tile(m, target=256):
    """Largest multiple-of-8 divisor of m <= target (leaving >=2 tiles when
    possible) so the row grid pipelines and can shard across TCs on v7x."""
    limit = min(target, max(8, m // 2))
    cands = [t for t in range(8, limit + 1, 8) if m % t == 0]
    return max(cands) if cands else m


def ffn_block(e, g2, bt2, w1, b1, w2, b2):
    M, U = e.shape
    E = w1.shape[1]
    TM = _row_tile(M)
    return pl.pallas_call(
        _ffn_block_kernel,
        out_shape=jax.ShapeDtypeStruct((M, U), e.dtype),
        grid=(M // TM,),
        in_specs=[
            pl.BlockSpec((TM, U), lambda i: (i, 0)),
            pl.BlockSpec((1, U), lambda i: (0, 0)),
            pl.BlockSpec((1, U), lambda i: (0, 0)),
            pl.BlockSpec((U, E), lambda i: (0, 0)),
            pl.BlockSpec((1, E), lambda i: (0, 0)),
            pl.BlockSpec((E, U), lambda i: (0, 0)),
            pl.BlockSpec((1, U), lambda i: (0, 0)),
        ],
        out_specs=pl.BlockSpec((TM, U), lambda i: (i, 0)),
        compiler_params=pltpu.CompilerParams(
            dimension_semantics=("parallel",),
            vmem_limit_bytes=_VMEM_LIMIT),
    )(e, g2.reshape(1, U), bt2.reshape(1, U), w1, b1.reshape(1, E), w2,
      b2.reshape(1, U))


# ------------------ final LayerNorm + channel mean (fused) -----------------

def _out_kernel(e_ref, g_ref, b_ref, o_ref, *, n_units):
    U = n_units
    T, CU = e_ref.shape
    C = CU // U
    g = g_ref[...].astype(jnp.float32)
    b = b_ref[...].astype(jnp.float32)
    acc = jnp.zeros((T, U), jnp.float32)
    for c in range(C):
        x_c = e_ref[:, c * U:(c + 1) * U].astype(jnp.float32)
        acc = acc + _ln(x_c, g, b)
    o_ref[...] = (acc * (1.0 / C)).astype(o_ref.dtype)


def output_norm_mean(e, g, b, *, n_units):
    B, T, CU = e.shape
    U = n_units
    kern = functools.partial(_out_kernel, n_units=n_units)
    return pl.pallas_call(
        kern,
        out_shape=jax.ShapeDtypeStruct((B, T, U), e.dtype),
        grid=(B,),
        in_specs=[
            pl.BlockSpec((None, T, CU), lambda i: (i, 0, 0)),
            pl.BlockSpec((1, U), lambda i: (0, 0)),
            pl.BlockSpec((1, U), lambda i: (0, 0)),
        ],
        out_specs=pl.BlockSpec((None, T, U), lambda i: (i, 0, 0)),
        compiler_params=pltpu.CompilerParams(
            dimension_semantics=("parallel",),
            vmem_limit_bytes=_VMEM_LIMIT),
    )(e, g.reshape(1, U), b.reshape(1, U))


# ----------------------------- parameter init ------------------------------

def init_params(key, idim, n_layers, n_units, e_units):
    def dense(k, fan_in, fan_out):
        kw, kb = jax.random.split(k)
        w = jax.random.normal(kw, (fan_in, fan_out), jnp.float32) / math.sqrt(fan_in)
        b = 0.01 * jax.random.normal(kb, (fan_out,), jnp.float32)
        return w, b

    keys = jax.random.split(key, n_layers + 1)
    w_in, b_in = dense(keys[0], idim, n_units)
    params = {
        'linear_in_w': w_in, 'linear_in_b': b_in,
        'lnorm_out_g': jnp.ones((n_units,), jnp.float32),
        'lnorm_out_b': jnp.zeros((n_units,), jnp.float32),
        'layers': [],
    }
    for i in range(n_layers):
        lk = jax.random.split(keys[i + 1], 6)
        wq, bq = dense(lk[0], n_units, n_units)
        wk, bk = dense(lk[1], n_units, n_units)
        wv, bv = dense(lk[2], n_units, n_units)
        wo, bo = dense(lk[3], n_units, n_units)
        w1, b1 = dense(lk[4], n_units, e_units)
        w2, b2 = dense(lk[5], e_units, n_units)
        params['layers'].append({
            'ln1_g': jnp.ones((n_units,), jnp.float32),
            'ln1_b': jnp.zeros((n_units,), jnp.float32),
            # fused QKV weight (U, 3U): one MXU matmul instead of three
            'wqkv': jnp.concatenate([wq, wk, wv], axis=1),
            'bqkv': jnp.concatenate([bq, bk, bv], axis=0),
            'wo': wo, 'bo': bo,
            'ln2_g': jnp.ones((n_units,), jnp.float32),
            'ln2_b': jnp.zeros((n_units,), jnp.float32),
            'w1': w1, 'b1': b1, 'w2': w2, 'b2': b2,
        })
    return params


# ------------------------------- forward -----------------------------------

def coattention_encoder(x, params, *, h):
    """x: (B, C, T, idim) -> (B*T, n_units).  Eval-mode forward."""
    B, C, T, _ = x.shape
    U = params['linear_in_w'].shape[1]

    # ChannelDropout / Dropout are identities in eval mode.
    # Residual stream kept as (B, T, C*U): time-major, channels on lanes.
    e = input_projection(x, params['linear_in_w'], params['linear_in_b'])

    for lp in params['layers']:
        # LN1 + fused QKV + co-attention + output proj + residual  (1 call)
        e = attention_block(e, lp['ln1_g'], lp['ln1_b'], lp['wqkv'],
                            lp['bqkv'], lp['wo'], lp['bo'], n_units=U, h=h)
        # LN2 + FFN + residual  (1 call, row-tiled over B*T*C)
        e2 = ffn_block(e.reshape(B * T * C, U), lp['ln2_g'], lp['ln2_b'],
                       lp['w1'], lp['b1'], lp['w2'], lp['b2'])
        e = e2.reshape(B, T, C * U)        # contiguity-preserving (free)

    # final LayerNorm + mean over channels, fused
    out = output_norm_mean(e, params['lnorm_out_g'], params['lnorm_out_b'],
                           n_units=U)      # (B, T, U)
    return out.reshape(B * T, U)


# --------------------------------- main -------------------------------------

if __name__ == "__main__":
    B, C, T, IDIM = 2, 4, 8, 16
    N_LAYERS, N_UNITS, E_UNITS, H = 2, 32, 64, 4

    key = jax.random.PRNGKey(0)
    kx, kp = jax.random.split(key)
    x = jax.random.normal(kx, (B, C, T, IDIM), jnp.float32)
    params = init_params(kp, IDIM, N_LAYERS, N_UNITS, E_UNITS)

    fwd = jax.jit(functools.partial(coattention_encoder, h=H))
    out = fwd(x, params)
    out = jax.block_until_ready(out)
    assert out.shape == (B * T, N_UNITS), out.shape
    assert bool(jnp.all(jnp.isfinite(out))), "non-finite output"
    print("KERNEL_OK")
</pallas_src>

<mosaic_0001>
module attributes {stable_mosaic.version = 11 : i64} {
  func.func @_in_proj_kernel(%arg0: i32, %arg1: memref<1x4x8x16xf32, #tpu.memory_space<vmem>>, %arg2: memref<16x32xf32, #tpu.memory_space<vmem>>, %arg3: memref<1x32xf32, #tpu.memory_space<vmem>>, %arg4: memref<1x8x128xf32, #tpu.memory_space<vmem>>) attributes {dimension_semantics = [#tpu.dimension_semantics<parallel>], iteration_bounds = array<i64: 2>, scalar_prefetch = 0 : i64, scratch_operands = 0 : i64, tpu.core_type = #tpu.core_type<tc>, window_params = [{transform_indices = @transform_0, window_bounds = array<i64: 1, 4, 8, 16>}, {pipeline_mode = #tpu.pipeline_mode<synchronous>, transform_indices = @transform_1, window_bounds = array<i64: 16, 32>}, {pipeline_mode = #tpu.pipeline_mode<synchronous>, transform_indices = @transform_2, window_bounds = array<i64: 1, 32>}, {transform_indices = @transform_3, window_bounds = array<i64: 1, 8, 128>}]} {
    %c0 = arith.constant 0 : index
    %c0_0 = arith.constant 0 : index
    %0 = vector.load %arg2[%c0, %c0_0] : memref<16x32xf32, #tpu.memory_space<vmem>>, vector<16x32xf32>
    %c0_1 = arith.constant 0 : index
    %c0_2 = arith.constant 0 : index
    %1 = vector.load %arg3[%c0_1, %c0_2] : memref<1x32xf32, #tpu.memory_space<vmem>>, vector<1x32xf32>
    %c0_3 = arith.constant 0 : index
    %c0_4 = arith.constant 0 : index
    %c0_5 = arith.constant 0 : index
    %c0_6 = arith.constant 0 : index
    %2 = vector.load %arg1[%c0_3, %c0_4, %c0_5, %c0_6] : memref<1x4x8x16xf32, #tpu.memory_space<vmem>>, vector<1x1x8x16xf32>
    %3 = vector.shape_cast %2 : vector<1x1x8x16xf32> to vector<8x16xf32>
    %cst = arith.constant dense<0.000000e+00> : vector<8x32xf32>
    %4 = tpu.matmul %3, %0, %cst {dimension_numbers = #tpu.dot_dimension_numbers<[1], [0], [0], [1], [0, 0, 1, 1], [], []>} : vector<8x16xf32>, vector<16x32xf32>, vector<8x32xf32> -> vector<8x32xf32>
    %5 = vector.broadcast %1 : vector<1x32xf32> to vector<8x32xf32>
    %6 = arith.addf %4, %5 : vector<8x32xf32>
    %c0_7 = arith.constant 0 : index
    %c0_8 = arith.constant 0 : index
    %c0_9 = arith.constant 0 : index
    %7 = vector.load %arg4[%c0_7, %c0_8, %c0_9] : memref<1x8x128xf32, #tpu.memory_space<vmem>>, vector<1x8x32xf32>
    %8 = vector.shape_cast %7 : vector<1x8x32xf32> to vector<8x32xf32>
    %9 = vector.shape_cast %6 : vector<8x32xf32> to vector<1x8x32xf32>
    tpu.vector_store %arg4[%c0_7, %c0_8, %c0_9], %9 {strides = array<i32>} : memref<1x8x128xf32, #tpu.memory_space<vmem>>, vector<1x8x32xf32>,
    %c0_10 = arith.constant 0 : index
    %c1 = arith.constant 1 : index
    %c0_11 = arith.constant 0 : index
    %c0_12 = arith.constant 0 : index
    %10 = vector.load %arg1[%c0_10, %c1, %c0_11, %c0_12] : memref<1x4x8x16xf32, #tpu.memory_space<vmem>>, vector<1x1x8x16xf32>
    %11 = vector.shape_cast %10 : vector<1x1x8x16xf32> to vector<8x16xf32>
    %cst_13 = arith.constant dense<0.000000e+00> : vector<8x32xf32>
    %12 = tpu.matmul %11, %0, %cst_13 {dimension_numbers = #tpu.dot_dimension_numbers<[1], [0], [0], [1], [0, 0, 1, 1], [], []>} : vector<8x16xf32>, vector<16x32xf32>, vector<8x32xf32> -> vector<8x32xf32>
    %13 = vector.broadcast %1 : vector<1x32xf32> to vector<8x32xf32>
    %14 = arith.addf %12, %13 : vector<8x32xf32>
    %c0_14 = arith.constant 0 : index
    %c0_15 = arith.constant 0 : index
    %c32 = arith.constant 32 : index
    %15 = vector.load %arg4[%c0_14, %c0_15, %c32] : memref<1x8x128xf32, #tpu.memory_space<vmem>>, vector<1x8x32xf32>
    %16 = vector.shape_cast %15 : vector<1x8x32xf32> to vector<8x32xf32>
    %17 = vector.shape_cast %14 : vector<8x32xf32> to vector<1x8x32xf32>
    tpu.vector_store %arg4[%c0_14, %c0_15, %c32], %17 {strides = array<i32>} : memref<1x8x128xf32, #tpu.memory_space<vmem>>, vector<1x8x32xf32>,
    %c0_16 = arith.constant 0 : index
    %c2 = arith.constant 2 : index
    %c0_17 = arith.constant 0 : index
    %c0_18 = arith.constant 0 : index
    %18 = vector.load %arg1[%c0_16, %c2, %c0_17, %c0_18] : memref<1x4x8x16xf32, #tpu.memory_space<vmem>>, vector<1x1x8x16xf32>
    %19 = vector.shape_cast %18 : vector<1x1x8x16xf32> to vector<8x16xf32>
    %cst_19 = arith.constant dense<0.000000e+00> : vector<8x32xf32>
    %20 = tpu.matmul %19, %0, %cst_19 {dimension_numbers = #tpu.dot_dimension_numbers<[1], [0], [0], [1], [0, 0, 1, 1], [], []>} : vector<8x16xf32>, vector<16x32xf32>, vector<8x32xf32> -> vector<8x32xf32>
    %21 = vector.broadcast %1 : vector<1x32xf32> to vector<8x32xf32>
    %22 = arith.addf %20, %21 : vector<8x32xf32>
    %c0_20 = arith.constant 0 : index
    %c0_21 = arith.constant 0 : index
    %c64 = arith.constant 64 : index
    %23 = vector.load %arg4[%c0_20, %c0_21, %c64] : memref<1x8x128xf32, #tpu.memory_space<vmem>>, vector<1x8x32xf32>
    %24 = vector.shape_cast %23 : vector<1x8x32xf32> to vector<8x32xf32>
    %25 = vector.shape_cast %22 : vector<8x32xf32> to vector<1x8x32xf32>
    tpu.vector_store %arg4[%c0_20, %c0_21, %c64], %25 {strides = array<i32>} : memref<1x8x128xf32, #tpu.memory_space<vmem>>, vector<1x8x32xf32>,
    %c0_22 = arith.constant 0 : index
    %c3 = arith.constant 3 : index
    %c0_23 = arith.constant 0 : index
    %c0_24 = arith.constant 0 : index
    %26 = vector.load %arg1[%c0_22, %c3, %c0_23, %c0_24] : memref<1x4x8x16xf32, #tpu.memory_space<vmem>>, vector<1x1x8x16xf32>
    %27 = vector.shape_cast %26 : vector<1x1x8x16xf32> to vector<8x16xf32>
    %cst_25 = arith.constant dense<0.000000e+00> : vector<8x32xf32>
    %28 = tpu.matmul %27, %0, %cst_25 {dimension_numbers = #tpu.dot_dimension_numbers<[1], [0], [0], [1], [0, 0, 1, 1], [], []>} : vector<8x16xf32>, vector<16x32xf32>, vector<8x32xf32> -> vector<8x32xf32>
    %29 = vector.broadcast %1 : vector<1x32xf32> to vector<8x32xf32>
    %30 = arith.addf %28, %29 : vector<8x32xf32>
    %c0_26 = arith.constant 0 : index
    %c0_27 = arith.constant 0 : index
    %c96 = arith.constant 96 : index
    %31 = vector.load %arg4[%c0_26, %c0_27, %c96] : memref<1x8x128xf32, #tpu.memory_space<vmem>>, vector<1x8x32xf32>
    %32 = vector.shape_cast %31 : vector<1x8x32xf32> to vector<8x32xf32>
    %33 = vector.shape_cast %30 : vector<8x32xf32> to vector<1x8x32xf32>
    tpu.vector_store %arg4[%c0_26, %c0_27, %c96], %33 {strides = array<i32>} : memref<1x8x128xf32, #tpu.memory_space<vmem>>, vector<1x8x32xf32>,
    return
  }
  func.func @transform_0(%arg0: i32) -> (i32, i32, i32, i32) {
    %c0_i32 = arith.constant 0 : i32
    %c0_i32_0 = arith.constant 0 : i32
    %c0_i32_1 = arith.constant 0 : i32
    %c0_i32_2 = arith.constant 0 : i32
    return %arg0, %c0_i32, %c0_i32_0, %c0_i32_1 : i32, i32, i32, i32
  }
  func.func @transform_1(%arg0: i32) -> (i32, i32) {
    %c0_i32 = arith.constant 0 : i32
    %c0_i32_0 = arith.constant 0 : i32
    %c0_i32_1 = arith.constant 0 : i32
    return %c0_i32, %c0_i32_0 : i32, i32
  }
  func.func @transform_2(%arg0: i32) -> (i32, i32) {
    %c0_i32 = arith.constant 0 : i32
    %c0_i32_0 = arith.constant 0 : i32
    %c0_i32_1 = arith.constant 0 : i32
    return %c0_i32, %c0_i32_0 : i32, i32
  }
  func.func @transform_3(%arg0: i32) -> (i32, i32, i32) {
    %c0_i32 = arith.constant 0 : i32
    %c0_i32_0 = arith.constant 0 : i32
    %c0_i32_1 = arith.constant 0 : i32
    return %arg0, %c0_i32, %c0_i32_0 : i32, i32, i32
  }
}

module attributes {stable_mosaic.version = 11 : i64} {
  func.func @_att_block_kernel(%arg0: i32, %arg1: memref<1x8x128xf32, #tpu.memory_space<vmem>>, %arg2: memref<1x32xf32, #tpu.memory_space<vmem>>, %arg3: memref<1x32xf32, #tpu.memory_space<vmem>>, %arg4: memref<32x96xf32, #tpu.memory_space<vmem>>, %arg5: memref<1x96xf32, #tpu.memory_space<vmem>>, %arg6: memref<32x32xf32, #tpu.memory_space<vmem>>, %arg7: memref<1x32xf32, #tpu.memory_space<vmem>>, %arg8: memref<1x8x128xf32, #tpu.memory_space<vmem>>) attributes {dimension_semantics = [#tpu.dimension_semantics<parallel>], iteration_bounds = array<i64: 2>, scalar_prefetch = 0 : i64, scratch_operands = 0 : i64, tpu.core_type = #tpu.core_type<tc>, window_params = [{transform_indices = @transform_0, window_bounds = array<i64: 1, 8, 128>}, {pipeline_mode = #tpu.pipeline_mode<synchronous>, transform_indices = @transform_1, window_bounds = array<i64: 1, 32>}, {pipeline_mode = #tpu.pipeline_mode<synchronous>, transform_indices = @transform_2, window_bounds = array<i64: 1, 32>}, {pipeline_mode = #tpu.pipeline_mode<synchronous>, transform_indices = @transform_3, window_bounds = array<i64: 32, 96>}, {pipeline_mode = #tpu.pipeline_mode<synchronous>, transform_indices = @transform_4, window_bounds = array<i64: 1, 96>}, {pipeline_mode = #tpu.pipeline_mode<synchronous>, transform_indices = @transform_5, window_bounds = array<i64: 32, 32>}, {pipeline_mode = #tpu.pipeline_mode<synchronous>, transform_indices = @transform_6, window_bounds = array<i64: 1, 32>}, {transform_indices = @transform_7, window_bounds = array<i64: 1, 8, 128>}]} {
    %c0 = arith.constant 0 : index
    %c0_0 = arith.constant 0 : index
    %0 = vector.load %arg2[%c0, %c0_0] : memref<1x32xf32, #tpu.memory_space<vmem>>, vector<1x32xf32>
    %c0_1 = arith.constant 0 : index
    %c0_2 = arith.constant 0 : index
    %1 = vector.load %arg3[%c0_1, %c0_2] : memref<1x32xf32, #tpu.memory_space<vmem>>, vector<1x32xf32>
    %c0_3 = arith.constant 0 : index
    %c0_4 = arith.constant 0 : index
    %2 = vector.load %arg4[%c0_3, %c0_4] : memref<32x96xf32, #tpu.memory_space<vmem>>, vector<32x96xf32>
    %c0_5 = arith.constant 0 : index
    %c0_6 = arith.constant 0 : index
    %3 = vector.load %arg5[%c0_5, %c0_6] : memref<1x96xf32, #tpu.memory_space<vmem>>, vector<1x96xf32>
    %c0_7 = arith.constant 0 : index
    %c0_8 = arith.constant 0 : index
    %4 = vector.load %arg6[%c0_7, %c0_8] : memref<32x32xf32, #tpu.memory_space<vmem>>, vector<32x32xf32>
    %c0_9 = arith.constant 0 : index
    %c0_10 = arith.constant 0 : index
    %5 = vector.load %arg7[%c0_9, %c0_10] : memref<1x32xf32, #tpu.memory_space<vmem>>, vector<1x32xf32>
    %c0_11 = arith.constant 0 : index
    %c0_12 = arith.constant 0 : index
    %c0_13 = arith.constant 0 : index
    %6 = vector.load %arg1[%c0_11, %c0_12, %c0_13] : memref<1x8x128xf32, #tpu.memory_space<vmem>>, vector<1x8x32xf32>
    %7 = vector.shape_cast %6 : vector<1x8x32xf32> to vector<8x32xf32>
    %cst = arith.constant dense<0.000000e+00> : vector<8xf32>
    %8 = vector.multi_reduction <add>, %7, %cst [1] : vector<8x32xf32> to vector<8xf32>
    %9 = vector.shape_cast %8 : vector<8xf32> to vector<8x1xf32>
    %cst_14 = arith.constant 3.200000e+01 : f32
    %10 = vector.broadcast %cst_14 : f32 to vector<8x1xf32>
    %11 = arith.divf %9, %10 : vector<8x1xf32>
    %12 = vector.broadcast %11 : vector<8x1xf32> to vector<8x32xf32>
    %13 = arith.subf %7, %12 : vector<8x32xf32>
    %14 = vector.broadcast %11 : vector<8x1xf32> to vector<8x32xf32>
    %15 = arith.subf %7, %14 : vector<8x32xf32>
    %16 = arith.mulf %13, %15 : vector<8x32xf32>
    %cst_15 = arith.constant dense<0.000000e+00> : vector<8xf32>
    %17 = vector.multi_reduction <add>, %16, %cst_15 [1] : vector<8x32xf32> to vector<8xf32>
    %18 = vector.shape_cast %17 : vector<8xf32> to vector<8x1xf32>
    %cst_16 = arith.constant 3.200000e+01 : f32
    %19 = vector.broadcast %cst_16 : f32 to vector<8x1xf32>
    %20 = arith.divf %18, %19 : vector<8x1xf32>
    %21 = vector.broadcast %11 : vector<8x1xf32> to vector<8x32xf32>
    %22 = arith.subf %7, %21 : vector<8x32xf32>
    %cst_17 = arith.constant 9.99999974E-6 : f32
    %23 = vector.broadcast %cst_17 : f32 to vector<8x1xf32>
    %24 = arith.addf %20, %23 : vector<8x1xf32>
    %25 = math.rsqrt %24 : vector<8x1xf32>
    %26 = vector.broadcast %25 : vector<8x1xf32> to vector<8x32xf32>
    %27 = arith.mulf %22, %26 : vector<8x32xf32>
    %28 = vector.broadcast %0 : vector<1x32xf32> to vector<8x32xf32>
    %29 = arith.mulf %27, %28 : vector<8x32xf32>
    %30 = vector.broadcast %1 : vector<1x32xf32> to vector<8x32xf32>
    %31 = arith.addf %29, %30 : vector<8x32xf32>
    %cst_18 = arith.constant dense<0.000000e+00> : vector<8x96xf32>
    %32 = tpu.matmul %31, %2, %cst_18 {dimension_numbers = #tpu.dot_dimension_numbers<[1], [0], [0], [1], [0, 0, 1, 1], [], []>} : vector<8x32xf32>, vector<32x96xf32>, vector<8x96xf32> -> vector<8x96xf32>
    %33 = vector.broadcast %3 : vector<1x96xf32> to vector<8x96xf32>
    %34 = arith.addf %32, %33 : vector<8x96xf32>
    %35 = vector.extract_strided_slice %34 {offsets = [0, 0], sizes = [8, 32], strides = [1, 1]} : vector<8x96xf32> to vector<8x32xf32>
    %36 = vector.extract_strided_slice %34 {offsets = [0, 32], sizes = [8, 32], strides = [1, 1]} : vector<8x96xf32> to vector<8x32xf32>
    %37 = vector.extract_strided_slice %34 {offsets = [0, 64], sizes = [8, 32], strides = [1, 1]} : vector<8x96xf32> to vector<8x32xf32>
    %c0_19 = arith.constant 0 : index
    %c0_20 = arith.constant 0 : index
    %c32 = arith.constant 32 : index
    %38 = vector.load %arg1[%c0_19, %c0_20, %c32] : memref<1x8x128xf32, #tpu.memory_space<vmem>>, vector<1x8x32xf32>
    %39 = vector.shape_cast %38 : vector<1x8x32xf32> to vector<8x32xf32>
    %cst_21 = arith.constant dense<0.000000e+00> : vector<8xf32>
    %40 = vector.multi_reduction <add>, %39, %cst_21 [1] : vector<8x32xf32> to vector<8xf32>
    %41 = vector.shape_cast %40 : vector<8xf32> to vector<8x1xf32>
    %cst_22 = arith.constant 3.200000e+01 : f32
    %42 = vector.broadcast %cst_22 : f32 to vector<8x1xf32>
    %43 = arith.divf %41, %42 : vector<8x1xf32>
    %44 = vector.broadcast %43 : vector<8x1xf32> to vector<8x32xf32>
    %45 = arith.subf %39, %44 : vector<8x32xf32>
    %46 = vector.broadcast %43 : vector<8x1xf32> to vector<8x32xf32>
    %47 = arith.subf %39, %46 : vector<8x32xf32>
    %48 = arith.mulf %45, %47 : vector<8x32xf32>
    %cst_23 = arith.constant dense<0.000000e+00> : vector<8xf32>
    %49 = vector.multi_reduction <add>, %48, %cst_23 [1] : vector<8x32xf32> to vector<8xf32>
    %50 = vector.shape_cast %49 : vector<8xf32> to vector<8x1xf32>
    %cst_24 = arith.constant 3.200000e+01 : f32
    %51 = vector.broadcast %cst_24 : f32 to vector<8x1xf32>
    %52 = arith.divf %50, %51 : vector<8x1xf32>
    %53 = vector.broadcast %43 : vector<8x1xf32> to vector<8x32xf32>
    %54 = arith.subf %39, %53 : vector<8x32xf32>
    %cst_25 = arith.constant 9.99999974E-6 : f32
    %55 = vector.broadcast %cst_25 : f32 to vector<8x1xf32>
    %56 = arith.addf %52, %55 : vector<8x1xf32>
    %57 = math.rsqrt %56 : vector<8x1xf32>
    %58 = vector.broadcast %57 : vector<8x1xf32> to vector<8x32xf32>
    %59 = arith.mulf %54, %58 : vector<8x32xf32>
    %60 = vector.broadcast %0 : vector<1x32xf32> to vector<8x32xf32>
    %61 = arith.mulf %59, %60 : vector<8x32xf32>
    %62 = vector.broadcast %1 : vector<1x32xf32> to vector<8x32xf32>
    %63 = arith.addf %61, %62 : vector<8x32xf32>
    %cst_26 = arith.constant dense<0.000000e+00> : vector<8x96xf32>
    %64 = tpu.matmul %63, %2, %cst_26 {dimension_numbers = #tpu.dot_dimension_numbers<[1], [0], [0], [1], [0, 0, 1, 1], [], []>} : vector<8x32xf32>, vector<32x96xf32>, vector<8x96xf32> -> vector<8x96xf32>
    %65 = vector.broadcast %3 : vector<1x96xf32> to vector<8x96xf32>
    %66 = arith.addf %64, %65 : vector<8x96xf32>
    %67 = vector.extract_strided_slice %66 {offsets = [0, 0], sizes = [8, 32], strides = [1, 1]} : vector<8x96xf32> to vector<8x32xf32>
    %68 = vector.extract_strided_slice %66 {offsets = [0, 32], sizes = [8, 32], strides = [1, 1]} : vector<8x96xf32> to vector<8x32xf32>
    %69 = vector.extract_strided_slice %66 {offsets = [0, 64], sizes = [8, 32], strides = [1, 1]} : vector<8x96xf32> to vector<8x32xf32>
    %c0_27 = arith.constant 0 : index
    %c0_28 = arith.constant 0 : index
    %c64 = arith.constant 64 : index
    %70 = vector.load %arg1[%c0_27, %c0_28, %c64] : memref<1x8x128xf32, #tpu.memory_space<vmem>>, vector<1x8x32xf32>
    %71 = vector.shape_cast %70 : vector<1x8x32xf32> to vector<8x32xf32>
    %cst_29 = arith.constant dense<0.000000e+00> : vector<8xf32>
    %72 = vector.multi_reduction <add>, %71, %cst_29 [1] : vector<8x32xf32> to vector<8xf32>
    %73 = vector.shape_cast %72 : vector<8xf32> to vector<8x1xf32>
    %cst_30 = arith.constant 3.200000e+01 : f32
    %74 = vector.broadcast %cst_30 : f32 to vector<8x1xf32>
    %75 = arith.divf %73, %74 : vector<8x1xf32>
    %76 = vector.broadcast %75 : vector<8x1xf32> to vector<8x32xf32>
    %77 = arith.subf %71, %76 : vector<8x32xf32>
    %78 = vector.broadcast %75 : vector<8x1xf32> to vector<8x32xf32>
    %79 = arith.subf %71, %78 : vector<8x32xf32>
    %80 = arith.mulf %77, %79 : vector<8x32xf32>
    %cst_31 = arith.constant dense<0.000000e+00> : vector<8xf32>
    %81 = vector.multi_reduction <add>, %80, %cst_31 [1] : vector<8x32xf32> to vector<8xf32>
    %82 = vector.shape_cast %81 : vector<8xf32> to vector<8x1xf32>
    %cst_32 = arith.constant 3.200000e+01 : f32
    %83 = vector.broadcast %cst_32 : f32 to vector<8x1xf32>
    %84 = arith.divf %82, %83 : vector<8x1xf32>
    %85 = vector.broadcast %75 : vector<8x1xf32> to vector<8x32xf32>
    %86 = arith.subf %71, %85 : vector<8x32xf32>
    %cst_33 = arith.constant 9.99999974E-6 : f32
    %87 = vector.broadcast %cst_33 : f32 to vector<8x1xf32>
    %88 = arith.addf %84, %87 : vector<8x1xf32>
    %89 = math.rsqrt %88 : vector<8x1xf32>
    %90 = vector.broadcast %89 : vector<8x1xf32> to vector<8x32xf32>
    %91 = arith.mulf %86, %90 : vector<8x32xf32>
    %92 = vector.broadcast %0 : vector<1x32xf32> to vector<8x32xf32>
    %93 = arith.mulf %91, %92 : vector<8x32xf32>
    %94 = vector.broadcast %1 : vector<1x32xf32> to vector<8x32xf32>
    %95 = arith.addf %93, %94 : vector<8x32xf32>
    %cst_34 = arith.constant dense<0.000000e+00> : vector<8x96xf32>
    %96 = tpu.matmul %95, %2, %cst_34 {dimension_numbers = #tpu.dot_dimension_numbers<[1], [0], [0], [1], [0, 0, 1, 1], [], []>} : vector<8x32xf32>, vector<32x96xf32>, vector<8x96xf32> -> vector<8x96xf32>
    %97 = vector.broadcast %3 : vector<1x96xf32> to vector<8x96xf32>
    %98 = arith.addf %96, %97 : vector<8x96xf32>
    %99 = vector.extract_strided_slice %98 {offsets = [0, 0], sizes = [8, 32], strides = [1, 1]} : vector<8x96xf32> to vector<8x32xf32>
    %100 = vector.extract_strided_slice %98 {offsets = [0, 32], sizes = [8, 32], strides = [1, 1]} : vector<8x96xf32> to vector<8x32xf32>
    %101 = vector.extract_strided_slice %98 {offsets = [0, 64], sizes = [8, 32], strides = [1, 1]} : vector<8x96xf32> to vector<8x32xf32>
    %c0_35 = arith.constant 0 : index
    %c0_36 = arith.constant 0 : index
    %c96 = arith.constant 96 : index
    %102 = vector.load %arg1[%c0_35, %c0_36, %c96] : memref<1x8x128xf32, #tpu.memory_space<vmem>>, vector<1x8x32xf32>
    %103 = vector.shape_cast %102 : vector<1x8x32xf32> to vector<8x32xf32>
    %cst_37 = arith.constant dense<0.000000e+00> : vector<8xf32>
    %104 = vector.multi_reduction <add>, %103, %cst_37 [1] : vector<8x32xf32> to vector<8xf32>
    %105 = vector.shape_cast %104 : vector<8xf32> to vector<8x1xf32>
    %cst_38 = arith.constant 3.200000e+01 : f32
    %106 = vector.broadcast %cst_38 : f32 to vector<8x1xf32>
    %107 = arith.divf %105, %106 : vector<8x1xf32>
    %108 = vector.broadcast %107 : vector<8x1xf32> to vector<8x32xf32>
    %109 = arith.subf %103, %108 : vector<8x32xf32>
    %110 = vector.broadcast %107 : vector<8x1xf32> to vector<8x32xf32>
    %111 = arith.subf %103, %110 : vector<8x32xf32>
    %112 = arith.mulf %109, %111 : vector<8x32xf32>
    %cst_39 = arith.constant dense<0.000000e+00> : vector<8xf32>
    %113 = vector.multi_reduction <add>, %112, %cst_39 [1] : vector<8x32xf32> to vector<8xf32>
    %114 = vector.shape_cast %113 : vector<8xf32> to vector<8x1xf32>
    %cst_40 = arith.constant 3.200000e+01 : f32
    %115 = vector.broadcast %cst_40 : f32 to vector<8x1xf32>
    %116 = arith.divf %114, %115 : vector<8x1xf32>
    %117 = vector.broadcast %107 : vector<8x1xf32> to vector<8x32xf32>
    %118 = arith.subf %103, %117 : vector<8x32xf32>
    %cst_41 = arith.constant 9.99999974E-6 : f32
    %119 = vector.broadcast %cst_41 : f32 to vector<8x1xf32>
    %120 = arith.addf %116, %119 : vector<8x1xf32>
    %121 = math.rsqrt %120 : vector<8x1xf32>
    %122 = vector.broadcast %121 : vector<8x1xf32> to vector<8x32xf32>
    %123 = arith.mulf %118, %122 : vector<8x32xf32>
    %124 = vector.broadcast %0 : vector<1x32xf32> to vector<8x32xf32>
    %125 = arith.mulf %123, %124 : vector<8x32xf32>
    %126 = vector.broadcast %1 : vector<1x32xf32> to vector<8x32xf32>
    %127 = arith.addf %125, %126 : vector<8x32xf32>
    %cst_42 = arith.constant dense<0.000000e+00> : vector<8x96xf32>
    %128 = tpu.matmul %127, %2, %cst_42 {dimension_numbers = #tpu.dot_dimension_numbers<[1], [0], [0], [1], [0, 0, 1, 1], [], []>} : vector<8x32xf32>, vector<32x96xf32>, vector<8x96xf32> -> vector<8x96xf32>
    %129 = vector.broadcast %3 : vector<1x96xf32> to vector<8x96xf32>
    %130 = arith.addf %128, %129 : vector<8x96xf32>
    %131 = vector.extract_strided_slice %130 {offsets = [0, 0], sizes = [8, 32], strides = [1, 1]} : vector<8x96xf32> to vector<8x32xf32>
    %132 = vector.extract_strided_slice %130 {offsets = [0, 32], sizes = [8, 32], strides = [1, 1]} : vector<8x96xf32> to vector<8x32xf32>
    %133 = vector.extract_strided_slice %130 {offsets = [0, 64], sizes = [8, 32], strides = [1, 1]} : vector<8x96xf32> to vector<8x32xf32>
    %134 = vector.extract_strided_slice %35 {offsets = [0, 0], sizes = [8, 8], strides = [1, 1]} : vector<8x32xf32> to vector<8x8xf32>
    %135 = vector.extract_strided_slice %36 {offsets = [0, 0], sizes = [8, 8], strides = [1, 1]} : vector<8x32xf32> to vector<8x8xf32>
    %cst_43 = arith.constant dense<0.000000e+00> : vector<8x8xf32>
    %136 = tpu.matmul %134, %135, %cst_43 {dimension_numbers = #tpu.dot_dimension_numbers<[1], [1], [0], [0], [0, 0, 1, 0], [], []>} : vector<8x8xf32>, vector<8x8xf32>, vector<8x8xf32> -> vector<8x8xf32>
    %137 = vector.extract_strided_slice %35 {offsets = [0, 8], sizes = [8, 8], strides = [1, 1]} : vector<8x32xf32> to vector<8x8xf32>
    %138 = vector.extract_strided_slice %36 {offsets = [0, 8], sizes = [8, 8], strides = [1, 1]} : vector<8x32xf32> to vector<8x8xf32>
    %cst_44 = arith.constant dense<0.000000e+00> : vector<8x8xf32>
    %139 = tpu.matmul %137, %138, %cst_44 {dimension_numbers = #tpu.dot_dimension_numbers<[1], [1], [0], [0], [0, 0, 1, 0], [], []>} : vector<8x8xf32>, vector<8x8xf32>, vector<8x8xf32> -> vector<8x8xf32>
    %140 = arith.addf %136, %139 : vector<8x8xf32>
    %141 = vector.extract_strided_slice %35 {offsets = [0, 16], sizes = [8, 8], strides = [1, 1]} : vector<8x32xf32> to vector<8x8xf32>
    %142 = vector.extract_strided_slice %36 {offsets = [0, 16], sizes = [8, 8], strides = [1, 1]} : vector<8x32xf32> to vector<8x8xf32>
    %cst_45 = arith.constant dense<0.000000e+00> : vector<8x8xf32>
    %143 = tpu.matmul %141, %142, %cst_45 {dimension_numbers = #tpu.dot_dimension_numbers<[1], [1], [0], [0], [0, 0, 1, 0], [], []>} : vector<8x8xf32>, vector<8x8xf32>, vector<8x8xf32> -> vector<8x8xf32>
    %144 = arith.addf %140, %143 : vector<8x8xf32>
    %145 = vector.extract_strided_slice %35 {offsets = [0, 24], sizes = [8, 8], strides = [1, 1]} : vector<8x32xf32> to vector<8x8xf32>
    %146 = vector.extract_strided_slice %36 {offsets = [0, 24], sizes = [8, 8], strides = [1, 1]} : vector<8x32xf32> to vector<8x8xf32>
    %cst_46 = arith.constant dense<0.000000e+00> : vector<8x8xf32>
    %147 = tpu.matmul %145, %146, %cst_46 {dimension_numbers = #tpu.dot_dimension_numbers<[1], [1], [0], [0], [0, 0, 1, 0], [], []>} : vector<8x8xf32>, vector<8x8xf32>, vector<8x8xf32> -> vector<8x8xf32>
    %148 = arith.addf %144, %147 : vector<8x8xf32>
    %cst_47 = arith.constant 0.176776692 : f32
    %149 = vector.broadcast %cst_47 : f32 to vector<8x8xf32>
    %150 = arith.mulf %148, %149 : vector<8x8xf32>
    %cst_48 = arith.constant dense<0xFF800000> : vector<8xf32>
    %151 = vector.multi_reduction <maximumf>, %150, %cst_48 [1] : vector<8x8xf32> to vector<8xf32>
    %152 = vector.shape_cast %151 : vector<8xf32> to vector<8x1xf32>
    %153 = vector.broadcast %152 : vector<8x1xf32> to vector<8x8xf32>
    %154 = arith.subf %150, %153 : vector<8x8xf32>
    %155 = math.exp %154 : vector<8x8xf32>
    %cst_49 = arith.constant dense<0.000000e+00> : vector<8xf32>
    %156 = vector.multi_reduction <add>, %155, %cst_49 [1] : vector<8x8xf32> to vector<8xf32>
    %157 = vector.shape_cast %156 : vector<8xf32> to vector<8x1xf32>
    %158 = tpu.reciprocal %157 {approx = true} : vector<8x1xf32> -> vector<8x1xf32>
    %159 = vector.broadcast %158 : vector<8x1xf32> to vector<8x8xf32>
    %160 = arith.mulf %155, %159 : vector<8x8xf32>
    %161 = vector.extract_strided_slice %67 {offsets = [0, 0], sizes = [8, 8], strides = [1, 1]} : vector<8x32xf32> to vector<8x8xf32>
    %162 = vector.extract_strided_slice %68 {offsets = [0, 0], sizes = [8, 8], strides = [1, 1]} : vector<8x32xf32> to vector<8x8xf32>
    %cst_50 = arith.constant dense<0.000000e+00> : vector<8x8xf32>
    %163 = tpu.matmul %161, %162, %cst_50 {dimension_numbers = #tpu.dot_dimension_numbers<[1], [1], [0], [0], [0, 0, 1, 0], [], []>} : vector<8x8xf32>, vector<8x8xf32>, vector<8x8xf32> -> vector<8x8xf32>
    %164 = vector.extract_strided_slice %67 {offsets = [0, 8], sizes = [8, 8], strides = [1, 1]} : vector<8x32xf32> to vector<8x8xf32>
    %165 = vector.extract_strided_slice %68 {offsets = [0, 8], sizes = [8, 8], strides = [1, 1]} : vector<8x32xf32> to vector<8x8xf32>
    %cst_51 = arith.constant dense<0.000000e+00> : vector<8x8xf32>
    %166 = tpu.matmul %164, %165, %cst_51 {dimension_numbers = #tpu.dot_dimension_numbers<[1], [1], [0], [0], [0, 0, 1, 0], [], []>} : vector<8x8xf32>, vector<8x8xf32>, vector<8x8xf32> -> vector<8x8xf32>
    %167 = arith.addf %163, %166 : vector<8x8xf32>
    %168 = vector.extract_strided_slice %67 {offsets = [0, 16], sizes = [8, 8], strides = [1, 1]} : vector<8x32xf32> to vector<8x8xf32>
    %169 = vector.extract_strided_slice %68 {offsets = [0, 16], sizes = [8, 8], strides = [1, 1]} : vector<8x32xf32> to vector<8x8xf32>
    %cst_52 = arith.constant dense<0.000000e+00> : vector<8x8xf32>
    %170 = tpu.matmul %168, %169, %cst_52 {dimension_numbers = #tpu.dot_dimension_numbers<[1], [1], [0], [0], [0, 0, 1, 0], [], []>} : vector<8x8xf32>, vector<8x8xf32>, vector<8x8xf32> -> vector<8x8xf32>
    %171 = arith.addf %167, %170 : vector<8x8xf32>
    %172 = vector.extract_strided_slice %67 {offsets = [0, 24], sizes = [8, 8], strides = [1, 1]} : vector<8x32xf32> to vector<8x8xf32>
    %173 = vector.extract_strided_slice %68 {offsets = [0, 24], sizes = [8, 8], strides = [1, 1]} : vector<8x32xf32> to vector<8x8xf32>
    %cst_53 = arith.constant dense<0.000000e+00> : vector<8x8xf32>
    %174 = tpu.matmul %172, %173, %cst_53 {dimension_numbers = #tpu.dot_dimension_numbers<[1], [1], [0], [0], [0, 0, 1, 0], [], []>} : vector<8x8xf32>, vector<8x8xf32>, vector<8x8xf32> -> vector<8x8xf32>
    %175 = arith.addf %171, %174 : vector<8x8xf32>
    %cst_54 = arith.constant 0.176776692 : f32
    %176 = vector.broadcast %cst_54 : f32 to vector<8x8xf32>
    %177 = arith.mulf %175, %176 : vector<8x8xf32>
    %cst_55 = arith.constant dense<0xFF800000> : vector<8xf32>
    %178 = vector.multi_reduction <maximumf>, %177, %cst_55 [1] : vector<8x8xf32> to vector<8xf32>
    %179 = vector.shape_cast %178 : vector<8xf32> to vector<8x1xf32>
    %180 = vector.broadcast %179 : vector<8x1xf32> to vector<8x8xf32>
    %181 = arith.subf %177, %180 : vector<8x8xf32>
    %182 = math.exp %181 : vector<8x8xf32>
    %cst_56 = arith.constant dense<0.000000e+00> : vector<8xf32>
    %183 = vector.multi_reduction <add>, %182, %cst_56 [1] : vector<8x8xf32> to vector<8xf32>
    %184 = vector.shape_cast %183 : vector<8xf32> to vector<8x1xf32>
    %185 = tpu.reciprocal %184 {approx = true} : vector<8x1xf32> -> vector<8x1xf32>
    %186 = vector.broadcast %185 : vector<8x1xf32> to vector<8x8xf32>
    %187 = arith.mulf %182, %186 : vector<8x8xf32>
    %188 = vector.extract_strided_slice %99 {offsets = [0, 0], sizes = [8, 8], strides = [1, 1]} : vector<8x32xf32> to vector<8x8xf32>
    %189 = vector.extract_strided_slice %100 {offsets = [0, 0], sizes = [8, 8], strides = [1, 1]} : vector<8x32xf32> to vector<8x8xf32>
    %cst_57 = arith.constant dense<0.000000e+00> : vector<8x8xf32>
    %190 = tpu.matmul %188, %189, %cst_57 {dimension_numbers = #tpu.dot_dimension_numbers<[1], [1], [0], [0], [0, 0, 1, 0], [], []>} : vector<8x8xf32>, vector<8x8xf32>, vector<8x8xf32> -> vector<8x8xf32>
    %191 = vector.extract_strided_slice %99 {offsets = [0, 8], sizes = [8, 8], strides = [1, 1]} : vector<8x32xf32> to vector<8x8xf32>
    %192 = vector.extract_strided_slice %100 {offsets = [0, 8], sizes = [8, 8], strides = [1, 1]} : vector<8x32xf32> to vector<8x8xf32>
    %cst_58 = arith.constant dense<0.000000e+00> : vector<8x8xf32>
    %193 = tpu.matmul %191, %192, %cst_58 {dimension_numbers = #tpu.dot_dimension_numbers<[1], [1], [0], [0], [0, 0, 1, 0], [], []>} : vector<8x8xf32>, vector<8x8xf32>, vector<8x8xf32> -> vector<8x8xf32>
    %194 = arith.addf %190, %193 : vector<8x8xf32>
    %195 = vector.extract_strided_slice %99 {offsets = [0, 16], sizes = [8, 8], strides = [1, 1]} : vector<8x32xf32> to vector<8x8xf32>
    %196 = vector.extract_strided_slice %100 {offsets = [0, 16], sizes = [8, 8], strides = [1, 1]} : vector<8x32xf32> to vector<8x8xf32>
    %cst_59 = arith.constant dense<0.000000e+00> : vector<8x8xf32>
    %197 = tpu.matmul %195, %196, %cst_59 {dimension_numbers = #tpu.dot_dimension_numbers<[1], [1], [0], [0], [0, 0, 1, 0], [], []>} : vector<8x8xf32>, vector<8x8xf32>, vector<8x8xf32> -> vector<8x8xf32>
    %198 = arith.addf %194, %197 : vector<8x8xf32>
    %199 = vector.extract_strided_slice %99 {offsets = [0, 24], sizes = [8, 8], strides = [1, 1]} : vector<8x32xf32> to vector<8x8xf32>
    %200 = vector.extract_strided_slice %100 {offsets = [0, 24], sizes = [8, 8], strides = [1, 1]} : vector<8x32xf32> to vector<8x8xf32>
    %cst_60 = arith.constant dense<0.000000e+00> : vector<8x8xf32>
    %201 = tpu.matmul %199, %200, %cst_60 {dimension_numbers = #tpu.dot_dimension_numbers<[1], [1], [0], [0], [0, 0, 1, 0], [], []>} : vector<8x8xf32>, vector<8x8xf32>, vector<8x8xf32> -> vector<8x8xf32>
    %202 = arith.addf %198, %201 : vector<8x8xf32>
    %cst_61 = arith.constant 0.176776692 : f32
    %203 = vector.broadcast %cst_61 : f32 to vector<8x8xf32>
    %204 = arith.mulf %202, %203 : vector<8x8xf32>
    %cst_62 = arith.constant dense<0xFF800000> : vector<8xf32>
    %205 = vector.multi_reduction <maximumf>, %204, %cst_62 [1] : vector<8x8xf32> to vector<8xf32>
    %206 = vector.shape_cast %205 : vector<8xf32> to vector<8x1xf32>
    %207 = vector.broadcast %206 : vector<8x1xf32> to vector<8x8xf32>
    %208 = arith.subf %204, %207 : vector<8x8xf32>
    %209 = math.exp %208 : vector<8x8xf32>
    %cst_63 = arith.constant dense<0.000000e+00> : vector<8xf32>
    %210 = vector.multi_reduction <add>, %209, %cst_63 [1] : vector<8x8xf32> to vector<8xf32>
    %211 = vector.shape_cast %210 : vector<8xf32> to vector<8x1xf32>
    %212 = tpu.reciprocal %211 {approx = true} : vector<8x1xf32> -> vector<8x1xf32>
    %213 = vector.broadcast %212 : vector<8x1xf32> to vector<8x8xf32>
    %214 = arith.mulf %209, %213 : vector<8x8xf32>
    %215 = vector.extract_strided_slice %131 {offsets = [0, 0], sizes = [8, 8], strides = [1, 1]} : vector<8x32xf32> to vector<8x8xf32>
    %216 = vector.extract_strided_slice %132 {offsets = [0, 0], sizes = [8, 8], strides = [1, 1]} : vector<8x32xf32> to vector<8x8xf32>
    %cst_64 = arith.constant dense<0.000000e+00> : vector<8x8xf32>
    %217 = tpu.matmul %215, %216, %cst_64 {dimension_numbers = #tpu.dot_dimension_numbers<[1], [1], [0], [0], [0, 0, 1, 0], [], []>} : vector<8x8xf32>, vector<8x8xf32>, vector<8x8xf32> -> vector<8x8xf32>
    %218 = vector.extract_strided_slice %131 {offsets = [0, 8], sizes = [8, 8], strides = [1, 1]} : vector<8x32xf32> to vector<8x8xf32>
    %219 = vector.extract_strided_slice %132 {offsets = [0, 8], sizes = [8, 8], strides = [1, 1]} : vector<8x32xf32> to vector<8x8xf32>
    %cst_65 = arith.constant dense<0.000000e+00> : vector<8x8xf32>
    %220 = tpu.matmul %218, %219, %cst_65 {dimension_numbers = #tpu.dot_dimension_numbers<[1], [1], [0], [0], [0, 0, 1, 0], [], []>} : vector<8x8xf32>, vector<8x8xf32>, vector<8x8xf32> -> vector<8x8xf32>
    %221 = arith.addf %217, %220 : vector<8x8xf32>
    %222 = vector.extract_strided_slice %131 {offsets = [0, 16], sizes = [8, 8], strides = [1, 1]} : vector<8x32xf32> to vector<8x8xf32>
    %223 = vector.extract_strided_slice %132 {offsets = [0, 16], sizes = [8, 8], strides = [1, 1]} : vector<8x32xf32> to vector<8x8xf32>
    %cst_66 = arith.constant dense<0.000000e+00> : vector<8x8xf32>
    %224 = tpu.matmul %222, %223, %cst_66 {dimension_numbers = #tpu.dot_dimension_numbers<[1], [1], [0], [0], [0, 0, 1, 0], [], []>} : vector<8x8xf32>, vector<8x8xf32>, vector<8x8xf32> -> vector<8x8xf32>
    %225 = arith.addf %221, %224 : vector<8x8xf32>
    %226 = vector.extract_strided_slice %131 {offsets = [0, 24], sizes = [8, 8], strides = [1, 1]} : vector<8x32xf32> to vector<8x8xf32>
    %227 = vector.extract_strided_slice %132 {offsets = [0, 24], sizes = [8, 8], strides = [1, 1]} : vector<8x32xf32> to vector<8x8xf32>
    %cst_67 = arith.constant dense<0.000000e+00> : vector<8x8xf32>
    %228 = tpu.matmul %226, %227, %cst_67 {dimension_numbers = #tpu.dot_dimension_numbers<[1], [1], [0], [0], [0, 0, 1, 0], [], []>} : vector<8x8xf32>, vector<8x8xf32>, vector<8x8xf32> -> vector<8x8xf32>
    %229 = arith.addf %225, %228 : vector<8x8xf32>
    %cst_68 = arith.constant 0.176776692 : f32
    %230 = vector.broadcast %cst_68 : f32 to vector<8x8xf32>
    %231 = arith.mulf %229, %230 : vector<8x8xf32>
    %cst_69 = arith.constant dense<0xFF800000> : vector<8xf32>
    %232 = vector.multi_reduction <maximumf>, %231, %cst_69 [1] : vector<8x8xf32> to vector<8xf32>
    %233 = vector.shape_cast %232 : vector<8xf32> to vector<8x1xf32>
    %234 = vector.broadcast %233 : vector<8x1xf32> to vector<8x8xf32>
    %235 = arith.subf %231, %234 : vector<8x8xf32>
    %236 = math.exp %235 : vector<8x8xf32>
    %cst_70 = arith.constant dense<0.000000e+00> : vector<8xf32>
    %237 = vector.multi_reduction <add>, %236, %cst_70 [1] : vector<8x8xf32> to vector<8xf32>
    %238 = vector.shape_cast %237 : vector<8xf32> to vector<8x1xf32>
    %239 = tpu.reciprocal %238 {approx = true} : vector<8x1xf32> -> vector<8x1xf32>
    %240 = vector.broadcast %239 : vector<8x1xf32> to vector<8x8xf32>
    %241 = arith.mulf %236, %240 : vector<8x8xf32>
    %242 = vector.broadcast %5 : vector<1x32xf32> to vector<8x32xf32>
    %243 = arith.addf %31, %242 : vector<8x32xf32>
    %244 = vector.extract_strided_slice %37 {offsets = [0, 0], sizes = [8, 8], strides = [1, 1]} : vector<8x32xf32> to vector<8x8xf32>
    %cst_71 = arith.constant dense<0.000000e+00> : vector<8x8xf32>
    %245 = tpu.matmul %160, %244, %cst_71 {dimension_numbers = #tpu.dot_dimension_numbers<[1], [0], [0], [1], [0, 0, 1, 1], [], []>} : vector<8x8xf32>, vector<8x8xf32>, vector<8x8xf32> -> vector<8x8xf32>
    %246 = vector.extract_strided_slice %4 {offsets = [0, 0], sizes = [8, 32], strides = [1, 1]} : vector<32x32xf32> to vector<8x32xf32>
    %cst_72 = arith.constant dense<0.000000e+00> : vector<8x32xf32>
    %247 = tpu.matmul %245, %246, %cst_72 {dimension_numbers = #tpu.dot_dimension_numbers<[1], [0], [0], [1], [0, 0, 1, 1], [], []>} : vector<8x8xf32>, vector<8x32xf32>, vector<8x32xf32> -> vector<8x32xf32>
    %248 = arith.addf %243, %247 : vector<8x32xf32>
    %249 = vector.extract_strided_slice %37 {offsets = [0, 8], sizes = [8, 8], strides = [1, 1]} : vector<8x32xf32> to vector<8x8xf32>
    %cst_73 = arith.constant dense<0.000000e+00> : vector<8x8xf32>
    %250 = tpu.matmul %187, %249, %cst_73 {dimension_numbers = #tpu.dot_dimension_numbers<[1], [0], [0], [1], [0, 0, 1, 1], [], []>} : vector<8x8xf32>, vector<8x8xf32>, vector<8x8xf32> -> vector<8x8xf32>
    %251 = vector.extract_strided_slice %4 {offsets = [8, 0], sizes = [8, 32], strides = [1, 1]} : vector<32x32xf32> to vector<8x32xf32>
    %cst_74 = arith.constant dense<0.000000e+00> : vector<8x32xf32>
    %252 = tpu.matmul %250, %251, %cst_74 {dimension_numbers = #tpu.dot_dimension_numbers<[1], [0], [0], [1], [0, 0, 1, 1], [], []>} : vector<8x8xf32>, vector<8x32xf32>, vector<8x32xf32> -> vector<8x32xf32>
    %253 = arith.addf %248, %252 : vector<8x32xf32>
    %254 = vector.extract_strided_slice %37 {offsets = [0, 16], sizes = [8, 8], strides = [1, 1]} : vector<8x32xf32> to vector<8x8xf32>
    %cst_75 = arith.constant dense<0.000000e+00> : vector<8x8xf32>
    %255 = tpu.matmul %214, %254, %cst_75 {dimension_numbers = #tpu.dot_dimension_numbers<[1], [0], [0], [1], [0, 0, 1, 1], [], []>} : vector<8x8xf32>, vector<8x8xf32>, vector<8x8xf32> -> vector<8x8xf32>
    %256 = vector.extract_strided_slice %4 {offsets = [16, 0], sizes = [8, 32], strides = [1, 1]} : vector<32x32xf32> to vector<8x32xf32>
    %cst_76 = arith.constant dense<0.000000e+00> : vector<8x32xf32>
    %257 = tpu.matmul %255, %256, %cst_76 {dimension_numbers = #tpu.dot_dimension_numbers<[1], [0], [0], [1], [0, 0, 1, 1], [], []>} : vector<8x8xf32>, vector<8x32xf32>, vector<8x32xf32> -> vector<8x32xf32>
    %258 = arith.addf %253, %257 : vector<8x32xf32>
    %259 = vector.extract_strided_slice %37 {offsets = [0, 24], sizes = [8, 8], strides = [1, 1]} : vector<8x32xf32> to vector<8x8xf32>
    %cst_77 = arith.constant dense<0.000000e+00> : vector<8x8xf32>
    %260 = tpu.matmul %241, %259, %cst_77 {dimension_numbers = #tpu.dot_dimension_numbers<[1], [0], [0], [1], [0, 0, 1, 1], [], []>} : vector<8x8xf32>, vector<8x8xf32>, vector<8x8xf32> -> vector<8x8xf32>
    %261 = vector.extract_strided_slice %4 {offsets = [24, 0], sizes = [8, 32], strides = [1, 1]} : vector<32x32xf32> to vector<8x32xf32>
    %cst_78 = arith.constant dense<0.000000e+00> : vector<8x32xf32>
    %262 = tpu.matmul %260, %261, %cst_78 {dimension_numbers = #tpu.dot_dimension_numbers<[1], [0], [0], [1], [0, 0, 1, 1], [], []>} : vector<8x8xf32>, vector<8x32xf32>, vector<8x32xf32> -> vector<8x32xf32>
    %263 = arith.addf %258, %262 : vector<8x32xf32>
    %c0_79 = arith.constant 0 : index
    %c0_80 = arith.constant 0 : index
    %c0_81 = arith.constant 0 : index
    %264 = vector.load %arg8[%c0_79, %c0_80, %c0_81] : memref<1x8x128xf32, #tpu.memory_space<vmem>>, vector<1x8x32xf32>
    %265 = vector.shape_cast %264 : vector<1x8x32xf32> to vector<8x32xf32>
    %266 = vector.shape_cast %263 : vector<8x32xf32> to vector<1x8x32xf32>
    tpu.vector_store %arg8[%c0_79, %c0_80, %c0_81], %266 {strides = array<i32>} : memref<1x8x128xf32, #tpu.memory_space<vmem>>, vector<1x8x32xf32>,
    %267 = vector.broadcast %5 : vector<1x32xf32> to vector<8x32xf32>
    %268 = arith.addf %63, %267 : vector<8x32xf32>
    %269 = vector.extract_strided_slice %69 {offsets = [0, 0], sizes = [8, 8], strides = [1, 1]} : vector<8x32xf32> to vector<8x8xf32>
    %cst_82 = arith.constant dense<0.000000e+00> : vector<8x8xf32>
    %270 = tpu.matmul %160, %269, %cst_82 {dimension_numbers = #tpu.dot_dimension_numbers<[1], [0], [0], [1], [0, 0, 1, 1], [], []>} : vector<8x8xf32>, vector<8x8xf32>, vector<8x8xf32> -> vector<8x8xf32>
    %271 = vector.extract_strided_slice %4 {offsets = [0, 0], sizes = [8, 32], strides = [1, 1]} : vector<32x32xf32> to vector<8x32xf32>
    %cst_83 = arith.constant dense<0.000000e+00> : vector<8x32xf32>
    %272 = tpu.matmul %270, %271, %cst_83 {dimension_numbers = #tpu.dot_dimension_numbers<[1], [0], [0], [1], [0, 0, 1, 1], [], []>} : vector<8x8xf32>, vector<8x32xf32>, vector<8x32xf32> -> vector<8x32xf32>
    %273 = arith.addf %268, %272 : vector<8x32xf32>
    %274 = vector.extract_strided_slice %69 {offsets = [0, 8], sizes = [8, 8], strides = [1, 1]} : vector<8x32xf32> to vector<8x8xf32>
    %cst_84 = arith.constant dense<0.000000e+00> : vector<8x8xf32>
    %275 = tpu.matmul %187, %274, %cst_84 {dimension_numbers = #tpu.dot_dimension_numbers<[1], [0], [0], [1], [0, 0, 1, 1], [], []>} : vector<8x8xf32>, vector<8x8xf32>, vector<8x8xf32> -> vector<8x8xf32>
    %276 = vector.extract_strided_slice %4 {offsets = [8, 0], sizes = [8, 32], strides = [1, 1]} : vector<32x32xf32> to vector<8x32xf32>
    %cst_85 = arith.constant dense<0.000000e+00> : vector<8x32xf32>
    %277 = tpu.matmul %275, %276, %cst_85 {dimension_numbers = #tpu.dot_dimension_numbers<[1], [0], [0], [1], [0, 0, 1, 1], [], []>} : vector<8x8xf32>, vector<8x32xf32>, vector<8x32xf32> -> vector<8x32xf32>
    %278 = arith.addf %273, %277 : vector<8x32xf32>
    %279 = vector.extract_strided_slice %69 {offsets = [0, 16], sizes = [8, 8], strides = [1, 1]} : vector<8x32xf32> to vector<8x8xf32>
    %cst_86 = arith.constant dense<0.000000e+00> : vector<8x8xf32>
    %280 = tpu.matmul %214, %279, %cst_86 {dimension_numbers = #tpu.dot_dimension_numbers<[1], [0], [0], [1], [0, 0, 1, 1], [], []>} : vector<8x8xf32>, vector<8x8xf32>, vector<8x8xf32> -> vector<8x8xf32>
    %281 = vector.extract_strided_slice %4 {offsets = [16, 0], sizes = [8, 32], strides = [1, 1]} : vector<32x32xf32> to vector<8x32xf32>
    %cst_87 = arith.constant dense<0.000000e+00> : vector<8x32xf32>
    %282 = tpu.matmul %280, %281, %cst_87 {dimension_numbers = #tpu.dot_dimension_numbers<[1], [0], [0], [1], [0, 0, 1, 1], [], []>} : vector<8x8xf32>, vector<8x32xf32>, vector<8x32xf32> -> vector<8x32xf32>
    %283 = arith.addf %278, %282 : vector<8x32xf32>
    %284 = vector.extract_strided_slice %69 {offsets = [0, 24], sizes = [8, 8], strides = [1, 1]} : vector<8x32xf32> to vector<8x8xf32>
    %cst_88 = arith.constant dense<0.000000e+00> : vector<8x8xf32>
    %285 = tpu.matmul %241, %284, %cst_88 {dimension_numbers = #tpu.dot_dimension_numbers<[1], [0], [0], [1], [0, 0, 1, 1], [], []>} : vector<8x8xf32>, vector<8x8xf32>, vector<8x8xf32> -> vector<8x8xf32>
    %286 = vector.extract_strided_slice %4 {offsets = [24, 0], sizes = [8, 32], strides = [1, 1]} : vector<32x32xf32> to vector<8x32xf32>
    %cst_89 = arith.constant dense<0.000000e+00> : vector<8x32xf32>
    %287 = tpu.matmul %285, %286, %cst_89 {dimension_numbers = #tpu.dot_dimension_numbers<[1], [0], [0], [1], [0, 0, 1, 1], [], []>} : vector<8x8xf32>, vector<8x32xf32>, vector<8x32xf32> -> vector<8x32xf32>
    %288 = arith.addf %283, %287 : vector<8x32xf32>
    %c0_90 = arith.constant 0 : index
    %c0_91 = arith.constant 0 : index
    %c32_92 = arith.constant 32 : index
    %289 = vector.load %arg8[%c0_90, %c0_91, %c32_92] : memref<1x8x128xf32, #tpu.memory_space<vmem>>, vector<1x8x32xf32>
    %290 = vector.shape_cast %289 : vector<1x8x32xf32> to vector<8x32xf32>
    %291 = vector.shape_cast %288 : vector<8x32xf32> to vector<1x8x32xf32>
    tpu.vector_store %arg8[%c0_90, %c0_91, %c32_92], %291 {strides = array<i32>} : memref<1x8x128xf32, #tpu.memory_space<vmem>>, vector<1x8x32xf32>,
    %292 = vector.broadcast %5 : vector<1x32xf32> to vector<8x32xf32>
    %293 = arith.addf %95, %292 : vector<8x32xf32>
    %294 = vector.extract_strided_slice %101 {offsets = [0, 0], sizes = [8, 8], strides = [1, 1]} : vector<8x32xf32> to vector<8x8xf32>
    %cst_93 = arith.constant dense<0.000000e+00> : vector<8x8xf32>
    %295 = tpu.matmul %160, %294, %cst_93 {dimension_numbers = #tpu.dot_dimension_numbers<[1], [0], [0], [1], [0, 0, 1, 1], [], []>} : vector<8x8xf32>, vector<8x8xf32>, vector<8x8xf32> -> vector<8x8xf32>
    %296 = vector.extract_strided_slice %4 {offsets = [0, 0], sizes = [8, 32], strides = [1, 1]} : vector<32x32xf32> to vector<8x32xf32>
    %cst_94 = arith.constant dense<0.000000e+00> : vector<8x32xf32>
    %297 = tpu.matmul %295, %296, %cst_94 {dimension_numbers = #tpu.dot_dimension_numbers<[1], [0], [0], [1], [0, 0, 1, 1], [], []>} : vector<8x8xf32>, vector<8x32xf32>, vector<8x32xf32> -> vector<8x32xf32>
    %298 = arith.addf %293, %297 : vector<8x32xf32>
    %299 = vector.extract_strided_slice %101 {offsets = [0, 8], sizes = [8, 8], strides = [1, 1]} : vector<8x32xf32> to vector<8x8xf32>
    %cst_95 = arith.constant dense<0.000000e+00> : vector<8x8xf32>
    %300 = tpu.matmul %187, %299, %cst_95 {dimension_numbers = #tpu.dot_dimension_numbers<[1], [0], [0], [1], [0, 0, 1, 1], [], []>} : vector<8x8xf32>, vector<8x8xf32>, vector<8x8xf32> -> vector<8x8xf32>
    %301 = vector.extract_strided_slice %4 {offsets = [8, 0], sizes = [8, 32], strides = [1, 1]} : vector<32x32xf32> to vector<8x32xf32>
    %cst_96 = arith.constant dense<0.000000e+00> : vector<8x32xf32>
    %302 = tpu.matmul %300, %301, %cst_96 {dimension_numbers = #tpu.dot_dimension_numbers<[1], [0], [0], [1], [0, 0, 1, 1], [], []>} : vector<8x8xf32>, vector<8x32xf32>, vector<8x32xf32> -> vector<8x32xf32>
    %303 = arith.addf %298, %302 : vector<8x32xf32>
    %304 = vector.extract_strided_slice %101 {offsets = [0, 16], sizes = [8, 8], strides = [1, 1]} : vector<8x32xf32> to vector<8x8xf32>
    %cst_97 = arith.constant dense<0.000000e+00> : vector<8x8xf32>
    %305 = tpu.matmul %214, %304, %cst_97 {dimension_numbers = #tpu.dot_dimension_numbers<[1], [0], [0], [1], [0, 0, 1, 1], [], []>} : vector<8x8xf32>, vector<8x8xf32>, vector<8x8xf32> -> vector<8x8xf32>
    %306 = vector.extract_strided_slice %4 {offsets = [16, 0], sizes = [8, 32], strides = [1, 1]} : vector<32x32xf32> to vector<8x32xf32>
    %cst_98 = arith.constant dense<0.000000e+00> : vector<8x32xf32>
    %307 = tpu.matmul %305, %306, %cst_98 {dimension_numbers = #tpu.dot_dimension_numbers<[1], [0], [0], [1], [0, 0, 1, 1], [], []>} : vector<8x8xf32>, vector<8x32xf32>, vector<8x32xf32> -> vector<8x32xf32>
    %308 = arith.addf %303, %307 : vector<8x32xf32>
    %309 = vector.extract_strided_slice %101 {offsets = [0, 24], sizes = [8, 8], strides = [1, 1]} : vector<8x32xf32> to vector<8x8xf32>
    %cst_99 = arith.constant dense<0.000000e+00> : vector<8x8xf32>
    %310 = tpu.matmul %241, %309, %cst_99 {dimension_numbers = #tpu.dot_dimension_numbers<[1], [0], [0], [1], [0, 0, 1, 1], [], []>} : vector<8x8xf32>, vector<8x8xf32>, vector<8x8xf32> -> vector<8x8xf32>
    %311 = vector.extract_strided_slice %4 {offsets = [24, 0], sizes = [8, 32], strides = [1, 1]} : vector<32x32xf32> to vector<8x32xf32>
    %cst_100 = arith.constant dense<0.000000e+00> : vector<8x32xf32>
    %312 = tpu.matmul %310, %311, %cst_100 {dimension_numbers = #tpu.dot_dimension_numbers<[1], [0], [0], [1], [0, 0, 1, 1], [], []>} : vector<8x8xf32>, vector<8x32xf32>, vector<8x32xf32> -> vector<8x32xf32>
    %313 = arith.addf %308, %312 : vector<8x32xf32>
    %c0_101 = arith.constant 0 : index
    %c0_102 = arith.constant 0 : index
    %c64_103 = arith.constant 64 : index
    %314 = vector.load %arg8[%c0_101, %c0_102, %c64_103] : memref<1x8x128xf32, #tpu.memory_space<vmem>>, vector<1x8x32xf32>
    %315 = vector.shape_cast %314 : vector<1x8x32xf32> to vector<8x32xf32>
    %316 = vector.shape_cast %313 : vector<8x32xf32> to vector<1x8x32xf32>
    tpu.vector_store %arg8[%c0_101, %c0_102, %c64_103], %316 {strides = array<i32>} : memref<1x8x128xf32, #tpu.memory_space<vmem>>, vector<1x8x32xf32>,
    %317 = vector.broadcast %5 : vector<1x32xf32> to vector<8x32xf32>
    %318 = arith.addf %127, %317 : vector<8x32xf32>
    %319 = vector.extract_strided_slice %133 {offsets = [0, 0], sizes = [8, 8], strides = [1, 1]} : vector<8x32xf32> to vector<8x8xf32>
    %cst_104 = arith.constant dense<0.000000e+00> : vector<8x8xf32>
    %320 = tpu.matmul %160, %319, %cst_104 {dimension_numbers = #tpu.dot_dimension_numbers<[1], [0], [0], [1], [0, 0, 1, 1], [], []>} : vector<8x8xf32>, vector<8x8xf32>, vector<8x8xf32> -> vector<8x8xf32>
    %321 = vector.extract_strided_slice %4 {offsets = [0, 0], sizes = [8, 32], strides = [1, 1]} : vector<32x32xf32> to vector<8x32xf32>
    %cst_105 = arith.constant dense<0.000000e+00> : vector<8x32xf32>
    %322 = tpu.matmul %320, %321, %cst_105 {dimension_numbers = #tpu.dot_dimension_numbers<[1], [0], [0], [1], [0, 0, 1, 1], [], []>} : vector<8x8xf32>, vector<8x32xf32>, vector<8x32xf32> -> vector<8x32xf32>
    %323 = arith.addf %318, %322 : vector<8x32xf32>
    %324 = vector.extract_strided_slice %133 {offsets = [0, 8], sizes = [8, 8], strides = [1, 1]} : vector<8x32xf32> to vector<8x8xf32>
    %cst_106 = arith.constant dense<0.000000e+00> : vector<8x8xf32>
    %325 = tpu.matmul %187, %324, %cst_106 {dimension_numbers = #tpu.dot_dimension_numbers<[1], [0], [0], [1], [0, 0, 1, 1], [], []>} : vector<8x8xf32>, vector<8x8xf32>, vector<8x8xf32> -> vector<8x8xf32>
    %326 = vector.extract_strided_slice %4 {offsets = [8, 0], sizes = [8, 32], strides = [1, 1]} : vector<32x32xf32> to vector<8x32xf32>
    %cst_107 = arith.constant dense<0.000000e+00> : vector<8x32xf32>
    %327 = tpu.matmul %325, %326, %cst_107 {dimension_numbers = #tpu.dot_dimension_numbers<[1], [0], [0], [1], [0, 0, 1, 1], [], []>} : vector<8x8xf32>, vector<8x32xf32>, vector<8x32xf32> -> vector<8x32xf32>
    %328 = arith.addf %323, %327 : vector<8x32xf32>
    %329 = vector.extract_strided_slice %133 {offsets = [0, 16], sizes = [8, 8], strides = [1, 1]} : vector<8x32xf32> to vector<8x8xf32>
    %cst_108 = arith.constant dense<0.000000e+00> : vector<8x8xf32>
    %330 = tpu.matmul %214, %329, %cst_108 {dimension_numbers = #tpu.dot_dimension_numbers<[1], [0], [0], [1], [0, 0, 1, 1], [], []>} : vector<8x8xf32>, vector<8x8xf32>, vector<8x8xf32> -> vector<8x8xf32>
    %331 = vector.extract_strided_slice %4 {offsets = [16, 0], sizes = [8, 32], strides = [1, 1]} : vector<32x32xf32> to vector<8x32xf32>
    %cst_109 = arith.constant dense<0.000000e+00> : vector<8x32xf32>
    %332 = tpu.matmul %330, %331, %cst_109 {dimension_numbers = #tpu.dot_dimension_numbers<[1], [0], [0], [1], [0, 0, 1, 1], [], []>} : vector<8x8xf32>, vector<8x32xf32>, vector<8x32xf32> -> vector<8x32xf32>
    %333 = arith.addf %328, %332 : vector<8x32xf32>
    %334 = vector.extract_strided_slice %133 {offsets = [0, 24], sizes = [8, 8], strides = [1, 1]} : vector<8x32xf32> to vector<8x8xf32>
    %cst_110 = arith.constant dense<0.000000e+00> : vector<8x8xf32>
    %335 = tpu.matmul %241, %334, %cst_110 {dimension_numbers = #tpu.dot_dimension_numbers<[1], [0], [0], [1], [0, 0, 1, 1], [], []>} : vector<8x8xf32>, vector<8x8xf32>, vector<8x8xf32> -> vector<8x8xf32>
    %336 = vector.extract_strided_slice %4 {offsets = [24, 0], sizes = [8, 32], strides = [1, 1]} : vector<32x32xf32> to vector<8x32xf32>
    %cst_111 = arith.constant dense<0.000000e+00> : vector<8x32xf32>
    %337 = tpu.matmul %335, %336, %cst_111 {dimension_numbers = #tpu.dot_dimension_numbers<[1], [0], [0], [1], [0, 0, 1, 1], [], []>} : vector<8x8xf32>, vector<8x32xf32>, vector<8x32xf32> -> vector<8x32xf32>
    %338 = arith.addf %333, %337 : vector<8x32xf32>
    %c0_112 = arith.constant 0 : index
    %c0_113 = arith.constant 0 : index
    %c96_114 = arith.constant 96 : index
    %339 = vector.load %arg8[%c0_112, %c0_113, %c96_114] : memref<1x8x128xf32, #tpu.memory_space<vmem>>, vector<1x8x32xf32>
    %340 = vector.shape_cast %339 : vector<1x8x32xf32> to vector<8x32xf32>
    %341 = vector.shape_cast %338 : vector<8x32xf32> to vector<1x8x32xf32>
    tpu.vector_store %arg8[%c0_112, %c0_113, %c96_114], %341 {strides = array<i32>} : memref<1x8x128xf32, #tpu.memory_space<vmem>>, vector<1x8x32xf32>,
    return
  }
  func.func @transform_0(%arg0: i32) -> (i32, i32, i32) {
    %c0_i32 = arith.constant 0 : i32
    %c0_i32_0 = arith.constant 0 : i32
    %c0_i32_1 = arith.constant 0 : i32
    return %arg0, %c0_i32, %c0_i32_0 : i32, i32, i32
  }
  func.func @transform_1(%arg0: i32) -> (i32, i32) {
    %c0_i32 = arith.constant 0 : i32
    %c0_i32_0 = arith.constant 0 : i32
    %c0_i32_1 = arith.constant 0 : i32
    return %c0_i32, %c0_i32_0 : i32, i32
  }
  func.func @transform_2(%arg0: i32) -> (i32, i32) {
    %c0_i32 = arith.constant 0 : i32
    %c0_i32_0 = arith.constant 0 : i32
    %c0_i32_1 = arith.constant 0 : i32
    return %c0_i32, %c0_i32_0 : i32, i32
  }
  func.func @transform_3(%arg0: i32) -> (i32, i32) {
    %c0_i32 = arith.constant 0 : i32
    %c0_i32_0 = arith.constant 0 : i32
    %c0_i32_1 = arith.constant 0 : i32
    return %c0_i32, %c0_i32_0 : i32, i32
  }
  func.func @transform_4(%arg0: i32) -> (i32, i32) {
    %c0_i32 = arith.constant 0 : i32
    %c0_i32_0 = arith.constant 0 : i32
    %c0_i32_1 = arith.constant 0 : i32
    return %c0_i32, %c0_i32_0 : i32, i32
  }
  func.func @transform_5(%arg0: i32) -> (i32, i32) {
    %c0_i32 = arith.constant 0 : i32
    %c0_i32_0 = arith.constant 0 : i32
    %c0_i32_1 = arith.constant 0 : i32
    return %c0_i32, %c0_i32_0 : i32, i32
  }
  func.func @transform_6(%arg0: i32) -> (i32, i32) {
    %c0_i32 = arith.constant 0 : i32
    %c0_i32_0 = arith.constant 0 : i32
    %c0_i32_1 = arith.constant 0 : i32
    return %c0_i32, %c0_i32_0 : i32, i32
  }
  func.func @transform_7(%arg0: i32) -> (i32, i32, i32) {
    %c0_i32 = arith.constant 0 : i32
    %c0_i32_0 = arith.constant 0 : i32
    %c0_i32_1 = arith.constant 0 : i32
    return %arg0, %c0_i32, %c0_i32_0 : i32, i32, i32
  }
}

module attributes {stable_mosaic.version = 11 : i64} {
  func.func @_ffn_block_kernel(%arg0: i32, %arg1: memref<32x32xf32, #tpu.memory_space<vmem>>, %arg2: memref<1x32xf32, #tpu.memory_space<vmem>>, %arg3: memref<1x32xf32, #tpu.memory_space<vmem>>, %arg4: memref<32x64xf32, #tpu.memory_space<vmem>>, %arg5: memref<1x64xf32, #tpu.memory_space<vmem>>, %arg6: memref<64x32xf32, #tpu.memory_space<vmem>>, %arg7: memref<1x32xf32, #tpu.memory_space<vmem>>, %arg8: memref<32x32xf32, #tpu.memory_space<vmem>>) attributes {dimension_semantics = [#tpu.dimension_semantics<parallel>], iteration_bounds = array<i64: 2>, scalar_prefetch = 0 : i64, scratch_operands = 0 : i64, tpu.core_type = #tpu.core_type<tc>, window_params = [{transform_indices = @transform_0, window_bounds = array<i64: 32, 32>}, {pipeline_mode = #tpu.pipeline_mode<synchronous>, transform_indices = @transform_1, window_bounds = array<i64: 1, 32>}, {pipeline_mode = #tpu.pipeline_mode<synchronous>, transform_indices = @transform_2, window_bounds = array<i64: 1, 32>}, {pipeline_mode = #tpu.pipeline_mode<synchronous>, transform_indices = @transform_3, window_bounds = array<i64: 32, 64>}, {pipeline_mode = #tpu.pipeline_mode<synchronous>, transform_indices = @transform_4, window_bounds = array<i64: 1, 64>}, {pipeline_mode = #tpu.pipeline_mode<synchronous>, transform_indices = @transform_5, window_bounds = array<i64: 64, 32>}, {pipeline_mode = #tpu.pipeline_mode<synchronous>, transform_indices = @transform_6, window_bounds = array<i64: 1, 32>}, {transform_indices = @transform_7, window_bounds = array<i64: 32, 32>}]} {
    %c0 = arith.constant 0 : index
    %c0_0 = arith.constant 0 : index
    %0 = vector.load %arg1[%c0, %c0_0] : memref<32x32xf32, #tpu.memory_space<vmem>>, vector<32x32xf32>
    %c0_1 = arith.constant 0 : index
    %c0_2 = arith.constant 0 : index
    %1 = vector.load %arg2[%c0_1, %c0_2] : memref<1x32xf32, #tpu.memory_space<vmem>>, vector<1x32xf32>
    %c0_3 = arith.constant 0 : index
    %c0_4 = arith.constant 0 : index
    %2 = vector.load %arg3[%c0_3, %c0_4] : memref<1x32xf32, #tpu.memory_space<vmem>>, vector<1x32xf32>
    %cst = arith.constant dense<0.000000e+00> : vector<32xf32>
    %3 = vector.multi_reduction <add>, %0, %cst [1] : vector<32x32xf32> to vector<32xf32>
    %4 = vector.shape_cast %3 : vector<32xf32> to vector<32x1xf32>
    %cst_5 = arith.constant 3.200000e+01 : f32
    %5 = vector.broadcast %cst_5 : f32 to vector<32x1xf32>
    %6 = arith.divf %4, %5 : vector<32x1xf32>
    %7 = vector.broadcast %6 : vector<32x1xf32> to vector<32x32xf32>
    %8 = arith.subf %0, %7 : vector<32x32xf32>
    %9 = vector.broadcast %6 : vector<32x1xf32> to vector<32x32xf32>
    %10 = arith.subf %0, %9 : vector<32x32xf32>
    %11 = arith.mulf %8, %10 : vector<32x32xf32>
    %cst_6 = arith.constant dense<0.000000e+00> : vector<32xf32>
    %12 = vector.multi_reduction <add>, %11, %cst_6 [1] : vector<32x32xf32> to vector<32xf32>
    %13 = vector.shape_cast %12 : vector<32xf32> to vector<32x1xf32>
    %cst_7 = arith.constant 3.200000e+01 : f32
    %14 = vector.broadcast %cst_7 : f32 to vector<32x1xf32>
    %15 = arith.divf %13, %14 : vector<32x1xf32>
    %16 = vector.broadcast %6 : vector<32x1xf32> to vector<32x32xf32>
    %17 = arith.subf %0, %16 : vector<32x32xf32>
    %cst_8 = arith.constant 9.99999974E-6 : f32
    %18 = vector.broadcast %cst_8 : f32 to vector<32x1xf32>
    %19 = arith.addf %15, %18 : vector<32x1xf32>
    %20 = math.rsqrt %19 : vector<32x1xf32>
    %21 = vector.broadcast %20 : vector<32x1xf32> to vector<32x32xf32>
    %22 = arith.mulf %17, %21 : vector<32x32xf32>
    %23 = vector.broadcast %1 : vector<1x32xf32> to vector<32x32xf32>
    %24 = arith.mulf %22, %23 : vector<32x32xf32>
    %25 = vector.broadcast %2 : vector<1x32xf32> to vector<32x32xf32>
    %26 = arith.addf %24, %25 : vector<32x32xf32>
    %c0_9 = arith.constant 0 : index
    %c0_10 = arith.constant 0 : index
    %27 = vector.load %arg4[%c0_9, %c0_10] : memref<32x64xf32, #tpu.memory_space<vmem>>, vector<32x64xf32>
    %cst_11 = arith.constant dense<0.000000e+00> : vector<32x64xf32>
    %28 = tpu.matmul %26, %27, %cst_11 {dimension_numbers = #tpu.dot_dimension_numbers<[1], [0], [0], [1], [0, 0, 1, 1], [], []>} : vector<32x32xf32>, vector<32x64xf32>, vector<32x64xf32> -> vector<32x64xf32>
    %c0_12 = arith.constant 0 : index
    %c0_13 = arith.constant 0 : index
    %29 = vector.load %arg5[%c0_12, %c0_13] : memref<1x64xf32, #tpu.memory_space<vmem>>, vector<1x64xf32>
    %30 = vector.broadcast %29 : vector<1x64xf32> to vector<32x64xf32>
    %31 = arith.addf %28, %30 : vector<32x64xf32>
    %cst_14 = arith.constant 0.000000e+00 : f32
    %32 = vector.broadcast %cst_14 : f32 to vector<32x64xf32>
    %33 = arith.maximumf %31, %32 : vector<32x64xf32>
    %c0_15 = arith.constant 0 : index
    %c0_16 = arith.constant 0 : index
    %34 = vector.load %arg6[%c0_15, %c0_16] : memref<64x32xf32, #tpu.memory_space<vmem>>, vector<64x32xf32>
    %cst_17 = arith.constant dense<0.000000e+00> : vector<32x32xf32>
    %35 = tpu.matmul %33, %34, %cst_17 {dimension_numbers = #tpu.dot_dimension_numbers<[1], [0], [0], [1], [0, 0, 1, 1], [], []>} : vector<32x64xf32>, vector<64x32xf32>, vector<32x32xf32> -> vector<32x32xf32>
    %c0_18 = arith.constant 0 : index
    %c0_19 = arith.constant 0 : index
    %36 = vector.load %arg7[%c0_18, %c0_19] : memref<1x32xf32, #tpu.memory_space<vmem>>, vector<1x32xf32>
    %37 = vector.broadcast %36 : vector<1x32xf32> to vector<32x32xf32>
    %38 = arith.addf %35, %37 : vector<32x32xf32>
    %39 = arith.addf %26, %38 : vector<32x32xf32>
    %c0_20 = arith.constant 0 : index
    %c0_21 = arith.constant 0 : index
    %40 = vector.load %arg8[%c0_20, %c0_21] : memref<32x32xf32, #tpu.memory_space<vmem>>, vector<32x32xf32>
    tpu.vector_store %arg8[%c0_20, %c0_21], %39 {strides = array<i32>} : memref<32x32xf32, #tpu.memory_space<vmem>>, vector<32x32xf32>,
    return
  }
  func.func @transform_0(%arg0: i32) -> (i32, i32) {
    %c0_i32 = arith.constant 0 : i32
    %c0_i32_0 = arith.constant 0 : i32
    return %arg0, %c0_i32 : i32, i32
  }
  func.func @transform_1(%arg0: i32) -> (i32, i32) {
    %c0_i32 = arith.constant 0 : i32
    %c0_i32_0 = arith.constant 0 : i32
    %c0_i32_1 = arith.constant 0 : i32
    return %c0_i32, %c0_i32_0 : i32, i32
  }
  func.func @transform_2(%arg0: i32) -> (i32, i32) {
    %c0_i32 = arith.constant 0 : i32
    %c0_i32_0 = arith.constant 0 : i32
    %c0_i32_1 = arith.constant 0 : i32
    return %c0_i32, %c0_i32_0 : i32, i32
  }
  func.func @transform_3(%arg0: i32) -> (i32, i32) {
    %c0_i32 = arith.constant 0 : i32
    %c0_i32_0 = arith.constant 0 : i32
    %c0_i32_1 = arith.constant 0 : i32
    return %c0_i32, %c0_i32_0 : i32, i32
  }
  func.func @transform_4(%arg0: i32) -> (i32, i32) {
    %c0_i32 = arith.constant 0 : i32
    %c0_i32_0 = arith.constant 0 : i32
    %c0_i32_1 = arith.constant 0 : i32
    return %c0_i32, %c0_i32_0 : i32, i32
  }
  func.func @transform_5(%arg0: i32) -> (i32, i32) {
    %c0_i32 = arith.constant 0 : i32
    %c0_i32_0 = arith.constant 0 : i32
    %c0_i32_1 = arith.constant 0 : i32
    return %c0_i32, %c0_i32_0 : i32, i32
  }
  func.func @transform_6(%arg0: i32) -> (i32, i32) {
    %c0_i32 = arith.constant 0 : i32
    %c0_i32_0 = arith.constant 0 : i32
    %c0_i32_1 = arith.constant 0 : i32
    return %c0_i32, %c0_i32_0 : i32, i32
  }
  func.func @transform_7(%arg0: i32) -> (i32, i32) {
    %c0_i32 = arith.constant 0 : i32
    %c0_i32_0 = arith.constant 0 : i32
    return %arg0, %c0_i32 : i32, i32
  }
}

module attributes {stable_mosaic.version = 11 : i64} {
  func.func @_att_block_kernel(%arg0: i32, %arg1: memref<1x8x128xf32, #tpu.memory_space<vmem>>, %arg2: memref<1x32xf32, #tpu.memory_space<vmem>>, %arg3: memref<1x32xf32, #tpu.memory_space<vmem>>, %arg4: memref<32x96xf32, #tpu.memory_space<vmem>>, %arg5: memref<1x96xf32, #tpu.memory_space<vmem>>, %arg6: memref<32x32xf32, #tpu.memory_space<vmem>>, %arg7: memref<1x32xf32, #tpu.memory_space<vmem>>, %arg8: memref<1x8x128xf32, #tpu.memory_space<vmem>>) attributes {dimension_semantics = [#tpu.dimension_semantics<parallel>], iteration_bounds = array<i64: 2>, scalar_prefetch = 0 : i64, scratch_operands = 0 : i64, tpu.core_type = #tpu.core_type<tc>, window_params = [{transform_indices = @transform_0, window_bounds = array<i64: 1, 8, 128>}, {pipeline_mode = #tpu.pipeline_mode<synchronous>, transform_indices = @transform_1, window_bounds = array<i64: 1, 32>}, {pipeline_mode = #tpu.pipeline_mode<synchronous>, transform_indices = @transform_2, window_bounds = array<i64: 1, 32>}, {pipeline_mode = #tpu.pipeline_mode<synchronous>, transform_indices = @transform_3, window_bounds = array<i64: 32, 96>}, {pipeline_mode = #tpu.pipeline_mode<synchronous>, transform_indices = @transform_4, window_bounds = array<i64: 1, 96>}, {pipeline_mode = #tpu.pipeline_mode<synchronous>, transform_indices = @transform_5, window_bounds = array<i64: 32, 32>}, {pipeline_mode = #tpu.pipeline_mode<synchronous>, transform_indices = @transform_6, window_bounds = array<i64: 1, 32>}, {transform_indices = @transform_7, window_bounds = array<i64: 1, 8, 128>}]} {
    %c0 = arith.constant 0 : index
    %c0_0 = arith.constant 0 : index
    %0 = vector.load %arg2[%c0, %c0_0] : memref<1x32xf32, #tpu.memory_space<vmem>>, vector<1x32xf32>
    %c0_1 = arith.constant 0 : index
    %c0_2 = arith.constant 0 : index
    %1 = vector.load %arg3[%c0_1, %c0_2] : memref<1x32xf32, #tpu.memory_space<vmem>>, vector<1x32xf32>
    %c0_3 = arith.constant 0 : index
    %c0_4 = arith.constant 0 : index
    %2 = vector.load %arg4[%c0_3, %c0_4] : memref<32x96xf32, #tpu.memory_space<vmem>>, vector<32x96xf32>
    %c0_5 = arith.constant 0 : index
    %c0_6 = arith.constant 0 : index
    %3 = vector.load %arg5[%c0_5, %c0_6] : memref<1x96xf32, #tpu.memory_space<vmem>>, vector<1x96xf32>
    %c0_7 = arith.constant 0 : index
    %c0_8 = arith.constant 0 : index
    %4 = vector.load %arg6[%c0_7, %c0_8] : memref<32x32xf32, #tpu.memory_space<vmem>>, vector<32x32xf32>
    %c0_9 = arith.constant 0 : index
    %c0_10 = arith.constant 0 : index
    %5 = vector.load %arg7[%c0_9, %c0_10] : memref<1x32xf32, #tpu.memory_space<vmem>>, vector<1x32xf32>
    %c0_11 = arith.constant 0 : index
    %c0_12 = arith.constant 0 : index
    %c0_13 = arith.constant 0 : index
    %6 = vector.load %arg1[%c0_11, %c0_12, %c0_13] : memref<1x8x128xf32, #tpu.memory_space<vmem>>, vector<1x8x32xf32>
    %7 = vector.shape_cast %6 : vector<1x8x32xf32> to vector<8x32xf32>
    %cst = arith.constant dense<0.000000e+00> : vector<8xf32>
    %8 = vector.multi_reduction <add>, %7, %cst [1] : vector<8x32xf32> to vector<8xf32>
    %9 = vector.shape_cast %8 : vector<8xf32> to vector<8x1xf32>
    %cst_14 = arith.constant 3.200000e+01 : f32
    %10 = vector.broadcast %cst_14 : f32 to vector<8x1xf32>
    %11 = arith.divf %9, %10 : vector<8x1xf32>
    %12 = vector.broadcast %11 : vector<8x1xf32> to vector<8x32xf32>
    %13 = arith.subf %7, %12 : vector<8x32xf32>
    %14 = vector.broadcast %11 : vector<8x1xf32> to vector<8x32xf32>
    %15 = arith.subf %7, %14 : vector<8x32xf32>
    %16 = arith.mulf %13, %15 : vector<8x32xf32>
    %cst_15 = arith.constant dense<0.000000e+00> : vector<8xf32>
    %17 = vector.multi_reduction <add>, %16, %cst_15 [1] : vector<8x32xf32> to vector<8xf32>
    %18 = vector.shape_cast %17 : vector<8xf32> to vector<8x1xf32>
    %cst_16 = arith.constant 3.200000e+01 : f32
    %19 = vector.broadcast %cst_16 : f32 to vector<8x1xf32>
    %20 = arith.divf %18, %19 : vector<8x1xf32>
    %21 = vector.broadcast %11 : vector<8x1xf32> to vector<8x32xf32>
    %22 = arith.subf %7, %21 : vector<8x32xf32>
    %cst_17 = arith.constant 9.99999974E-6 : f32
    %23 = vector.broadcast %cst_17 : f32 to vector<8x1xf32>
    %24 = arith.addf %20, %23 : vector<8x1xf32>
    %25 = math.rsqrt %24 : vector<8x1xf32>
    %26 = vector.broadcast %25 : vector<8x1xf32> to vector<8x32xf32>
    %27 = arith.mulf %22, %26 : vector<8x32xf32>
    %28 = vector.broadcast %0 : vector<1x32xf32> to vector<8x32xf32>
    %29 = arith.mulf %27, %28 : vector<8x32xf32>
    %30 = vector.broadcast %1 : vector<1x32xf32> to vector<8x32xf32>
    %31 = arith.addf %29, %30 : vector<8x32xf32>
    %cst_18 = arith.constant dense<0.000000e+00> : vector<8x96xf32>
    %32 = tpu.matmul %31, %2, %cst_18 {dimension_numbers = #tpu.dot_dimension_numbers<[1], [0], [0], [1], [0, 0, 1, 1], [], []>} : vector<8x32xf32>, vector<32x96xf32>, vector<8x96xf32> -> vector<8x96xf32>
    %33 = vector.broadcast %3 : vector<1x96xf32> to vector<8x96xf32>
    %34 = arith.addf %32, %33 : vector<8x96xf32>
    %35 = vector.extract_strided_slice %34 {offsets = [0, 0], sizes = [8, 32], strides = [1, 1]} : vector<8x96xf32> to vector<8x32xf32>
    %36 = vector.extract_strided_slice %34 {offsets = [0, 32], sizes = [8, 32], strides = [1, 1]} : vector<8x96xf32> to vector<8x32xf32>
    %37 = vector.extract_strided_slice %34 {offsets = [0, 64], sizes = [8, 32], strides = [1, 1]} : vector<8x96xf32> to vector<8x32xf32>
    %c0_19 = arith.constant 0 : index
    %c0_20 = arith.constant 0 : index
    %c32 = arith.constant 32 : index
    %38 = vector.load %arg1[%c0_19, %c0_20, %c32] : memref<1x8x128xf32, #tpu.memory_space<vmem>>, vector<1x8x32xf32>
    %39 = vector.shape_cast %38 : vector<1x8x32xf32> to vector<8x32xf32>
    %cst_21 = arith.constant dense<0.000000e+00> : vector<8xf32>
    %40 = vector.multi_reduction <add>, %39, %cst_21 [1] : vector<8x32xf32> to vector<8xf32>
    %41 = vector.shape_cast %40 : vector<8xf32> to vector<8x1xf32>
    %cst_22 = arith.constant 3.200000e+01 : f32
    %42 = vector.broadcast %cst_22 : f32 to vector<8x1xf32>
    %43 = arith.divf %41, %42 : vector<8x1xf32>
    %44 = vector.broadcast %43 : vector<8x1xf32> to vector<8x32xf32>
    %45 = arith.subf %39, %44 : vector<8x32xf32>
    %46 = vector.broadcast %43 : vector<8x1xf32> to vector<8x32xf32>
    %47 = arith.subf %39, %46 : vector<8x32xf32>
    %48 = arith.mulf %45, %47 : vector<8x32xf32>
    %cst_23 = arith.constant dense<0.000000e+00> : vector<8xf32>
    %49 = vector.multi_reduction <add>, %48, %cst_23 [1] : vector<8x32xf32> to vector<8xf32>
    %50 = vector.shape_cast %49 : vector<8xf32> to vector<8x1xf32>
    %cst_24 = arith.constant 3.200000e+01 : f32
    %51 = vector.broadcast %cst_24 : f32 to vector<8x1xf32>
    %52 = arith.divf %50, %51 : vector<8x1xf32>
    %53 = vector.broadcast %43 : vector<8x1xf32> to vector<8x32xf32>
    %54 = arith.subf %39, %53 : vector<8x32xf32>
    %cst_25 = arith.constant 9.99999974E-6 : f32
    %55 = vector.broadcast %cst_25 : f32 to vector<8x1xf32>
    %56 = arith.addf %52, %55 : vector<8x1xf32>
    %57 = math.rsqrt %56 : vector<8x1xf32>
    %58 = vector.broadcast %57 : vector<8x1xf32> to vector<8x32xf32>
    %59 = arith.mulf %54, %58 : vector<8x32xf32>
    %60 = vector.broadcast %0 : vector<1x32xf32> to vector<8x32xf32>
    %61 = arith.mulf %59, %60 : vector<8x32xf32>
    %62 = vector.broadcast %1 : vector<1x32xf32> to vector<8x32xf32>
    %63 = arith.addf %61, %62 : vector<8x32xf32>
    %cst_26 = arith.constant dense<0.000000e+00> : vector<8x96xf32>
    %64 = tpu.matmul %63, %2, %cst_26 {dimension_numbers = #tpu.dot_dimension_numbers<[1], [0], [0], [1], [0, 0, 1, 1], [], []>} : vector<8x32xf32>, vector<32x96xf32>, vector<8x96xf32> -> vector<8x96xf32>
    %65 = vector.broadcast %3 : vector<1x96xf32> to vector<8x96xf32>
    %66 = arith.addf %64, %65 : vector<8x96xf32>
    %67 = vector.extract_strided_slice %66 {offsets = [0, 0], sizes = [8, 32], strides = [1, 1]} : vector<8x96xf32> to vector<8x32xf32>
    %68 = vector.extract_strided_slice %66 {offsets = [0, 32], sizes = [8, 32], strides = [1, 1]} : vector<8x96xf32> to vector<8x32xf32>
    %69 = vector.extract_strided_slice %66 {offsets = [0, 64], sizes = [8, 32], strides = [1, 1]} : vector<8x96xf32> to vector<8x32xf32>
    %c0_27 = arith.constant 0 : index
    %c0_28 = arith.constant 0 : index
    %c64 = arith.constant 64 : index
    %70 = vector.load %arg1[%c0_27, %c0_28, %c64] : memref<1x8x128xf32, #tpu.memory_space<vmem>>, vector<1x8x32xf32>
    %71 = vector.shape_cast %70 : vector<1x8x32xf32> to vector<8x32xf32>
    %cst_29 = arith.constant dense<0.000000e+00> : vector<8xf32>
    %72 = vector.multi_reduction <add>, %71, %cst_29 [1] : vector<8x32xf32> to vector<8xf32>
    %73 = vector.shape_cast %72 : vector<8xf32> to vector<8x1xf32>
    %cst_30 = arith.constant 3.200000e+01 : f32
    %74 = vector.broadcast %cst_30 : f32 to vector<8x1xf32>
    %75 = arith.divf %73, %74 : vector<8x1xf32>
    %76 = vector.broadcast %75 : vector<8x1xf32> to vector<8x32xf32>
    %77 = arith.subf %71, %76 : vector<8x32xf32>
    %78 = vector.broadcast %75 : vector<8x1xf32> to vector<8x32xf32>
    %79 = arith.subf %71, %78 : vector<8x32xf32>
    %80 = arith.mulf %77, %79 : vector<8x32xf32>
    %cst_31 = arith.constant dense<0.000000e+00> : vector<8xf32>
    %81 = vector.multi_reduction <add>, %80, %cst_31 [1] : vector<8x32xf32> to vector<8xf32>
    %82 = vector.shape_cast %81 : vector<8xf32> to vector<8x1xf32>
    %cst_32 = arith.constant 3.200000e+01 : f32
    %83 = vector.broadcast %cst_32 : f32 to vector<8x1xf32>
    %84 = arith.divf %82, %83 : vector<8x1xf32>
    %85 = vector.broadcast %75 : vector<8x1xf32> to vector<8x32xf32>
    %86 = arith.subf %71, %85 : vector<8x32xf32>
    %cst_33 = arith.constant 9.99999974E-6 : f32
    %87 = vector.broadcast %cst_33 : f32 to vector<8x1xf32>
    %88 = arith.addf %84, %87 : vector<8x1xf32>
    %89 = math.rsqrt %88 : vector<8x1xf32>
    %90 = vector.broadcast %89 : vector<8x1xf32> to vector<8x32xf32>
    %91 = arith.mulf %86, %90 : vector<8x32xf32>
    %92 = vector.broadcast %0 : vector<1x32xf32> to vector<8x32xf32>
    %93 = arith.mulf %91, %92 : vector<8x32xf32>
    %94 = vector.broadcast %1 : vector<1x32xf32> to vector<8x32xf32>
    %95 = arith.addf %93, %94 : vector<8x32xf32>
    %cst_34 = arith.constant dense<0.000000e+00> : vector<8x96xf32>
    %96 = tpu.matmul %95, %2, %cst_34 {dimension_numbers = #tpu.dot_dimension_numbers<[1], [0], [0], [1], [0, 0, 1, 1], [], []>} : vector<8x32xf32>, vector<32x96xf32>, vector<8x96xf32> -> vector<8x96xf32>
    %97 = vector.broadcast %3 : vector<1x96xf32> to vector<8x96xf32>
    %98 = arith.addf %96, %97 : vector<8x96xf32>
    %99 = vector.extract_strided_slice %98 {offsets = [0, 0], sizes = [8, 32], strides = [1, 1]} : vector<8x96xf32> to vector<8x32xf32>
    %100 = vector.extract_strided_slice %98 {offsets = [0, 32], sizes = [8, 32], strides = [1, 1]} : vector<8x96xf32> to vector<8x32xf32>
    %101 = vector.extract_strided_slice %98 {offsets = [0, 64], sizes = [8, 32], strides = [1, 1]} : vector<8x96xf32> to vector<8x32xf32>
    %c0_35 = arith.constant 0 : index
    %c0_36 = arith.constant 0 : index
    %c96 = arith.constant 96 : index
    %102 = vector.load %arg1[%c0_35, %c0_36, %c96] : memref<1x8x128xf32, #tpu.memory_space<vmem>>, vector<1x8x32xf32>
    %103 = vector.shape_cast %102 : vector<1x8x32xf32> to vector<8x32xf32>
    %cst_37 = arith.constant dense<0.000000e+00> : vector<8xf32>
    %104 = vector.multi_reduction <add>, %103, %cst_37 [1] : vector<8x32xf32> to vector<8xf32>
    %105 = vector.shape_cast %104 : vector<8xf32> to vector<8x1xf32>
    %cst_38 = arith.constant 3.200000e+01 : f32
    %106 = vector.broadcast %cst_38 : f32 to vector<8x1xf32>
    %107 = arith.divf %105, %106 : vector<8x1xf32>
    %108 = vector.broadcast %107 : vector<8x1xf32> to vector<8x32xf32>
    %109 = arith.subf %103, %108 : vector<8x32xf32>
    %110 = vector.broadcast %107 : vector<8x1xf32> to vector<8x32xf32>
    %111 = arith.subf %103, %110 : vector<8x32xf32>
    %112 = arith.mulf %109, %111 : vector<8x32xf32>
    %cst_39 = arith.constant dense<0.000000e+00> : vector<8xf32>
    %113 = vector.multi_reduction <add>, %112, %cst_39 [1] : vector<8x32xf32> to vector<8xf32>
    %114 = vector.shape_cast %113 : vector<8xf32> to vector<8x1xf32>
    %cst_40 = arith.constant 3.200000e+01 : f32
    %115 = vector.broadcast %cst_40 : f32 to vector<8x1xf32>
    %116 = arith.divf %114, %115 : vector<8x1xf32>
    %117 = vector.broadcast %107 : vector<8x1xf32> to vector<8x32xf32>
    %118 = arith.subf %103, %117 : vector<8x32xf32>
    %cst_41 = arith.constant 9.99999974E-6 : f32
    %119 = vector.broadcast %cst_41 : f32 to vector<8x1xf32>
    %120 = arith.addf %116, %119 : vector<8x1xf32>
    %121 = math.rsqrt %120 : vector<8x1xf32>
    %122 = vector.broadcast %121 : vector<8x1xf32> to vector<8x32xf32>
    %123 = arith.mulf %118, %122 : vector<8x32xf32>
    %124 = vector.broadcast %0 : vector<1x32xf32> to vector<8x32xf32>
    %125 = arith.mulf %123, %124 : vector<8x32xf32>
    %126 = vector.broadcast %1 : vector<1x32xf32> to vector<8x32xf32>
    %127 = arith.addf %125, %126 : vector<8x32xf32>
    %cst_42 = arith.constant dense<0.000000e+00> : vector<8x96xf32>
    %128 = tpu.matmul %127, %2, %cst_42 {dimension_numbers = #tpu.dot_dimension_numbers<[1], [0], [0], [1], [0, 0, 1, 1], [], []>} : vector<8x32xf32>, vector<32x96xf32>, vector<8x96xf32> -> vector<8x96xf32>
    %129 = vector.broadcast %3 : vector<1x96xf32> to vector<8x96xf32>
    %130 = arith.addf %128, %129 : vector<8x96xf32>
    %131 = vector.extract_strided_slice %130 {offsets = [0, 0], sizes = [8, 32], strides = [1, 1]} : vector<8x96xf32> to vector<8x32xf32>
    %132 = vector.extract_strided_slice %130 {offsets = [0, 32], sizes = [8, 32], strides = [1, 1]} : vector<8x96xf32> to vector<8x32xf32>
    %133 = vector.extract_strided_slice %130 {offsets = [0, 64], sizes = [8, 32], strides = [1, 1]} : vector<8x96xf32> to vector<8x32xf32>
    %134 = vector.extract_strided_slice %35 {offsets = [0, 0], sizes = [8, 8], strides = [1, 1]} : vector<8x32xf32> to vector<8x8xf32>
    %135 = vector.extract_strided_slice %36 {offsets = [0, 0], sizes = [8, 8], strides = [1, 1]} : vector<8x32xf32> to vector<8x8xf32>
    %cst_43 = arith.constant dense<0.000000e+00> : vector<8x8xf32>
    %136 = tpu.matmul %134, %135, %cst_43 {dimension_numbers = #tpu.dot_dimension_numbers<[1], [1], [0], [0], [0, 0, 1, 0], [], []>} : vector<8x8xf32>, vector<8x8xf32>, vector<8x8xf32> -> vector<8x8xf32>
    %137 = vector.extract_strided_slice %35 {offsets = [0, 8], sizes = [8, 8], strides = [1, 1]} : vector<8x32xf32> to vector<8x8xf32>
    %138 = vector.extract_strided_slice %36 {offsets = [0, 8], sizes = [8, 8], strides = [1, 1]} : vector<8x32xf32> to vector<8x8xf32>
    %cst_44 = arith.constant dense<0.000000e+00> : vector<8x8xf32>
    %139 = tpu.matmul %137, %138, %cst_44 {dimension_numbers = #tpu.dot_dimension_numbers<[1], [1], [0], [0], [0, 0, 1, 0], [], []>} : vector<8x8xf32>, vector<8x8xf32>, vector<8x8xf32> -> vector<8x8xf32>
    %140 = arith.addf %136, %139 : vector<8x8xf32>
    %141 = vector.extract_strided_slice %35 {offsets = [0, 16], sizes = [8, 8], strides = [1, 1]} : vector<8x32xf32> to vector<8x8xf32>
    %142 = vector.extract_strided_slice %36 {offsets = [0, 16], sizes = [8, 8], strides = [1, 1]} : vector<8x32xf32> to vector<8x8xf32>
    %cst_45 = arith.constant dense<0.000000e+00> : vector<8x8xf32>
    %143 = tpu.matmul %141, %142, %cst_45 {dimension_numbers = #tpu.dot_dimension_numbers<[1], [1], [0], [0], [0, 0, 1, 0], [], []>} : vector<8x8xf32>, vector<8x8xf32>, vector<8x8xf32> -> vector<8x8xf32>
    %144 = arith.addf %140, %143 : vector<8x8xf32>
    %145 = vector.extract_strided_slice %35 {offsets = [0, 24], sizes = [8, 8], strides = [1, 1]} : vector<8x32xf32> to vector<8x8xf32>
    %146 = vector.extract_strided_slice %36 {offsets = [0, 24], sizes = [8, 8], strides = [1, 1]} : vector<8x32xf32> to vector<8x8xf32>
    %cst_46 = arith.constant dense<0.000000e+00> : vector<8x8xf32>
    %147 = tpu.matmul %145, %146, %cst_46 {dimension_numbers = #tpu.dot_dimension_numbers<[1], [1], [0], [0], [0, 0, 1, 0], [], []>} : vector<8x8xf32>, vector<8x8xf32>, vector<8x8xf32> -> vector<8x8xf32>
    %148 = arith.addf %144, %147 : vector<8x8xf32>
    %cst_47 = arith.constant 0.176776692 : f32
    %149 = vector.broadcast %cst_47 : f32 to vector<8x8xf32>
    %150 = arith.mulf %148, %149 : vector<8x8xf32>
    %cst_48 = arith.constant dense<0xFF800000> : vector<8xf32>
    %151 = vector.multi_reduction <maximumf>, %150, %cst_48 [1] : vector<8x8xf32> to vector<8xf32>
    %152 = vector.shape_cast %151 : vector<8xf32> to vector<8x1xf32>
    %153 = vector.broadcast %152 : vector<8x1xf32> to vector<8x8xf32>
    %154 = arith.subf %150, %153 : vector<8x8xf32>
    %155 = math.exp %154 : vector<8x8xf32>
    %cst_49 = arith.constant dense<0.000000e+00> : vector<8xf32>
    %156 = vector.multi_reduction <add>, %155, %cst_49 [1] : vector<8x8xf32> to vector<8xf32>
    %157 = vector.shape_cast %156 : vector<8xf32> to vector<8x1xf32>
    %158 = tpu.reciprocal %157 {approx = true} : vector<8x1xf32> -> vector<8x1xf32>
    %159 = vector.broadcast %158 : vector<8x1xf32> to vector<8x8xf32>
    %160 = arith.mulf %155, %159 : vector<8x8xf32>
    %161 = vector.extract_strided_slice %67 {offsets = [0, 0], sizes = [8, 8], strides = [1, 1]} : vector<8x32xf32> to vector<8x8xf32>
    %162 = vector.extract_strided_slice %68 {offsets = [0, 0], sizes = [8, 8], strides = [1, 1]} : vector<8x32xf32> to vector<8x8xf32>
    %cst_50 = arith.constant dense<0.000000e+00> : vector<8x8xf32>
    %163 = tpu.matmul %161, %162, %cst_50 {dimension_numbers = #tpu.dot_dimension_numbers<[1], [1], [0], [0], [0, 0, 1, 0], [], []>} : vector<8x8xf32>, vector<8x8xf32>, vector<8x8xf32> -> vector<8x8xf32>
    %164 = vector.extract_strided_slice %67 {offsets = [0, 8], sizes = [8, 8], strides = [1, 1]} : vector<8x32xf32> to vector<8x8xf32>
    %165 = vector.extract_strided_slice %68 {offsets = [0, 8], sizes = [8, 8], strides = [1, 1]} : vector<8x32xf32> to vector<8x8xf32>
    %cst_51 = arith.constant dense<0.000000e+00> : vector<8x8xf32>
    %166 = tpu.matmul %164, %165, %cst_51 {dimension_numbers = #tpu.dot_dimension_numbers<[1], [1], [0], [0], [0, 0, 1, 0], [], []>} : vector<8x8xf32>, vector<8x8xf32>, vector<8x8xf32> -> vector<8x8xf32>
    %167 = arith.addf %163, %166 : vector<8x8xf32>
    %168 = vector.extract_strided_slice %67 {offsets = [0, 16], sizes = [8, 8], strides = [1, 1]} : vector<8x32xf32> to vector<8x8xf32>
    %169 = vector.extract_strided_slice %68 {offsets = [0, 16], sizes = [8, 8], strides = [1, 1]} : vector<8x32xf32> to vector<8x8xf32>
    %cst_52 = arith.constant dense<0.000000e+00> : vector<8x8xf32>
    %170 = tpu.matmul %168, %169, %cst_52 {dimension_numbers = #tpu.dot_dimension_numbers<[1], [1], [0], [0], [0, 0, 1, 0], [], []>} : vector<8x8xf32>, vector<8x8xf32>, vector<8x8xf32> -> vector<8x8xf32>
    %171 = arith.addf %167, %170 : vector<8x8xf32>
    %172 = vector.extract_strided_slice %67 {offsets = [0, 24], sizes = [8, 8], strides = [1, 1]} : vector<8x32xf32> to vector<8x8xf32>
    %173 = vector.extract_strided_slice %68 {offsets = [0, 24], sizes = [8, 8], strides = [1, 1]} : vector<8x32xf32> to vector<8x8xf32>
    %cst_53 = arith.constant dense<0.000000e+00> : vector<8x8xf32>
    %174 = tpu.matmul %172, %173, %cst_53 {dimension_numbers = #tpu.dot_dimension_numbers<[1], [1], [0], [0], [0, 0, 1, 0], [], []>} : vector<8x8xf32>, vector<8x8xf32>, vector<8x8xf32> -> vector<8x8xf32>
    %175 = arith.addf %171, %174 : vector<8x8xf32>
    %cst_54 = arith.constant 0.176776692 : f32
    %176 = vector.broadcast %cst_54 : f32 to vector<8x8xf32>
    %177 = arith.mulf %175, %176 : vector<8x8xf32>
    %cst_55 = arith.constant dense<0xFF800000> : vector<8xf32>
    %178 = vector.multi_reduction <maximumf>, %177, %cst_55 [1] : vector<8x8xf32> to vector<8xf32>
    %179 = vector.shape_cast %178 : vector<8xf32> to vector<8x1xf32>
    %180 = vector.broadcast %179 : vector<8x1xf32> to vector<8x8xf32>
    %181 = arith.subf %177, %180 : vector<8x8xf32>
    %182 = math.exp %181 : vector<8x8xf32>
    %cst_56 = arith.constant dense<0.000000e+00> : vector<8xf32>
    %183 = vector.multi_reduction <add>, %182, %cst_56 [1] : vector<8x8xf32> to vector<8xf32>
    %184 = vector.shape_cast %183 : vector<8xf32> to vector<8x1xf32>
    %185 = tpu.reciprocal %184 {approx = true} : vector<8x1xf32> -> vector<8x1xf32>
    %186 = vector.broadcast %185 : vector<8x1xf32> to vector<8x8xf32>
    %187 = arith.mulf %182, %186 : vector<8x8xf32>
    %188 = vector.extract_strided_slice %99 {offsets = [0, 0], sizes = [8, 8], strides = [1, 1]} : vector<8x32xf32> to vector<8x8xf32>
    %189 = vector.extract_strided_slice %100 {offsets = [0, 0], sizes = [8, 8], strides = [1, 1]} : vector<8x32xf32> to vector<8x8xf32>
    %cst_57 = arith.constant dense<0.000000e+00> : vector<8x8xf32>
    %190 = tpu.matmul %188, %189, %cst_57 {dimension_numbers = #tpu.dot_dimension_numbers<[1], [1], [0], [0], [0, 0, 1, 0], [], []>} : vector<8x8xf32>, vector<8x8xf32>, vector<8x8xf32> -> vector<8x8xf32>
    %191 = vector.extract_strided_slice %99 {offsets = [0, 8], sizes = [8, 8], strides = [1, 1]} : vector<8x32xf32> to vector<8x8xf32>
    %192 = vector.extract_strided_slice %100 {offsets = [0, 8], sizes = [8, 8], strides = [1, 1]} : vector<8x32xf32> to vector<8x8xf32>
    %cst_58 = arith.constant dense<0.000000e+00> : vector<8x8xf32>
    %193 = tpu.matmul %191, %192, %cst_58 {dimension_numbers = #tpu.dot_dimension_numbers<[1], [1], [0], [0], [0, 0, 1, 0], [], []>} : vector<8x8xf32>, vector<8x8xf32>, vector<8x8xf32> -> vector<8x8xf32>
    %194 = arith.addf %190, %193 : vector<8x8xf32>
    %195 = vector.extract_strided_slice %99 {offsets = [0, 16], sizes = [8, 8], strides = [1, 1]} : vector<8x32xf32> to vector<8x8xf32>
    %196 = vector.extract_strided_slice %100 {offsets = [0, 16], sizes = [8, 8], strides = [1, 1]} : vector<8x32xf32> to vector<8x8xf32>
    %cst_59 = arith.constant dense<0.000000e+00> : vector<8x8xf32>
    %197 = tpu.matmul %195, %196, %cst_59 {dimension_numbers = #tpu.dot_dimension_numbers<[1], [1], [0], [0], [0, 0, 1, 0], [], []>} : vector<8x8xf32>, vector<8x8xf32>, vector<8x8xf32> -> vector<8x8xf32>
    %198 = arith.addf %194, %197 : vector<8x8xf32>
    %199 = vector.extract_strided_slice %99 {offsets = [0, 24], sizes = [8, 8], strides = [1, 1]} : vector<8x32xf32> to vector<8x8xf32>
    %200 = vector.extract_strided_slice %100 {offsets = [0, 24], sizes = [8, 8], strides = [1, 1]} : vector<8x32xf32> to vector<8x8xf32>
    %cst_60 = arith.constant dense<0.000000e+00> : vector<8x8xf32>
    %201 = tpu.matmul %199, %200, %cst_60 {dimension_numbers = #tpu.dot_dimension_numbers<[1], [1], [0], [0], [0, 0, 1, 0], [], []>} : vector<8x8xf32>, vector<8x8xf32>, vector<8x8xf32> -> vector<8x8xf32>
    %202 = arith.addf %198, %201 : vector<8x8xf32>
    %cst_61 = arith.constant 0.176776692 : f32
    %203 = vector.broadcast %cst_61 : f32 to vector<8x8xf32>
    %204 = arith.mulf %202, %203 : vector<8x8xf32>
    %cst_62 = arith.constant dense<0xFF800000> : vector<8xf32>
    %205 = vector.multi_reduction <maximumf>, %204, %cst_62 [1] : vector<8x8xf32> to vector<8xf32>
    %206 = vector.shape_cast %205 : vector<8xf32> to vector<8x1xf32>
    %207 = vector.broadcast %206 : vector<8x1xf32> to vector<8x8xf32>
    %208 = arith.subf %204, %207 : vector<8x8xf32>
    %209 = math.exp %208 : vector<8x8xf32>
    %cst_63 = arith.constant dense<0.000000e+00> : vector<8xf32>
    %210 = vector.multi_reduction <add>, %209, %cst_63 [1] : vector<8x8xf32> to vector<8xf32>
    %211 = vector.shape_cast %210 : vector<8xf32> to vector<8x1xf32>
    %212 = tpu.reciprocal %211 {approx = true} : vector<8x1xf32> -> vector<8x1xf32>
    %213 = vector.broadcast %212 : vector<8x1xf32> to vector<8x8xf32>
    %214 = arith.mulf %209, %213 : vector<8x8xf32>
    %215 = vector.extract_strided_slice %131 {offsets = [0, 0], sizes = [8, 8], strides = [1, 1]} : vector<8x32xf32> to vector<8x8xf32>
    %216 = vector.extract_strided_slice %132 {offsets = [0, 0], sizes = [8, 8], strides = [1, 1]} : vector<8x32xf32> to vector<8x8xf32>
    %cst_64 = arith.constant dense<0.000000e+00> : vector<8x8xf32>
    %217 = tpu.matmul %215, %216, %cst_64 {dimension_numbers = #tpu.dot_dimension_numbers<[1], [1], [0], [0], [0, 0, 1, 0], [], []>} : vector<8x8xf32>, vector<8x8xf32>, vector<8x8xf32> -> vector<8x8xf32>
    %218 = vector.extract_strided_slice %131 {offsets = [0, 8], sizes = [8, 8], strides = [1, 1]} : vector<8x32xf32> to vector<8x8xf32>
    %219 = vector.extract_strided_slice %132 {offsets = [0, 8], sizes = [8, 8], strides = [1, 1]} : vector<8x32xf32> to vector<8x8xf32>
    %cst_65 = arith.constant dense<0.000000e+00> : vector<8x8xf32>
    %220 = tpu.matmul %218, %219, %cst_65 {dimension_numbers = #tpu.dot_dimension_numbers<[1], [1], [0], [0], [0, 0, 1, 0], [], []>} : vector<8x8xf32>, vector<8x8xf32>, vector<8x8xf32> -> vector<8x8xf32>
    %221 = arith.addf %217, %220 : vector<8x8xf32>
    %222 = vector.extract_strided_slice %131 {offsets = [0, 16], sizes = [8, 8], strides = [1, 1]} : vector<8x32xf32> to vector<8x8xf32>
    %223 = vector.extract_strided_slice %132 {offsets = [0, 16], sizes = [8, 8], strides = [1, 1]} : vector<8x32xf32> to vector<8x8xf32>
    %cst_66 = arith.constant dense<0.000000e+00> : vector<8x8xf32>
    %224 = tpu.matmul %222, %223, %cst_66 {dimension_numbers = #tpu.dot_dimension_numbers<[1], [1], [0], [0], [0, 0, 1, 0], [], []>} : vector<8x8xf32>, vector<8x8xf32>, vector<8x8xf32> -> vector<8x8xf32>
    %225 = arith.addf %221, %224 : vector<8x8xf32>
    %226 = vector.extract_strided_slice %131 {offsets = [0, 24], sizes = [8, 8], strides = [1, 1]} : vector<8x32xf32> to vector<8x8xf32>
    %227 = vector.extract_strided_slice %132 {offsets = [0, 24], sizes = [8, 8], strides = [1, 1]} : vector<8x32xf32> to vector<8x8xf32>
    %cst_67 = arith.constant dense<0.000000e+00> : vector<8x8xf32>
    %228 = tpu.matmul %226, %227, %cst_67 {dimension_numbers = #tpu.dot_dimension_numbers<[1], [1], [0], [0], [0, 0, 1, 0], [], []>} : vector<8x8xf32>, vector<8x8xf32>, vector<8x8xf32> -> vector<8x8xf32>
    %229 = arith.addf %225, %228 : vector<8x8xf32>
    %cst_68 = arith.constant 0.176776692 : f32
    %230 = vector.broadcast %cst_68 : f32 to vector<8x8xf32>
    %231 = arith.mulf %229, %230 : vector<8x8xf32>
    %cst_69 = arith.constant dense<0xFF800000> : vector<8xf32>
    %232 = vector.multi_reduction <maximumf>, %231, %cst_69 [1] : vector<8x8xf32> to vector<8xf32>
    %233 = vector.shape_cast %232 : vector<8xf32> to vector<8x1xf32>
    %234 = vector.broadcast %233 : vector<8x1xf32> to vector<8x8xf32>
    %235 = arith.subf %231, %234 : vector<8x8xf32>
    %236 = math.exp %235 : vector<8x8xf32>
    %cst_70 = arith.constant dense<0.000000e+00> : vector<8xf32>
    %237 = vector.multi_reduction <add>, %236, %cst_70 [1] : vector<8x8xf32> to vector<8xf32>
    %238 = vector.shape_cast %237 : vector<8xf32> to vector<8x1xf32>
    %239 = tpu.reciprocal %238 {approx = true} : vector<8x1xf32> -> vector<8x1xf32>
    %240 = vector.broadcast %239 : vector<8x1xf32> to vector<8x8xf32>
    %241 = arith.mulf %236, %240 : vector<8x8xf32>
    %242 = vector.broadcast %5 : vector<1x32xf32> to vector<8x32xf32>
    %243 = arith.addf %31, %242 : vector<8x32xf32>
    %244 = vector.extract_strided_slice %37 {offsets = [0, 0], sizes = [8, 8], strides = [1, 1]} : vector<8x32xf32> to vector<8x8xf32>
    %cst_71 = arith.constant dense<0.000000e+00> : vector<8x8xf32>
    %245 = tpu.matmul %160, %244, %cst_71 {dimension_numbers = #tpu.dot_dimension_numbers<[1], [0], [0], [1], [0, 0, 1, 1], [], []>} : vector<8x8xf32>, vector<8x8xf32>, vector<8x8xf32> -> vector<8x8xf32>
    %246 = vector.extract_strided_slice %4 {offsets = [0, 0], sizes = [8, 32], strides = [1, 1]} : vector<32x32xf32> to vector<8x32xf32>
    %cst_72 = arith.constant dense<0.000000e+00> : vector<8x32xf32>
    %247 = tpu.matmul %245, %246, %cst_72 {dimension_numbers = #tpu.dot_dimension_numbers<[1], [0], [0], [1], [0, 0, 1, 1], [], []>} : vector<8x8xf32>, vector<8x32xf32>, vector<8x32xf32> -> vector<8x32xf32>
    %248 = arith.addf %243, %247 : vector<8x32xf32>
    %249 = vector.extract_strided_slice %37 {offsets = [0, 8], sizes = [8, 8], strides = [1, 1]} : vector<8x32xf32> to vector<8x8xf32>
    %cst_73 = arith.constant dense<0.000000e+00> : vector<8x8xf32>
    %250 = tpu.matmul %187, %249, %cst_73 {dimension_numbers = #tpu.dot_dimension_numbers<[1], [0], [0], [1], [0, 0, 1, 1], [], []>} : vector<8x8xf32>, vector<8x8xf32>, vector<8x8xf32> -> vector<8x8xf32>
    %251 = vector.extract_strided_slice %4 {offsets = [8, 0], sizes = [8, 32], strides = [1, 1]} : vector<32x32xf32> to vector<8x32xf32>
    %cst_74 = arith.constant dense<0.000000e+00> : vector<8x32xf32>
    %252 = tpu.matmul %250, %251, %cst_74 {dimension_numbers = #tpu.dot_dimension_numbers<[1], [0], [0], [1], [0, 0, 1, 1], [], []>} : vector<8x8xf32>, vector<8x32xf32>, vector<8x32xf32> -> vector<8x32xf32>
    %253 = arith.addf %248, %252 : vector<8x32xf32>
    %254 = vector.extract_strided_slice %37 {offsets = [0, 16], sizes = [8, 8], strides = [1, 1]} : vector<8x32xf32> to vector<8x8xf32>
    %cst_75 = arith.constant dense<0.000000e+00> : vector<8x8xf32>
    %255 = tpu.matmul %214, %254, %cst_75 {dimension_numbers = #tpu.dot_dimension_numbers<[1], [0], [0], [1], [0, 0, 1, 1], [], []>} : vector<8x8xf32>, vector<8x8xf32>, vector<8x8xf32> -> vector<8x8xf32>
    %256 = vector.extract_strided_slice %4 {offsets = [16, 0], sizes = [8, 32], strides = [1, 1]} : vector<32x32xf32> to vector<8x32xf32>
    %cst_76 = arith.constant dense<0.000000e+00> : vector<8x32xf32>
    %257 = tpu.matmul %255, %256, %cst_76 {dimension_numbers = #tpu.dot_dimension_numbers<[1], [0], [0], [1], [0, 0, 1, 1], [], []>} : vector<8x8xf32>, vector<8x32xf32>, vector<8x32xf32> -> vector<8x32xf32>
    %258 = arith.addf %253, %257 : vector<8x32xf32>
    %259 = vector.extract_strided_slice %37 {offsets = [0, 24], sizes = [8, 8], strides = [1, 1]} : vector<8x32xf32> to vector<8x8xf32>
    %cst_77 = arith.constant dense<0.000000e+00> : vector<8x8xf32>
    %260 = tpu.matmul %241, %259, %cst_77 {dimension_numbers = #tpu.dot_dimension_numbers<[1], [0], [0], [1], [0, 0, 1, 1], [], []>} : vector<8x8xf32>, vector<8x8xf32>, vector<8x8xf32> -> vector<8x8xf32>
    %261 = vector.extract_strided_slice %4 {offsets = [24, 0], sizes = [8, 32], strides = [1, 1]} : vector<32x32xf32> to vector<8x32xf32>
    %cst_78 = arith.constant dense<0.000000e+00> : vector<8x32xf32>
    %262 = tpu.matmul %260, %261, %cst_78 {dimension_numbers = #tpu.dot_dimension_numbers<[1], [0], [0], [1], [0, 0, 1, 1], [], []>} : vector<8x8xf32>, vector<8x32xf32>, vector<8x32xf32> -> vector<8x32xf32>
    %263 = arith.addf %258, %262 : vector<8x32xf32>
    %c0_79 = arith.constant 0 : index
    %c0_80 = arith.constant 0 : index
    %c0_81 = arith.constant 0 : index
    %264 = vector.load %arg8[%c0_79, %c0_80, %c0_81] : memref<1x8x128xf32, #tpu.memory_space<vmem>>, vector<1x8x32xf32>
    %265 = vector.shape_cast %264 : vector<1x8x32xf32> to vector<8x32xf32>
    %266 = vector.shape_cast %263 : vector<8x32xf32> to vector<1x8x32xf32>
    tpu.vector_store %arg8[%c0_79, %c0_80, %c0_81], %266 {strides = array<i32>} : memref<1x8x128xf32, #tpu.memory_space<vmem>>, vector<1x8x32xf32>,
    %267 = vector.broadcast %5 : vector<1x32xf32> to vector<8x32xf32>
    %268 = arith.addf %63, %267 : vector<8x32xf32>
    %269 = vector.extract_strided_slice %69 {offsets = [0, 0], sizes = [8, 8], strides = [1, 1]} : vector<8x32xf32> to vector<8x8xf32>
    %cst_82 = arith.constant dense<0.000000e+00> : vector<8x8xf32>
    %270 = tpu.matmul %160, %269, %cst_82 {dimension_numbers = #tpu.dot_dimension_numbers<[1], [0], [0], [1], [0, 0, 1, 1], [], []>} : vector<8x8xf32>, vector<8x8xf32>, vector<8x8xf32> -> vector<8x8xf32>
    %271 = vector.extract_strided_slice %4 {offsets = [0, 0], sizes = [8, 32], strides = [1, 1]} : vector<32x32xf32> to vector<8x32xf32>
    %cst_83 = arith.constant dense<0.000000e+00> : vector<8x32xf32>
    %272 = tpu.matmul %270, %271, %cst_83 {dimension_numbers = #tpu.dot_dimension_numbers<[1], [0], [0], [1], [0, 0, 1, 1], [], []>} : vector<8x8xf32>, vector<8x32xf32>, vector<8x32xf32> -> vector<8x32xf32>
    %273 = arith.addf %268, %272 : vector<8x32xf32>
    %274 = vector.extract_strided_slice %69 {offsets = [0, 8], sizes = [8, 8], strides = [1, 1]} : vector<8x32xf32> to vector<8x8xf32>
    %cst_84 = arith.constant dense<0.000000e+00> : vector<8x8xf32>
    %275 = tpu.matmul %187, %274, %cst_84 {dimension_numbers = #tpu.dot_dimension_numbers<[1], [0], [0], [1], [0, 0, 1, 1], [], []>} : vector<8x8xf32>, vector<8x8xf32>, vector<8x8xf32> -> vector<8x8xf32>
    %276 = vector.extract_strided_slice %4 {offsets = [8, 0], sizes = [8, 32], strides = [1, 1]} : vector<32x32xf32> to vector<8x32xf32>
    %cst_85 = arith.constant dense<0.000000e+00> : vector<8x32xf32>
    %277 = tpu.matmul %275, %276, %cst_85 {dimension_numbers = #tpu.dot_dimension_numbers<[1], [0], [0], [1], [0, 0, 1, 1], [], []>} : vector<8x8xf32>, vector<8x32xf32>, vector<8x32xf32> -> vector<8x32xf32>
    %278 = arith.addf %273, %277 : vector<8x32xf32>
    %279 = vector.extract_strided_slice %69 {offsets = [0, 16], sizes = [8, 8], strides = [1, 1]} : vector<8x32xf32> to vector<8x8xf32>
    %cst_86 = arith.constant dense<0.000000e+00> : vector<8x8xf32>
    %280 = tpu.matmul %214, %279, %cst_86 {dimension_numbers = #tpu.dot_dimension_numbers<[1], [0], [0], [1], [0, 0, 1, 1], [], []>} : vector<8x8xf32>, vector<8x8xf32>, vector<8x8xf32> -> vector<8x8xf32>
    %281 = vector.extract_strided_slice %4 {offsets = [16, 0], sizes = [8, 32], strides = [1, 1]} : vector<32x32xf32> to vector<8x32xf32>
    %cst_87 = arith.constant dense<0.000000e+00> : vector<8x32xf32>
    %282 = tpu.matmul %280, %281, %cst_87 {dimension_numbers = #tpu.dot_dimension_numbers<[1], [0], [0], [1], [0, 0, 1, 1], [], []>} : vector<8x8xf32>, vector<8x32xf32>, vector<8x32xf32> -> vector<8x32xf32>
    %283 = arith.addf %278, %282 : vector<8x32xf32>
    %284 = vector.extract_strided_slice %69 {offsets = [0, 24], sizes = [8, 8], strides = [1, 1]} : vector<8x32xf32> to vector<8x8xf32>
    %cst_88 = arith.constant dense<0.000000e+00> : vector<8x8xf32>
    %285 = tpu.matmul %241, %284, %cst_88 {dimension_numbers = #tpu.dot_dimension_numbers<[1], [0], [0], [1], [0, 0, 1, 1], [], []>} : vector<8x8xf32>, vector<8x8xf32>, vector<8x8xf32> -> vector<8x8xf32>
    %286 = vector.extract_strided_slice %4 {offsets = [24, 0], sizes = [8, 32], strides = [1, 1]} : vector<32x32xf32> to vector<8x32xf32>
    %cst_89 = arith.constant dense<0.000000e+00> : vector<8x32xf32>
    %287 = tpu.matmul %285, %286, %cst_89 {dimension_numbers = #tpu.dot_dimension_numbers<[1], [0], [0], [1], [0, 0, 1, 1], [], []>} : vector<8x8xf32>, vector<8x32xf32>, vector<8x32xf32> -> vector<8x32xf32>
    %288 = arith.addf %283, %287 : vector<8x32xf32>
    %c0_90 = arith.constant 0 : index
    %c0_91 = arith.constant 0 : index
    %c32_92 = arith.constant 32 : index
    %289 = vector.load %arg8[%c0_90, %c0_91, %c32_92] : memref<1x8x128xf32, #tpu.memory_space<vmem>>, vector<1x8x32xf32>
    %290 = vector.shape_cast %289 : vector<1x8x32xf32> to vector<8x32xf32>
    %291 = vector.shape_cast %288 : vector<8x32xf32> to vector<1x8x32xf32>
    tpu.vector_store %arg8[%c0_90, %c0_91, %c32_92], %291 {strides = array<i32>} : memref<1x8x128xf32, #tpu.memory_space<vmem>>, vector<1x8x32xf32>,
    %292 = vector.broadcast %5 : vector<1x32xf32> to vector<8x32xf32>
    %293 = arith.addf %95, %292 : vector<8x32xf32>
    %294 = vector.extract_strided_slice %101 {offsets = [0, 0], sizes = [8, 8], strides = [1, 1]} : vector<8x32xf32> to vector<8x8xf32>
    %cst_93 = arith.constant dense<0.000000e+00> : vector<8x8xf32>
    %295 = tpu.matmul %160, %294, %cst_93 {dimension_numbers = #tpu.dot_dimension_numbers<[1], [0], [0], [1], [0, 0, 1, 1], [], []>} : vector<8x8xf32>, vector<8x8xf32>, vector<8x8xf32> -> vector<8x8xf32>
    %296 = vector.extract_strided_slice %4 {offsets = [0, 0], sizes = [8, 32], strides = [1, 1]} : vector<32x32xf32> to vector<8x32xf32>
    %cst_94 = arith.constant dense<0.000000e+00> : vector<8x32xf32>
    %297 = tpu.matmul %295, %296, %cst_94 {dimension_numbers = #tpu.dot_dimension_numbers<[1], [0], [0], [1], [0, 0, 1, 1], [], []>} : vector<8x8xf32>, vector<8x32xf32>, vector<8x32xf32> -> vector<8x32xf32>
    %298 = arith.addf %293, %297 : vector<8x32xf32>
    %299 = vector.extract_strided_slice %101 {offsets = [0, 8], sizes = [8, 8], strides = [1, 1]} : vector<8x32xf32> to vector<8x8xf32>
    %cst_95 = arith.constant dense<0.000000e+00> : vector<8x8xf32>
    %300 = tpu.matmul %187, %299, %cst_95 {dimension_numbers = #tpu.dot_dimension_numbers<[1], [0], [0], [1], [0, 0, 1, 1], [], []>} : vector<8x8xf32>, vector<8x8xf32>, vector<8x8xf32> -> vector<8x8xf32>
    %301 = vector.extract_strided_slice %4 {offsets = [8, 0], sizes = [8, 32], strides = [1, 1]} : vector<32x32xf32> to vector<8x32xf32>
    %cst_96 = arith.constant dense<0.000000e+00> : vector<8x32xf32>
    %302 = tpu.matmul %300, %301, %cst_96 {dimension_numbers = #tpu.dot_dimension_numbers<[1], [0], [0], [1], [0, 0, 1, 1], [], []>} : vector<8x8xf32>, vector<8x32xf32>, vector<8x32xf32> -> vector<8x32xf32>
    %303 = arith.addf %298, %302 : vector<8x32xf32>
    %304 = vector.extract_strided_slice %101 {offsets = [0, 16], sizes = [8, 8], strides = [1, 1]} : vector<8x32xf32> to vector<8x8xf32>
    %cst_97 = arith.constant dense<0.000000e+00> : vector<8x8xf32>
    %305 = tpu.matmul %214, %304, %cst_97 {dimension_numbers = #tpu.dot_dimension_numbers<[1], [0], [0], [1], [0, 0, 1, 1], [], []>} : vector<8x8xf32>, vector<8x8xf32>, vector<8x8xf32> -> vector<8x8xf32>
    %306 = vector.extract_strided_slice %4 {offsets = [16, 0], sizes = [8, 32], strides = [1, 1]} : vector<32x32xf32> to vector<8x32xf32>
    %cst_98 = arith.constant dense<0.000000e+00> : vector<8x32xf32>
    %307 = tpu.matmul %305, %306, %cst_98 {dimension_numbers = #tpu.dot_dimension_numbers<[1], [0], [0], [1], [0, 0, 1, 1], [], []>} : vector<8x8xf32>, vector<8x32xf32>, vector<8x32xf32> -> vector<8x32xf32>
    %308 = arith.addf %303, %307 : vector<8x32xf32>
    %309 = vector.extract_strided_slice %101 {offsets = [0, 24], sizes = [8, 8], strides = [1, 1]} : vector<8x32xf32> to vector<8x8xf32>
    %cst_99 = arith.constant dense<0.000000e+00> : vector<8x8xf32>
    %310 = tpu.matmul %241, %309, %cst_99 {dimension_numbers = #tpu.dot_dimension_numbers<[1], [0], [0], [1], [0, 0, 1, 1], [], []>} : vector<8x8xf32>, vector<8x8xf32>, vector<8x8xf32> -> vector<8x8xf32>
    %311 = vector.extract_strided_slice %4 {offsets = [24, 0], sizes = [8, 32], strides = [1, 1]} : vector<32x32xf32> to vector<8x32xf32>
    %cst_100 = arith.constant dense<0.000000e+00> : vector<8x32xf32>
    %312 = tpu.matmul %310, %311, %cst_100 {dimension_numbers = #tpu.dot_dimension_numbers<[1], [0], [0], [1], [0, 0, 1, 1], [], []>} : vector<8x8xf32>, vector<8x32xf32>, vector<8x32xf32> -> vector<8x32xf32>
    %313 = arith.addf %308, %312 : vector<8x32xf32>
    %c0_101 = arith.constant 0 : index
    %c0_102 = arith.constant 0 : index
    %c64_103 = arith.constant 64 : index
    %314 = vector.load %arg8[%c0_101, %c0_102, %c64_103] : memref<1x8x128xf32, #tpu.memory_space<vmem>>, vector<1x8x32xf32>
    %315 = vector.shape_cast %314 : vector<1x8x32xf32> to vector<8x32xf32>
    %316 = vector.shape_cast %313 : vector<8x32xf32> to vector<1x8x32xf32>
    tpu.vector_store %arg8[%c0_101, %c0_102, %c64_103], %316 {strides = array<i32>} : memref<1x8x128xf32, #tpu.memory_space<vmem>>, vector<1x8x32xf32>,
    %317 = vector.broadcast %5 : vector<1x32xf32> to vector<8x32xf32>
    %318 = arith.addf %127, %317 : vector<8x32xf32>
    %319 = vector.extract_strided_slice %133 {offsets = [0, 0], sizes = [8, 8], strides = [1, 1]} : vector<8x32xf32> to vector<8x8xf32>
    %cst_104 = arith.constant dense<0.000000e+00> : vector<8x8xf32>
    %320 = tpu.matmul %160, %319, %cst_104 {dimension_numbers = #tpu.dot_dimension_numbers<[1], [0], [0], [1], [0, 0, 1, 1], [], []>} : vector<8x8xf32>, vector<8x8xf32>, vector<8x8xf32> -> vector<8x8xf32>
    %321 = vector.extract_strided_slice %4 {offsets = [0, 0], sizes = [8, 32], strides = [1, 1]} : vector<32x32xf32> to vector<8x32xf32>
    %cst_105 = arith.constant dense<0.000000e+00> : vector<8x32xf32>
    %322 = tpu.matmul %320, %321, %cst_105 {dimension_numbers = #tpu.dot_dimension_numbers<[1], [0], [0], [1], [0, 0, 1, 1], [], []>} : vector<8x8xf32>, vector<8x32xf32>, vector<8x32xf32> -> vector<8x32xf32>
    %323 = arith.addf %318, %322 : vector<8x32xf32>
    %324 = vector.extract_strided_slice %133 {offsets = [0, 8], sizes = [8, 8], strides = [1, 1]} : vector<8x32xf32> to vector<8x8xf32>
    %cst_106 = arith.constant dense<0.000000e+00> : vector<8x8xf32>
    %325 = tpu.matmul %187, %324, %cst_106 {dimension_numbers = #tpu.dot_dimension_numbers<[1], [0], [0], [1], [0, 0, 1, 1], [], []>} : vector<8x8xf32>, vector<8x8xf32>, vector<8x8xf32> -> vector<8x8xf32>
    %326 = vector.extract_strided_slice %4 {offsets = [8, 0], sizes = [8, 32], strides = [1, 1]} : vector<32x32xf32> to vector<8x32xf32>
    %cst_107 = arith.constant dense<0.000000e+00> : vector<8x32xf32>
    %327 = tpu.matmul %325, %326, %cst_107 {dimension_numbers = #tpu.dot_dimension_numbers<[1], [0], [0], [1], [0, 0, 1, 1], [], []>} : vector<8x8xf32>, vector<8x32xf32>, vector<8x32xf32> -> vector<8x32xf32>
    %328 = arith.addf %323, %327 : vector<8x32xf32>
    %329 = vector.extract_strided_slice %133 {offsets = [0, 16], sizes = [8, 8], strides = [1, 1]} : vector<8x32xf32> to vector<8x8xf32>
    %cst_108 = arith.constant dense<0.000000e+00> : vector<8x8xf32>
    %330 = tpu.matmul %214, %329, %cst_108 {dimension_numbers = #tpu.dot_dimension_numbers<[1], [0], [0], [1], [0, 0, 1, 1], [], []>} : vector<8x8xf32>, vector<8x8xf32>, vector<8x8xf32> -> vector<8x8xf32>
    %331 = vector.extract_strided_slice %4 {offsets = [16, 0], sizes = [8, 32], strides = [1, 1]} : vector<32x32xf32> to vector<8x32xf32>
    %cst_109 = arith.constant dense<0.000000e+00> : vector<8x32xf32>
    %332 = tpu.matmul %330, %331, %cst_109 {dimension_numbers = #tpu.dot_dimension_numbers<[1], [0], [0], [1], [0, 0, 1, 1], [], []>} : vector<8x8xf32>, vector<8x32xf32>, vector<8x32xf32> -> vector<8x32xf32>
    %333 = arith.addf %328, %332 : vector<8x32xf32>
    %334 = vector.extract_strided_slice %133 {offsets = [0, 24], sizes = [8, 8], strides = [1, 1]} : vector<8x32xf32> to vector<8x8xf32>
    %cst_110 = arith.constant dense<0.000000e+00> : vector<8x8xf32>
    %335 = tpu.matmul %241, %334, %cst_110 {dimension_numbers = #tpu.dot_dimension_numbers<[1], [0], [0], [1], [0, 0, 1, 1], [], []>} : vector<8x8xf32>, vector<8x8xf32>, vector<8x8xf32> -> vector<8x8xf32>
    %336 = vector.extract_strided_slice %4 {offsets = [24, 0], sizes = [8, 32], strides = [1, 1]} : vector<32x32xf32> to vector<8x32xf32>
    %cst_111 = arith.constant dense<0.000000e+00> : vector<8x32xf32>
    %337 = tpu.matmul %335, %336, %cst_111 {dimension_numbers = #tpu.dot_dimension_numbers<[1], [0], [0], [1], [0, 0, 1, 1], [], []>} : vector<8x8xf32>, vector<8x32xf32>, vector<8x32xf32> -> vector<8x32xf32>
    %338 = arith.addf %333, %337 : vector<8x32xf32>
    %c0_112 = arith.constant 0 : index
    %c0_113 = arith.constant 0 : index
    %c96_114 = arith.constant 96 : index
    %339 = vector.load %arg8[%c0_112, %c0_113, %c96_114] : memref<1x8x128xf32, #tpu.memory_space<vmem>>, vector<1x8x32xf32>
    %340 = vector.shape_cast %339 : vector<1x8x32xf32> to vector<8x32xf32>
    %341 = vector.shape_cast %338 : vector<8x32xf32> to vector<1x8x32xf32>
    tpu.vector_store %arg8[%c0_112, %c0_113, %c96_114], %341 {strides = array<i32>} : memref<1x8x128xf32, #tpu.memory_space<vmem>>, vector<1x8x32xf32>,
    return
  }
  func.func @transform_0(%arg0: i32) -> (i32, i32, i32) {
    %c0_i32 = arith.constant 0 : i32
    %c0_i32_0 = arith.constant 0 : i32
    %c0_i32_1 = arith.constant 0 : i32
    return %arg0, %c0_i32, %c0_i32_0 : i32, i32, i32
  }
  func.func @transform_1(%arg0: i32) -> (i32, i32) {
    %c0_i32 = arith.constant 0 : i32
    %c0_i32_0 = arith.constant 0 : i32
    %c0_i32_1 = arith.constant 0 : i32
    return %c0_i32, %c0_i32_0 : i32, i32
  }
  func.func @transform_2(%arg0: i32) -> (i32, i32) {
    %c0_i32 = arith.constant 0 : i32
    %c0_i32_0 = arith.constant 0 : i32
    %c0_i32_1 = arith.constant 0 : i32
    return %c0_i32, %c0_i32_0 : i32, i32
  }
  func.func @transform_3(%arg0: i32) -> (i32, i32) {
    %c0_i32 = arith.constant 0 : i32
    %c0_i32_0 = arith.constant 0 : i32
    %c0_i32_1 = arith.constant 0 : i32
    return %c0_i32, %c0_i32_0 : i32, i32
  }
  func.func @transform_4(%arg0: i32) -> (i32, i32) {
    %c0_i32 = arith.constant 0 : i32
    %c0_i32_0 = arith.constant 0 : i32
    %c0_i32_1 = arith.constant 0 : i32
    return %c0_i32, %c0_i32_0 : i32, i32
  }
  func.func @transform_5(%arg0: i32) -> (i32, i32) {
    %c0_i32 = arith.constant 0 : i32
    %c0_i32_0 = arith.constant 0 : i32
    %c0_i32_1 = arith.constant 0 : i32
    return %c0_i32, %c0_i32_0 : i32, i32
  }
  func.func @transform_6(%arg0: i32) -> (i32, i32) {
    %c0_i32 = arith.constant 0 : i32
    %c0_i32_0 = arith.constant 0 : i32
    %c0_i32_1 = arith.constant 0 : i32
    return %c0_i32, %c0_i32_0 : i32, i32
  }
  func.func @transform_7(%arg0: i32) -> (i32, i32, i32) {
    %c0_i32 = arith.constant 0 : i32
    %c0_i32_0 = arith.constant 0 : i32
    %c0_i32_1 = arith.constant 0 : i32
    return %arg0, %c0_i32, %c0_i32_0 : i32, i32, i32
  }
}

module attributes {stable_mosaic.version = 11 : i64} {
  func.func @_out_kernel(%arg0: i32, %arg1: memref<1x8x128xf32, #tpu.memory_space<vmem>>, %arg2: memref<1x32xf32, #tpu.memory_space<vmem>>, %arg3: memref<1x32xf32, #tpu.memory_space<vmem>>, %arg4: memref<1x8x32xf32, #tpu.memory_space<vmem>>) attributes {dimension_semantics = [#tpu.dimension_semantics<parallel>], iteration_bounds = array<i64: 2>, scalar_prefetch = 0 : i64, scratch_operands = 0 : i64, tpu.core_type = #tpu.core_type<tc>, window_params = [{transform_indices = @transform_0, window_bounds = array<i64: 1, 8, 128>}, {pipeline_mode = #tpu.pipeline_mode<synchronous>, transform_indices = @transform_1, window_bounds = array<i64: 1, 32>}, {pipeline_mode = #tpu.pipeline_mode<synchronous>, transform_indices = @transform_2, window_bounds = array<i64: 1, 32>}, {transform_indices = @transform_3, window_bounds = array<i64: 1, 8, 32>}]} {
    %c0 = arith.constant 0 : index
    %c0_0 = arith.constant 0 : index
    %0 = vector.load %arg2[%c0, %c0_0] : memref<1x32xf32, #tpu.memory_space<vmem>>, vector<1x32xf32>
    %c0_1 = arith.constant 0 : index
    %c0_2 = arith.constant 0 : index
    %1 = vector.load %arg3[%c0_1, %c0_2] : memref<1x32xf32, #tpu.memory_space<vmem>>, vector<1x32xf32>
    %cst = arith.constant 0.000000e+00 : f32
    %2 = vector.broadcast %cst : f32 to vector<8x32xf32>
    %c0_3 = arith.constant 0 : index
    %c0_4 = arith.constant 0 : index
    %c0_5 = arith.constant 0 : index
    %3 = vector.load %arg1[%c0_3, %c0_4, %c0_5] : memref<1x8x128xf32, #tpu.memory_space<vmem>>, vector<1x8x32xf32>
    %4 = vector.shape_cast %3 : vector<1x8x32xf32> to vector<8x32xf32>
    %cst_6 = arith.constant dense<0.000000e+00> : vector<8xf32>
    %5 = vector.multi_reduction <add>, %4, %cst_6 [1] : vector<8x32xf32> to vector<8xf32>
    %6 = vector.shape_cast %5 : vector<8xf32> to vector<8x1xf32>
    %cst_7 = arith.constant 3.200000e+01 : f32
    %7 = vector.broadcast %cst_7 : f32 to vector<8x1xf32>
    %8 = arith.divf %6, %7 : vector<8x1xf32>
    %9 = vector.broadcast %8 : vector<8x1xf32> to vector<8x32xf32>
    %10 = arith.subf %4, %9 : vector<8x32xf32>
    %11 = vector.broadcast %8 : vector<8x1xf32> to vector<8x32xf32>
    %12 = arith.subf %4, %11 : vector<8x32xf32>
    %13 = arith.mulf %10, %12 : vector<8x32xf32>
    %cst_8 = arith.constant dense<0.000000e+00> : vector<8xf32>
    %14 = vector.multi_reduction <add>, %13, %cst_8 [1] : vector<8x32xf32> to vector<8xf32>
    %15 = vector.shape_cast %14 : vector<8xf32> to vector<8x1xf32>
    %cst_9 = arith.constant 3.200000e+01 : f32
    %16 = vector.broadcast %cst_9 : f32 to vector<8x1xf32>
    %17 = arith.divf %15, %16 : vector<8x1xf32>
    %18 = vector.broadcast %8 : vector<8x1xf32> to vector<8x32xf32>
    %19 = arith.subf %4, %18 : vector<8x32xf32>
    %cst_10 = arith.constant 9.99999974E-6 : f32
    %20 = vector.broadcast %cst_10 : f32 to vector<8x1xf32>
    %21 = arith.addf %17, %20 : vector<8x1xf32>
    %22 = math.rsqrt %21 : vector<8x1xf32>
    %23 = vector.broadcast %22 : vector<8x1xf32> to vector<8x32xf32>
    %24 = arith.mulf %19, %23 : vector<8x32xf32>
    %25 = vector.broadcast %0 : vector<1x32xf32> to vector<8x32xf32>
    %26 = arith.mulf %24, %25 : vector<8x32xf32>
    %27 = vector.broadcast %1 : vector<1x32xf32> to vector<8x32xf32>
    %28 = arith.addf %26, %27 : vector<8x32xf32>
    %29 = arith.addf %2, %28 : vector<8x32xf32>
    %c0_11 = arith.constant 0 : index
    %c0_12 = arith.constant 0 : index
    %c32 = arith.constant 32 : index
    %30 = vector.load %arg1[%c0_11, %c0_12, %c32] : memref<1x8x128xf32, #tpu.memory_space<vmem>>, vector<1x8x32xf32>
    %31 = vector.shape_cast %30 : vector<1x8x32xf32> to vector<8x32xf32>
    %cst_13 = arith.constant dense<0.000000e+00> : vector<8xf32>
    %32 = vector.multi_reduction <add>, %31, %cst_13 [1] : vector<8x32xf32> to vector<8xf32>
    %33 = vector.shape_cast %32 : vector<8xf32> to vector<8x1xf32>
    %cst_14 = arith.constant 3.200000e+01 : f32
    %34 = vector.broadcast %cst_14 : f32 to vector<8x1xf32>
    %35 = arith.divf %33, %34 : vector<8x1xf32>
    %36 = vector.broadcast %35 : vector<8x1xf32> to vector<8x32xf32>
    %37 = arith.subf %31, %36 : vector<8x32xf32>
    %38 = vector.broadcast %35 : vector<8x1xf32> to vector<8x32xf32>
    %39 = arith.subf %31, %38 : vector<8x32xf32>
    %40 = arith.mulf %37, %39 : vector<8x32xf32>
    %cst_15 = arith.constant dense<0.000000e+00> : vector<8xf32>
    %41 = vector.multi_reduction <add>, %40, %cst_15 [1] : vector<8x32xf32> to vector<8xf32>
    %42 = vector.shape_cast %41 : vector<8xf32> to vector<8x1xf32>
    %cst_16 = arith.constant 3.200000e+01 : f32
    %43 = vector.broadcast %cst_16 : f32 to vector<8x1xf32>
    %44 = arith.divf %42, %43 : vector<8x1xf32>
    %45 = vector.broadcast %35 : vector<8x1xf32> to vector<8x32xf32>
    %46 = arith.subf %31, %45 : vector<8x32xf32>
    %cst_17 = arith.constant 9.99999974E-6 : f32
    %47 = vector.broadcast %cst_17 : f32 to vector<8x1xf32>
    %48 = arith.addf %44, %47 : vector<8x1xf32>
    %49 = math.rsqrt %48 : vector<8x1xf32>
    %50 = vector.broadcast %49 : vector<8x1xf32> to vector<8x32xf32>
    %51 = arith.mulf %46, %50 : vector<8x32xf32>
    %52 = vector.broadcast %0 : vector<1x32xf32> to vector<8x32xf32>
    %53 = arith.mulf %51, %52 : vector<8x32xf32>
    %54 = vector.broadcast %1 : vector<1x32xf32> to vector<8x32xf32>
    %55 = arith.addf %53, %54 : vector<8x32xf32>
    %56 = arith.addf %29, %55 : vector<8x32xf32>
    %c0_18 = arith.constant 0 : index
    %c0_19 = arith.constant 0 : index
    %c64 = arith.constant 64 : index
    %57 = vector.load %arg1[%c0_18, %c0_19, %c64] : memref<1x8x128xf32, #tpu.memory_space<vmem>>, vector<1x8x32xf32>
    %58 = vector.shape_cast %57 : vector<1x8x32xf32> to vector<8x32xf32>
    %cst_20 = arith.constant dense<0.000000e+00> : vector<8xf32>
    %59 = vector.multi_reduction <add>, %58, %cst_20 [1] : vector<8x32xf32> to vector<8xf32>
    %60 = vector.shape_cast %59 : vector<8xf32> to vector<8x1xf32>
    %cst_21 = arith.constant 3.200000e+01 : f32
    %61 = vector.broadcast %cst_21 : f32 to vector<8x1xf32>
    %62 = arith.divf %60, %61 : vector<8x1xf32>
    %63 = vector.broadcast %62 : vector<8x1xf32> to vector<8x32xf32>
    %64 = arith.subf %58, %63 : vector<8x32xf32>
    %65 = vector.broadcast %62 : vector<8x1xf32> to vector<8x32xf32>
    %66 = arith.subf %58, %65 : vector<8x32xf32>
    %67 = arith.mulf %64, %66 : vector<8x32xf32>
    %cst_22 = arith.constant dense<0.000000e+00> : vector<8xf32>
    %68 = vector.multi_reduction <add>, %67, %cst_22 [1] : vector<8x32xf32> to vector<8xf32>
    %69 = vector.shape_cast %68 : vector<8xf32> to vector<8x1xf32>
    %cst_23 = arith.constant 3.200000e+01 : f32
    %70 = vector.broadcast %cst_23 : f32 to vector<8x1xf32>
    %71 = arith.divf %69, %70 : vector<8x1xf32>
    %72 = vector.broadcast %62 : vector<8x1xf32> to vector<8x32xf32>
    %73 = arith.subf %58, %72 : vector<8x32xf32>
    %cst_24 = arith.constant 9.99999974E-6 : f32
    %74 = vector.broadcast %cst_24 : f32 to vector<8x1xf32>
    %75 = arith.addf %71, %74 : vector<8x1xf32>
    %76 = math.rsqrt %75 : vector<8x1xf32>
    %77 = vector.broadcast %76 : vector<8x1xf32> to vector<8x32xf32>
    %78 = arith.mulf %73, %77 : vector<8x32xf32>
    %79 = vector.broadcast %0 : vector<1x32xf32> to vector<8x32xf32>
    %80 = arith.mulf %78, %79 : vector<8x32xf32>
    %81 = vector.broadcast %1 : vector<1x32xf32> to vector<8x32xf32>
    %82 = arith.addf %80, %81 : vector<8x32xf32>
    %83 = arith.addf %56, %82 : vector<8x32xf32>
    %c0_25 = arith.constant 0 : index
    %c0_26 = arith.constant 0 : index
    %c96 = arith.constant 96 : index
    %84 = vector.load %arg1[%c0_25, %c0_26, %c96] : memref<1x8x128xf32, #tpu.memory_space<vmem>>, vector<1x8x32xf32>
    %85 = vector.shape_cast %84 : vector<1x8x32xf32> to vector<8x32xf32>
    %cst_27 = arith.constant dense<0.000000e+00> : vector<8xf32>
    %86 = vector.multi_reduction <add>, %85, %cst_27 [1] : vector<8x32xf32> to vector<8xf32>
    %87 = vector.shape_cast %86 : vector<8xf32> to vector<8x1xf32>
    %cst_28 = arith.constant 3.200000e+01 : f32
    %88 = vector.broadcast %cst_28 : f32 to vector<8x1xf32>
    %89 = arith.divf %87, %88 : vector<8x1xf32>
    %90 = vector.broadcast %89 : vector<8x1xf32> to vector<8x32xf32>
    %91 = arith.subf %85, %90 : vector<8x32xf32>
    %92 = vector.broadcast %89 : vector<8x1xf32> to vector<8x32xf32>
    %93 = arith.subf %85, %92 : vector<8x32xf32>
    %94 = arith.mulf %91, %93 : vector<8x32xf32>
    %cst_29 = arith.constant dense<0.000000e+00> : vector<8xf32>
    %95 = vector.multi_reduction <add>, %94, %cst_29 [1] : vector<8x32xf32> to vector<8xf32>
    %96 = vector.shape_cast %95 : vector<8xf32> to vector<8x1xf32>
    %cst_30 = arith.constant 3.200000e+01 : f32
    %97 = vector.broadcast %cst_30 : f32 to vector<8x1xf32>
    %98 = arith.divf %96, %97 : vector<8x1xf32>
    %99 = vector.broadcast %89 : vector<8x1xf32> to vector<8x32xf32>
    %100 = arith.subf %85, %99 : vector<8x32xf32>
    %cst_31 = arith.constant 9.99999974E-6 : f32
    %101 = vector.broadcast %cst_31 : f32 to vector<8x1xf32>
    %102 = arith.addf %98, %101 : vector<8x1xf32>
    %103 = math.rsqrt %102 : vector<8x1xf32>
    %104 = vector.broadcast %103 : vector<8x1xf32> to vector<8x32xf32>
    %105 = arith.mulf %100, %104 : vector<8x32xf32>
    %106 = vector.broadcast %0 : vector<1x32xf32> to vector<8x32xf32>
    %107 = arith.mulf %105, %106 : vector<8x32xf32>
    %108 = vector.broadcast %1 : vector<1x32xf32> to vector<8x32xf32>
    %109 = arith.addf %107, %108 : vector<8x32xf32>
    %110 = arith.addf %83, %109 : vector<8x32xf32>
    %cst_32 = arith.constant 2.500000e-01 : f32
    %111 = vector.broadcast %cst_32 : f32 to vector<8x32xf32>
    %112 = arith.mulf %110, %111 : vector<8x32xf32>
    %c0_33 = arith.constant 0 : index
    %c0_34 = arith.constant 0 : index
    %c0_35 = arith.constant 0 : index
    %113 = vector.load %arg4[%c0_33, %c0_34, %c0_35] : memref<1x8x32xf32, #tpu.memory_space<vmem>>, vector<1x8x32xf32>
    %114 = vector.shape_cast %113 : vector<1x8x32xf32> to vector<8x32xf32>
    %115 = vector.shape_cast %112 : vector<8x32xf32> to vector<1x8x32xf32>
    tpu.vector_store %arg4[%c0_33, %c0_34, %c0_35], %115 {strides = array<i32>} : memref<1x8x32xf32, #tpu.memory_space<vmem>>, vector<1x8x32xf32>,
    return
  }
  func.func @transform_0(%arg0: i32) -> (i32, i32, i32) {
    %c0_i32 = arith.constant 0 : i32
    %c0_i32_0 = arith.constant 0 : i32
    %c0_i32_1 = arith.constant 0 : i32
    return %arg0, %c0_i32, %c0_i32_0 : i32, i32, i32
  }
  func.func @transform_1(%arg0: i32) -> (i32, i32) {
    %c0_i32 = arith.constant 0 : i32
    %c0_i32_0 = arith.constant 0 : i32
    %c0_i32_1 = arith.constant 0 : i32
    return %c0_i32, %c0_i32_0 : i32, i32
  }
  func.func @transform_2(%arg0: i32) -> (i32, i32) {
    %c0_i32 = arith.constant 0 : i32
    %c0_i32_0 = arith.constant 0 : i32
    %c0_i32_1 = arith.constant 0 : i32
    return %c0_i32, %c0_i32_0 : i32, i32
  }
  func.func @transform_3(%arg0: i32) -> (i32, i32, i32) {
    %c0_i32 = arith.constant 0 : i32
    %c0_i32_0 = arith.constant 0 : i32
    %c0_i32_1 = arith.constant 0 : i32
    return %arg0, %c0_i32, %c0_i32_0 : i32, i32, i32
  }
}

</mosaic_0001>

<bundles_post_ra>
// kernel: coattention_encoder.8
= control target key start
LH: loop header
LB: loop body
LE: loop exit
PB: predicated region body
PF: predicated region fallthrough
CT: control target
= control target key end

     0   :  { %s672_s24 = smov 0   ;;  %s798_s0 = inlined_call_operand.vmem [shape: f32[64,32], index: 0, kind: input, shape index: {}]   ;;  %s799_s1 = inlined_call_operand.vmem [shape: f32[1,32], index: 1, kind: input, shape index: {}]   ;;  %s800_s2 = inlined_call_operand.vmem [shape: f32[1,32], index: 2, kind: input, shape index: {}]   ;;  %s801_s3 = inlined_call_operand.vmem [shape: f32[32,64], index: 3, kind: input, shape index: {}]   ;;  %s802_s4 = inlined_call_operand.vmem [shape: f32[1,64], index: 4, kind: input, shape index: {}]   ;;  %s803_s5 = inlined_call_operand.vmem [shape: f32[64,32], index: 5, kind: input, shape index: {}]   ;;  %s804_s6 = inlined_call_operand.vmem [shape: f32[1,32], index: 6, kind: input, shape index: {}]   ;;  %s805_s7 = inlined_call_operand.vmem [shape: f32[64,32], index: 7, kind: output, shape index: {}]  }
   0x1 LB: > { %s569_s25 = sadd.s32 4294967295, %s629_s24   ;;  %p573_p0 = scmp.ge.s32.totalorder %s629_s24, 1  ;;  %s629_s24 = sphi %s672_s24, %s17_s24  }
   0x2   : > { %p238_p1 = scmp.lt.s32.totalorder %s629_s24, 3 }
   0x4   : > { %p239_p2 = pnand %p573_p0, %p238_p1 }
   0x5   : > { %s574_s26 = sshll.u32 (!%p239_p2), %s569_s25, 2 }
   0x6   : > { %242 = sbr.rel (%p239_p2) target bundleno = 572 (0x23c), region = 48  ;;  %p271_p3 = scmp.lt.s32.totalorder (!%p239_p2), %s574_s26, 7 }
   0xb   : > { %s807_s26 = smov (!%p271_p3, %s574_s26), 7  ;;  %vm288_vm0 = vcmask 261120   ;;  %v631_v8 = vmov 32.0   ;;  %v401_v35 = vld [vmem:[%s801_s3 + $0x18] sm:$0xff]  ;;  %v400_v36 = vld [vmem:[%s801_s3 + $0x10] sm:$0xff]  ;;  %v399_v37 = vld [vmem:[%s801_s3 + $0x8] sm:$0xff] }
   0xc   : > { %s575_s27 = sshll.u32 %s807_s26, 3  ;;  %613 = vrcp.f32 %v631_v8  ;;  %588 = vmatpush.msra.mxu3 %v401_v35  ;;  %430 = vmatpush.msra.mxu0 %v401_v35  ;;  %v398_v38 = vld [vmem:[%s801_s3] sm:$0xff]  ;;  %v458_v55 = vld [vmem:[%s803_s5 + $0x38] sm:$0xff]  ;;  %v457_v56 = vld [vmem:[%s803_s5 + $0x30] sm:$0xff]  ;;  %vm463_vm14 = vcmask 523264  }
   0xd   : > { %s274_s30 = scalar_lea.vmem %s798_s0, %s575_s27  ;;  %484 = vmatpush.msra.mxu1 %v458_v55  ;;  %592 = vmatpush.msra.mxu2 %v458_v55  ;;  %v456_v58 = vld [vmem:[%s803_s5 + $0x28] sm:$0xff]  ;;  %v455_v61 = vld [vmem:[%s803_s5 + $0x20] sm:$0xff]  ;;  %s280_s22 = scalar_lea.vmem %s805_s7, %s575_s27 }
   0xe   : > { %v285_v0 = vld [vmem:[%s274_s30 + $0x18] sm:$0xff]  ;;  %v283_v1 = vld [vmem:[%s274_s30 + $0x8] sm:$0xff]  ;;  %v284_v4 = vld [vmem:[%s274_s30 + $0x10] sm:$0xff]  ;;  %589 = vmatpush.msra.mxu3 %v400_v36  ;;  %431 = vmatpush.msra.mxu0 %v400_v36 }
   0xf   : > { %v298_v2 = vsel %vm288_vm0, %v285_v0, 0.0  ;;  %v292_v3 = vsel %vm288_vm0, %v283_v1, 0.0  ;;  %v282_v5 = vld [vmem:[%s274_s30] sm:$0xff]  ;;  %v295_v6 = vsel %vm288_vm0, %v284_v4, 0.0  ;;  %485 = vmatpush.msra.mxu1 %v457_v56  ;;  %593 = vmatpush.msra.mxu2 %v457_v56 }
  0x10   : > { %299 = vadd.xlane.f32.xlu1 %v298_v2  ;;  %293 = vadd.xlane.f32.xlu0 %v292_v3  ;;  %v289_v7 = vsel %vm288_vm0, %v282_v5, 0.0  ;;  %v451_v36 = vld [vmem:[%s803_s5] sm:$0xff] }
  0x11   : > { %590 = vmatpush.msra.mxu3 %v399_v37  ;;  %432 = vmatpush.msra.mxu0 %v399_v37 }
  0x12   : > { %v614_v9 = vpop.eup %613  ;;  %486 = vmatpush.msra.mxu1 %v456_v58  ;;  %594 = vmatpush.msra.mxu2 %v456_v58 }
  0x13   : > { %v302_v10 = vmul.f32 32.0, %v614_v9  ;;  %vm306_vm1 = vweird.f32 %v614_v9  ;;  %591 = vmatpush.msra.mxu3 %v398_v38  ;;  %433 = vmatpush.msra.mxu0 %v398_v38  ;;  %v611_v38 = vld [vmem:[%s802_s4] ss:$0 sm:$0xff] }
  0x14   : > { %487 = vmatpush.msra.mxu1 %v455_v61  ;;  %595 = vmatpush.msra.mxu2 %v455_v61 }
  0x15   : > { %v303_v11 = vsub.f32 1.0, %v302_v10  ;;  %v610_v10 = vld [vmem:[%s800_s2] ss:$0 sm:$0xff] }
  0x17   : > { %v304_v12 = vmul.f32 %v614_v9, %v303_v11 }
  0x18   : > { %296 = vadd.xlane.f32.xlu0 %v295_v6  ;;  %290 = vadd.xlane.f32.xlu1 %v289_v7 }
  0x19   : > { %v305_v13 = vadd.f32 %v614_v9, %v304_v12 }
  0x1b   : > { %v307_v14 = vsel %vm306_vm1, %v614_v9, %v305_v13 }
  0x83   : > { %v300_v15 = vpop.xlane.xlu1 %299  ;;  %v294_v16 = vpop.xlane.xlu0 %293 }
  0x84   : > { %v311_v17 = vmul.f32 %v307_v14, %v300_v15  ;;  %v309_v18 = vmul.f32 %v307_v14, %v294_v16 }
  0x86   : > { %v692_v19 = vsub.f32 %v285_v0, %v311_v17  ;;  %v694_v20 = vsub.f32 %v283_v1, %v309_v18 }
  0x88   : > { %v319_v21 = vmul.f32 %v692_v19, %v692_v19  ;;  %v317_v22 = vmul.f32 %v694_v20, %v694_v20 }
  0x8a   : > { %v329_v23 = vsel %vm288_vm0, %v319_v21, 0.0  ;;  %v323_v24 = vsel %vm288_vm0, %v317_v22, 0.0 }
  0x8b   : > { %330 = vadd.xlane.f32.xlu0 %v329_v23  ;;  %324 = vadd.xlane.f32.xlu2 %v323_v24  ;;  %v297_v25 = vpop.xlane.xlu0 %296  ;;  %v291_v26 = vpop.xlane.xlu1 %290 }
  0x8c   : > { %v310_v27 = vmul.f32 %v307_v14, %v297_v25  ;;  %v308_v28 = vmul.f32 %v307_v14, %v291_v26 }
  0x8e   : > { %v702_v29 = vsub.f32 %v284_v4, %v310_v27  ;;  %v704_v30 = vsub.f32 %v282_v5, %v308_v28  ;;  %v609_v5 = vld [vmem:[%s799_s1] ss:$0 sm:$0xff] }
  0x90   : > { %v318_v31 = vmul.f32 %v702_v29, %v702_v29  ;;  %v316_v32 = vmul.f32 %v704_v30, %v704_v30 }
  0x92   : > { %v326_v33 = vsel %vm288_vm0, %v318_v31, 0.0  ;;  %v320_v34 = vsel %vm288_vm0, %v316_v32, 0.0 }
  0x93   : > { %327 = vadd.xlane.f32.xlu2 %v326_v33  ;;  %321 = vadd.xlane.f32.xlu1 %v320_v34 }
  0xfe   : > { %v325_v39 = vpop.xlane.xlu2 %324  ;;  %v331_v40 = vpop.xlane.xlu0 %330 }
  0xff   : > { %v333_v41 = vmul.f32 %v325_v39, %v307_v14  ;;  %v335_v42 = vmul.f32 %v331_v40, %v307_v14 }
 0x101   : > { %v337_v43 = vadd.f32 1e-05, %v333_v41  ;;  %v724_v44 = vadd.f32 1e-05, %v335_v42 }
 0x103   : > { %615 = vrsqrt.f32 %v337_v43  ;;  %vm356_vm3 = vweird.f32 %v337_v43  ;;  %vm376_vm5 = vweird.f32 %v724_v44 }
 0x104   : > { %617 = vrsqrt.f32 %v724_v44 }
 0x106   : > { %v328_v45 = vpop.xlane.xlu2 %327  ;;  %v322_v46 = vpop.xlane.xlu1 %321 }
 0x107   : > { %v334_v47 = vmul.f32 %v328_v45, %v307_v14  ;;  %v332_v48 = vmul.f32 %v322_v46, %v307_v14 }
 0x109   : > { %v616_v49 = vpop.eup %615  ;;  %v338_v50 = vadd.f32 1e-05, %v334_v47  ;;  %v336_v51 = vadd.f32 1e-05, %v332_v48 }
 0x10a   : > { %v727_v52 = vpop.eup %617  ;;  %v351_v53 = vmul.f32 %v616_v49, %v337_v43  ;;  %vm357_vm2 = vweird.f32 %v616_v49 }
 0x10b   : > { %v371_v54 = vmul.f32 %v727_v52, %v724_v44  ;;  %619 = vrsqrt.f32 %v338_v50  ;;  %vm358_vm4 = vmor %vm356_vm3, %vm357_vm2  ;;  %vm346_vm7 = vweird.f32 %v336_v51  ;;  %vm377_vm9 = vweird.f32 %v727_v52 }
 0x10c   : > { %v352_v57 = vmul.f32 %v616_v49, %v351_v53  ;;  %621 = vrsqrt.f32 %v336_v51  ;;  %vm366_vm10 = vweird.f32 %v338_v50  ;;  %vm378_vm13 = vmor %vm376_vm5, %vm377_vm9 }
 0x10d   : > { %v372_v60 = vmul.f32 %v727_v52, %v371_v54 }
 0x10e   : > { %v353_v59 = vmul.f32 0.5, %v352_v57 }
 0x10f   : > { %v373_v2 = vmul.f32 0.5, %v372_v60 }
 0x110   : > { %v354_v62 = vsub.f32 1.5, %v353_v59 }
 0x111   : > { %v620_v63 = vpop.eup %619  ;;  %v374_v11 = vsub.f32 1.5, %v373_v2 }
 0x112   : > { %v622_v0 = vpop.eup %621  ;;  %v355_v1 = vmul.f32 %v616_v49, %v354_v62  ;;  %v361_v3 = vmul.f32 %v620_v63, %v338_v50  ;;  %vm367_vm6 = vweird.f32 %v620_v63  ;;  %v612_v50 = vld [vmem:[%s804_s6] ss:$0 sm:$0xff] }
 0x113   : > { %v341_v4 = vmul.f32 %v622_v0, %v336_v51  ;;  %vm347_vm8 = vweird.f32 %v622_v0  ;;  %v375_v18 = vmul.f32 %v727_v52, %v374_v11  ;;  %vm368_vm11 = vmor %vm366_vm10, %vm367_vm6 }
 0x114   : > { %v359_v6 = vsel %vm358_vm4, %v616_v49, %v355_v1  ;;  %v362_v7 = vmul.f32 %v620_v63, %v361_v3  ;;  %vm348_vm12 = vmor %vm346_vm7, %vm347_vm8 }
 0x115   : > { %v342_v8 = vmul.f32 %v622_v0, %v341_v4  ;;  %v381_v9 = vmul.f32 %v359_v6, %v694_v20  ;;  %v379_v25 = vsel %vm378_vm13, %v727_v52, %v375_v18 }
 0x116   : > { %v363_v12 = vmul.f32 0.5, %v362_v7  ;;  %v383_v32 = vmul.f32 %v379_v25, %v692_v19  ;;  %v452_v19 = vld [vmem:[%s803_s5 + $0x8] sm:$0xff] }
 0x117   : > { %v343_v13 = vmul.f32 0.5, %v342_v8  ;;  %v388_v14 = vmul.f32 %v609_v5, %v381_v9 }
 0x118   : > { %v364_v15 = vsub.f32 1.5, %v363_v12  ;;  %v390_v34 = vmul.f32 %v609_v5, %v383_v32 }
 0x119   : > { %v344_v16 = vsub.f32 1.5, %v343_v13  ;;  %v752_v17 = vadd.f32 %v610_v10, %v388_v14 }
 0x11a   : > { %v365_v20 = vmul.f32 %v620_v63, %v364_v15  ;;  %v397_v35 = vadd.f32 %v610_v10, %v390_v34 }
 0x11b   : > { %v345_v21 = vmul.f32 %v622_v0, %v344_v16  ;;  %579 = vmatmul.msk.f32.vlgmr.msra.gmra.mxu3 %vm288_vm0, %v752_v17 }
 0x11c   : > { %v369_v22 = vsel %vm368_vm11, %v620_v63, %v365_v20 }
 0x11d   : > { %v349_v23 = vsel %vm348_vm12, %v622_v0, %v345_v21  ;;  %v382_v24 = vmul.f32 %v369_v22, %v702_v29  ;;  %v454_v29 = vld [vmem:[%s803_s5 + $0x18] sm:$0xff] }
 0x11e   : > { %v380_v26 = vmul.f32 %v349_v23, %v704_v30  ;;  %488 = vmatpush.msra.mxu1 %v454_v29  ;;  %596 = vmatpush.msra.mxu2 %v454_v29  ;;  %v453_v30 = vld [vmem:[%s803_s5 + $0x10] sm:$0xff] }
 0x11f   : > { %v389_v27 = vmul.f32 %v609_v5, %v382_v24 }
 0x120   : > { %v387_v28 = vmul.f32 %v609_v5, %v380_v26  ;;  %489 = vmatpush.msra.mxu1 %v453_v30  ;;  %597 = vmatpush.msra.mxu2 %v453_v30 }
 0x121   : > { %v396_v31 = vadd.f32 %v610_v10, %v389_v27 }
 0x122   : > { %v394_v33 = vadd.f32 %v610_v10, %v387_v28  ;;  %490 = vmatpush.msra.mxu1 %v452_v19  ;;  %598 = vmatpush.msra.mxu2 %v452_v19 }
 0x123   : > { %580 = vmatmul.msk.f32.gmra.mxu3 %vm288_vm0, %v396_v31 }
 0x124   : > { %578 = vmatmul.msk.f32.vlgmr.msra.gmra.mxu0 %vm288_vm0, %v394_v33  ;;  %491 = vmatpush.msra.mxu1 %v451_v36 }
 0x125   : > { %599 = vmatpush.msra.mxu2 %v451_v36 }
 0x12b   : > { %581 = vmatmul.msk.f32.gmra.mxu3 %vm288_vm0, %v397_v35 }
 0x19e   : > { %v438_v37 = vpop.f32.mrf.mxu3 }
 0x19f   : > { %v439_v44 = vadd.f32 %v611_v38, %v438_v37 }
 0x1a1   : > { %v435_v39 = vpop.f32.mrf.mxu0  ;;  %v448_v46 = vmax.f32 %v439_v44, 0.0 }
 0x1a2   : > { %v436_v40 = vadd.f32 %v611_v38, %v435_v39 }
 0x1a4   : > { %v447_v41 = vmax.f32 %v436_v40, 0.0 }
 0x1a6   : > { %582 = vmatmul.msk.f32.vlgmr.msra.gmra.mxu1 %vm463_vm14, %v447_v41  ;;  %v441_v42 = vpop.f32.mrf.mxu3 }
 0x1a7   : > { %v442_v43 = vadd.f32 %v611_v38, %v441_v42 }
 0x1a9   : > { %v449_v45 = vmax.f32 %v442_v43, 0.0 }
 0x1ab   : > { %584 = vmatmul.msk.f32.vlgmr.msra.gmra.mxu2 %vm463_vm14, %v449_v45 }
 0x1ae   : > { %583 = vmatmul.msk.f32.gmra.mxu1 %vm463_vm14, %v448_v46  ;;  %v444_v47 = vpop.f32.mrf.mxu3 }
 0x1af   : > { %v445_v48 = vadd.f32 %v611_v38, %v444_v47 }
 0x1b1   : > { %v450_v49 = vmax.f32 %v445_v48, 0.0 }
 0x1b3   : > { %585 = vmatmul.msk.f32.gmra.mxu2 %vm463_vm14, %v450_v49 }
 0x223   : > { %v493_v51 = vpop.f32.mrf.mxu1 }
 0x224   : > { %v494_v52 = vadd.f32 %v612_v50, %v493_v51 }
 0x226   : > { %v505_v53 = vadd.f32 %v494_v52, %v394_v33 }
 0x228   : > { %509 = vst.msk [vmem:[%s280_s22] sm:$0xff] %vm288_vm0, %v505_v53 }
 0x22b   : > { %v496_v54 = vpop.f32.mrf.mxu1 }
 0x22c   : > { %v497_v55 = vadd.f32 %v612_v50, %v496_v54 }
 0x22e   : > { %v506_v56 = vadd.f32 %v497_v55, %v752_v17  ;;  %v499_v57 = vpop.f32.mrf.mxu2 }
 0x22f   : > { %v500_v58 = vadd.f32 %v612_v50, %v499_v57 }
 0x230   : > { %510 = vst.msk [vmem:[%s280_s22 + $0x8] sm:$0xff] %vm288_vm0, %v506_v56 }
 0x231   : > { %v507_v59 = vadd.f32 %v500_v58, %v396_v31 }
 0x233   : > { %511 = vst.msk [vmem:[%s280_s22 + $0x10] sm:$0xff] %vm288_vm0, %v507_v59 }
 0x236   : > { %v502_v60 = vpop.f32.mrf.mxu2 }
 0x237   : > { %v503_v61 = vadd.f32 %v612_v50, %v502_v60 }
 0x239   : > { %v508_v62 = vadd.f32 %v503_v61, %v397_v35 }
 0x23b   : > { %512 = vst.msk [vmem:[%s280_s22 + $0x18] sm:$0xff] %vm288_vm0, %v508_v62 }
 0x23c PF: > { %s17_s24 = sadd.s32 1, %s629_s24  }
 0x23d   : > { %p14_p4 = scmp.ge.s32.totalorder %s17_s24, 4  }
 0x23f   :  { %16 = sbr.rel (!%p14_p4) target bundleno = 1 (0x1), region = 78 }

// kernel: coattention_encoder.6
= control target key start
LH: loop header
LB: loop body
LE: loop exit
PB: predicated region body
PF: predicated region fallthrough
CT: control target
= control target key end

     0   :  { %8 = vsyncpa [#allocation3], 0  ;;  %s638_s0 = inlined_call_operand.hbm [shape: f32[2,4,8,16], index: 0, kind: input, shape index: {}]   ;;  %s639_s1 = inlined_call_operand.vmem [shape: f32[16,32], index: 1, kind: input, shape index: {}]   ;;  %s640_s2 = inlined_call_operand.vmem [shape: f32[1,32], index: 2, kind: input, shape index: {}]   ;;  %s641_s3 = inlined_call_operand.vmem [shape: f32[2,8,128], index: 3, kind: output, shape index: {}]  }
   0x1   :  { %10 = vsyncpa [#allocation3 + $0x1], 0  ;;  %s537_s12 = smov 0   ;;  %s539_s13 = smov 0  }
   0x2   :  { %s541_s14 = smov 0   ;;  %s543_s15 = smov 0  }
   0x3 LB: > { %s556_s16 = sadd.s32 4294967295, %s510_s15   ;;  %s559_s17 = sadd.s32 1, %s510_s15   ;;  %s510_s15 = sphi %s543_s15, %s648_s15   ;;  %s506_s14 = sphi %s541_s14, %s647_s14   ;;  %s502_s13 = sphi %s539_s13, %s646_s13   ;;  %s498_s12 = sphi %s537_s12, %s645_s12  }
   0x4   : > { %s20_s18 = ssub.s32 %s510_s15, %s559_s17  ;;  %s23_s19 = sadd.s32 1, %s506_s14 }
   0x5   : > { %p21_p0 = scmp.eq.s32.totalorder %s20_s18, 0  ;;  %p30_p1 = scmp.ne.s32.totalorder %s506_s14, %s502_s13 }
   0x6   : > { %p31_p2 = scmp.eq.s32.totalorder %s510_s15, 0  ;;  %p36_p3 = scmp.ne.s32.totalorder %s502_s13, %s498_s12 }
   0x7   : > { %s569_s20 = scalar_select %p21_p0, %s506_s14, %s23_s19  }
   0x8   : > { %p571_p4 = por %p31_p2, %p30_p1  ;;  %p37_p5 = scmp.eq.s32.totalorder %s556_s16, 0 }
   0x9   : > { %p407_p6 = scmp.lt.s32.totalorder %s510_s15, 2  ;;  %s134_s23 = sand.u32 1, %s506_s14  }
   0xa   : > { %p577_p7 = por %p37_p5, %p36_p3  ;;  %s385_s24 = sshll.u32 %s134_s23, 5 }
   0xb   : > { %s400_s25 = sshll.u32 %s510_s15, 5  ;;  %s138_s29 = scalar_lea.vmem [#allocation2], %s385_s24 }
   0xc   : > { %s143_s28 = scalar_lea.hbm %s638_s0, %s400_s25  ;;  %s146_s30 = sshll.u32 %s138_s29, 4  ;;  %s147_s30 = int_to_ptr.vmem [resolvable:$true] %s146_s30 }
   0xd   : > { %s144_s4 = sshll.u32 %s143_s28, 4  ;;  %p588_p8 = pnand %p407_p6, %p571_p4  ;;  %s145_s4 = int_to_ptr.hbm [resolvable:$true] %s144_s4 }
   0xe   : > { %p388_p9 = scmp.ge.s32.totalorder %s510_s15, 1  ;;  %s135_s6 = scalar_lea.sflag [#allocation3], %s134_s23 }
   0xf   : > { %s446_s7 = sshra.s32 %s145_s4, 4  ;;  %p450_p11 = pneg %p588_p8  ;;  %s447_s7 = int_to_ptr.hbm [resolvable:$true] %s446_s7 }
  0x10   : > { %s448_s8 = scalar_lea.hbm %s447_s7, 32  ;;  %s453_s11 = scalar_lea.hbm %s638_s0, 64 }
  0x11   : > { %p449_p10 = scmp.ne.s32.totalorder %s447_s7, %s448_s8  ;;  %p454_p0 = scmp.lt.s32.totalorder %s447_s7, %s638_s0 }
  0x12   : > { %p455_p1 = scmp.lt.s32.totalorder %s453_s11, %s448_s8 }
  0x13   : > { %p451_p12 = pnand %p450_p11, %p449_p10 }
  0x14   : > { %p456_p2 = por %p455_p1, %p454_p0 }
  0x15   : > { %p452_p13 = pneg %p451_p12 }
  0x17   : > { %p457_p3 = pnand %p456_p2, %p452_p13 }
  0x19   : > { %460 = shalt.err (!%p457_p3)
}
  0x1a   : > { %s512_s19 = smov 128   ;;  %s513_s21 = smov 8  }
  0x1b   : > { %406 = dma.hbm_to_vmem [thread:$0]  (!%p588_p8), %s145_s4, 512, %s147_s30, %s135_s6, %s512_s19, %s512_s19, %s513_s21  }
  0x1c   : > { %p154_p4 = scmp.lt.s32.totalorder %s510_s15, 3 }
  0x1e   : > { %p155_p5 = pnand %p388_p9, %p154_p4 }
  0x1f   : > { %s160_s23 = sand.u32 (!%p155_p5), 1, %s502_s13  }
  0x20   : > { %158 = sbr.rel (%p155_p5) target bundleno = 295 (0x127), region = 32  ;;  %s389_s24 = sshll.u32 (!%p155_p5), %s160_s23, 5 }
  0x21   : > { %s161_s25 = scalar_lea.sflag (!%p155_p5), [#allocation3], %s160_s23  ;;  %s164_s26 = scalar_lea.vmem (!%p155_p5), [#allocation2], %s389_s24 }
  0x25   : > { %493 = dma.done.wait (%p577_p7), %s161_s25, 512  }
  0x26   : > { %495 = vsyncadd (%p577_p7), %s161_s25, 4294966784  ;;  %v192_v0 = vld [vmem:[%s639_s1 + $0x8] sm:$0xff]  ;;  %v191_v1 = vld [vmem:[%s639_s1] sm:$0xff]  ;;  %vm198_vm0 = vcmask 130048   ;;  %p187_p6 = scmp.lt.s32.totalorder %s556_s16, 1  ;;  %vm222_vm1 = vcmask 261120  }
  0x27   : > { %243 = vmatpush.msra.mxu1 %v192_v0  ;;  %274 = vmatpush.msra.mxu2 %v192_v0  ;;  %v392_v2 = vld [vmem:[%s164_s26 + $0x8] sm:$0xff]  ;;  %v394_v3 = vld [vmem:[%s164_s26 + $0x10] sm:$0xff]  ;;  %v396_v4 = vld [vmem:[%s164_s26 + $0x18] sm:$0xff]  ;;  %s514_s8 = smov 32   ;;  %s515_s9 = smov 64   ;;  %vm253_vm2 = vcmask 523520  }
  0x28   : > { %305 = vmatpush.msra.mxu3 %v192_v0  ;;  %216 = vmatpush.msra.mxu0 %v192_v0  ;;  %v194_v5 = vld [vmem:[%s164_s26] sm:$0xff]  ;;  %s650_s16 = smov (!%p187_p6, %s556_s16), 1  ;;  %s516_s10 = smov 96   ;;  %vm284_vm3 = vcmask 785920   ;;  %vm315_vm4 = vcmask 1048320  }
  0x29   : > { %244 = vmatpush.msra.mxu1 %v191_v1  ;;  %275 = vmatpush.msra.mxu2 %v191_v1  ;;  %v445_v6 = vld [vmem:[%s640_s2] ss:$0 sm:$0xff]  ;;  %s390_s4 = sshll.u32 %s650_s16, 3 }
  0x2a   : > { %393 = vmatmul.msk.f32.vlgmr.msra.gmra.mxu1 %vm198_vm0, %v392_v2  ;;  %395 = vmatmul.msk.f32.vlgmr.msra.gmra.mxu2 %vm198_vm0, %v394_v3  ;;  %s190_s7 = scalar_lea.vmem %s641_s3, %s390_s4 }
  0x2b   : > { %306 = vmatpush.msra.mxu3 %v191_v1  ;;  %217 = vmatpush.msra.mxu0 %v191_v1 }
  0x2c   : > { %397 = vmatmul.msk.f32.vlgmr.msra.gmra.mxu3 %vm198_vm0, %v396_v4  ;;  %391 = vmatmul.msk.f32.vlgmr.msra.gmra.mxu0 %vm198_vm0, %v194_v5 }
  0xa7   : > { %v246_v7 = vpop.f32.mrf.mxu1 }
  0xa8   : > { %v247_v8 = vadd.f32 %v445_v6, %v246_v7 }
  0xa9   : > { %v219_v9 = vpop.f32.mrf.mxu0 }
  0xaa   : > { %250 = vrot.lane.b32.xlu0 %v247_v8, %s514_s8  ;;  %v220_v10 = vadd.f32 %v445_v6, %v219_v9 }
  0xac   : > { %223 = vst.msk [vmem:[%s190_s7] sm:$0xff] %vm222_vm1, %v220_v10 }
  0xad   : > { %v277_v11 = vpop.f32.mrf.mxu2 }
  0xae   : > { %v278_v12 = vadd.f32 %v445_v6, %v277_v11 }
  0xaf   : > { %v308_v13 = vpop.f32.mrf.mxu3 }
  0xb0   : > { %v309_v14 = vadd.f32 %v445_v6, %v308_v13 }
  0xb2   : > { %281 = vrot.lane.b32.xlu0 %v278_v12, %s515_s9  ;;  %312 = vrot.lane.b32.xlu1 %v309_v14, %s516_s10 }
 0x11c   : > { %v251_v15 = vpop.permute.xlu0 %250 }
 0x11d   : > { %254 = vst.msk [vmem:[%s190_s7] sm:$0xff] %vm253_vm2, %v251_v15 }
 0x124   : > { %v282_v16 = vpop.permute.xlu0 %281  ;;  %v313_v17 = vpop.permute.xlu1 %312 }
 0x125   : > { %285 = vst.msk [vmem:[%s190_s7] sm:$0xff] %vm284_vm3, %v282_v16 }
 0x126   : > { %316 = vst.msk [vmem:[%s190_s7] sm:$0xff] %vm315_vm4, %v313_v17 }
 0x127 PF: > { %p13_p7 = scmp.ge.s32.totalorder %s559_s17, 4   ;;  %s645_s12 = smov %s502_s13 }
 0x128   : > { %s646_s13 = smov %s506_s14  ;;  %s647_s14 = smov %s569_s20 }
 0x129   : > { %s648_s15 = smov %s559_s17  ;;  %15 = sbr.rel (!%p13_p7) target bundleno = 3 (0x3), region = 75 }
 0x12e   :  { %336 = vsyncpa [#allocation3], 1 }
 0x12f   :  { %338 = vsyncpa [#allocation3 + $0x1], 1 }

// kernel: coattention_encoder.7
= control target key start
LH: loop header
LB: loop body
LE: loop exit
PB: predicated region body
PF: predicated region fallthrough
CT: control target
= control target key end

     0   :  { %12 = vsyncpa [#allocation3], 0  ;;  %s2610_s0 = inlined_call_operand.vmem [shape: f32[2,8,128], index: 0, kind: input, shape index: {}]   ;;  %s2611_s1 = inlined_call_operand.vmem [shape: f32[1,32], index: 1, kind: input, shape index: {}]   ;;  %s2612_s2 = inlined_call_operand.vmem [shape: f32[1,32], index: 2, kind: input, shape index: {}]   ;;  %s2613_s3 = inlined_call_operand.hbm [shape: f32[32,96], index: 3, kind: input, shape index: {}]   ;;  %s2614_s4 = inlined_call_operand.vmem [shape: f32[1,96], index: 4, kind: input, shape index: {}]   ;;  %s2615_s5 = inlined_call_operand.hbm [shape: f32[32,32], index: 5, kind: input, shape index: {}]   ;;  %s2616_s6 = inlined_call_operand.vmem [shape: f32[1,32], index: 6, kind: input, shape index: {}]   ;;  %s2617_s7 = inlined_call_operand.vmem [shape: f32[2,8,128], index: 7, kind: output, shape index: {}]  }
   0x1   :  { %13 = vsyncpa [#allocation5], 0  ;;  %s2271_s24 = smov 0  }
   0x2 LB: > { %s219_s27 = sshll.u32 %s2613_s3, 4  ;;  %s1983_s28 = sadd.s32 4294967295, %s2212_s24   ;;  %s2212_s24 = sphi %s2271_s24, %s19_s24   ;;  %s220_s27 = int_to_ptr.hbm [resolvable:$true] %s219_s27 }
   0x3   : > { %p1985_p0 = scmp.ge.s32.totalorder %s2212_s24, 1  ;;  %p202_p1 = scmp.lt.s32.totalorder %s2212_s24, 3 }
   0x4   : > { %p2079_p2 = scmp.eq.s32.totalorder %s1983_s28, 0  ;;  %s2214_s30 = smov [#allocation2]  }
   0x5   : > { %p2282_p3 = pnand %p1985_p0, %p202_p1  ;;  %s221_s8 = sshll.u32 %s2214_s30, 4  ;;  %s222_s8 = int_to_ptr.vmem [resolvable:$true] %s221_s8 }
   0x6   : > { %s236_s11 = sshll.u32 %s2615_s5, 4  ;;  %s2215_s12 = smov [#allocation4]   ;;  %s237_s11 = int_to_ptr.hbm [resolvable:$true] %s236_s11 }
   0x7   : > { %p2072_p4 = pneg %p2282_p3  ;;  %s238_s13 = sshll.u32 %s2215_s12, 4  ;;  %s239_s13 = int_to_ptr.vmem [resolvable:$true] %s238_s13 }
   0x8   : > { %s2216_s14 = smov 128   ;;  %s2217_s15 = smov 8  }
   0x9   : > { %p2073_p5 = pnand %p2079_p2, %p2072_p4  ;;  %264 = sbr.rel (%p2282_p3) target bundleno = 1853 (0x73d), region = 48 }
   0xb   : > { %2075 = dma.hbm_to_vmem [thread:$0]  (!%p2073_p5), %s220_s27, 512, %s222_s8, [#allocation3], %s2216_s14, %s2216_s14, %s2217_s15  }
   0xc   : > { %2078 = dma.hbm_to_vmem [thread:$0]  (!%p2073_p5), %s237_s11, 512, %s239_s13, [#allocation5], %s2216_s14, %s2216_s14, %s2217_s15  }
   0xe   : > { %2203 = dma.done.wait (%p2079_p2), [#allocation3], 512  }
   0xf   : > { %2205 = vsyncadd (%p2079_p2), [#allocation3], 4294966784 }
  0x10   : > { %2207 = dma.done.wait (%p2079_p2), [#allocation5], 512  }
  0x11   : > { %2209 = vsyncadd (%p2079_p2), [#allocation5], 4294966784  ;;  %p300_p6 = scmp.lt.s32.totalorder %s1983_s28, 1  ;;  %s2218_s20 = smov 96   ;;  %vm321_vm0 = vcmask 261120   ;;  %v2221_v7 = vmov 32.0  }
  0x12   : > { %s2219_s21 = smov 32   ;;  %s2220_s22 = smov 64   ;;  %2112 = vrcp.f32 %v2221_v7  ;;  %v2315_v12 = vld [vmem:[%s2611_s1] ss:$0 sm:$0xff]  ;;  %vm577_vm14 = vcmask 64512   ;;  %vm1486_vm15 = vcmask 523520  }
  0x13   : > { %s2620_s28 = smov (!%p300_p6, %s1983_s28), 1  ;;  %v2340_v27 = vld [vmem:[%s2612_s2] ss:$0 sm:$0xff]  ;;  %s2222_s8 = smov 72  }
  0x14   : > { %s1992_s16 = sshll.u32 %s2620_s28, 3  ;;  %s2223_s9 = smov 80  }
  0x15   : > { %s303_s19 = scalar_lea.vmem %s2610_s0, %s1992_s16  ;;  %s2224_s10 = smov 88  }
  0x16   : > { %v320_v0 = vld [vmem:[%s303_s19] sm:$0xff]  ;;  %s2225_s11 = smov 112   ;;  %s2226_s12 = smov 120  }
  0x17   : > { %386 = vrot.lane.b32.xlu0 %v320_v0, %s2218_s20  ;;  %510 = vrot.lane.b32.xlu1 %v320_v0, %s2219_s21  ;;  %v322_v28 = vsel %vm321_vm0, %v320_v0, 0.0  ;;  %s2227_s13 = smov 104   ;;  %s2228_s14 = smov 40  }
  0x18   : > { %v2113_v8 = vpop.eup %2112  ;;  %s2229_s15 = smov 48   ;;  %s2230_s17 = smov 56  }
  0x19   : > { %v326_v9 = vmul.f32 32.0, %v2113_v8  ;;  %vm330_vm1 = vweird.f32 %v2113_v8  ;;  %s2588_s26 = scalar_lea.vmem %s2617_s7, %s1992_s16 }
  0x1b   : > { %v327_v10 = vsub.f32 1.0, %v326_v9 }
  0x1d   : > { %v328_v11 = vmul.f32 %v2113_v8, %v327_v10 }
  0x1f   : > { %448 = vrot.lane.b32.xlu0 %v320_v0, %s2220_s22  ;;  %v329_v13 = vadd.f32 %v2113_v8, %v328_v11 }
  0x21   : > { %v2319_v14 = vsel %vm330_vm1, %v2113_v8, %v329_v13  ;;  %vm1906_vm1 = vcmask 1048320  }
  0x89   : > { %v387_v1 = vpop.permute.xlu0 %386  ;;  %v511_v5 = vpop.permute.xlu1 %510 }
  0x8a   : > { %v389_v2 = vsel %vm321_vm0, %v387_v1, 0.0  ;;  %v513_v6 = vsel %vm321_vm0, %v511_v5, 0.0 }
  0x8b   : > { %390 = vadd.xlane.f32.xlu1 %v389_v2 }
  0x91   : > { %v449_v3 = vpop.permute.xlu0 %448 }
  0x92   : > { %v451_v4 = vsel %vm321_vm0, %v449_v3, 0.0 }
  0x93   : > { %452 = vadd.xlane.f32.xlu2 %v451_v4 }
  0x9b   : > { %514 = vadd.xlane.f32.xlu2 %v513_v6 }
  0xa4   : > { %415 = vrot.lane.b32.xlu1 %v2315_v12, %s2219_s21 }
  0xac   : > { %481 = vrot.lane.b32.xlu1 %v2340_v27, %s2220_s22 }
  0xfe   : > { %v391_v15 = vpop.xlane.xlu1 %390 }
  0xff   : > { %v392_v16 = vmul.f32 %v391_v15, %v2319_v14 }
 0x101   : > { %v2322_v17 = vsub.f32 %v320_v0, %v392_v16 }
 0x103   : > { %v394_v18 = vmul.f32 %v2322_v17, %v2322_v17 }
 0x105   : > { %396 = vrot.lane.b32.xlu0 %v394_v18, %s2218_s20 }
 0x106   : > { %v453_v19 = vpop.xlane.xlu2 %452 }
 0x107   : > { %v454_v20 = vmul.f32 %v453_v19, %v2319_v14 }
 0x109   : > { %v455_v21 = vsub.f32 %v320_v0, %v454_v20 }
 0x10b   : > { %v456_v22 = vmul.f32 %v455_v21, %v455_v21 }
 0x10d   : > { %458 = vrot.lane.b32.xlu2 %v456_v22, %s2220_s22 }
 0x10e   : > { %v515_v23 = vpop.xlane.xlu2 %514 }
 0x10f   : > { %v516_v24 = vmul.f32 %v515_v23, %v2319_v14  ;;  %v313_v23 = vld [vmem:[#allocation2 + $0x18] sm:$0xff] }
 0x110   : > { %377 = vmatpush.msra.mxu0 %v313_v23  ;;  %502 = vmatpush.msra.mxu2 %v313_v23 }
 0x111   : > { %v2330_v25 = vsub.f32 %v320_v0, %v516_v24  ;;  %v312_v24 = vld [vmem:[#allocation2 + $0x10] sm:$0xff]  ;;  %440 = vmatpush.msra.mxu1 %v313_v23  ;;  %564 = vmatpush.msra.mxu3 %v313_v23 }
 0x112   : > { %378 = vmatpush.msra.mxu0 %v312_v24  ;;  %503 = vmatpush.msra.mxu2 %v312_v24 }
 0x113   : > { %v518_v26 = vmul.f32 %v2330_v25, %v2330_v25  ;;  %441 = vmatpush.msra.mxu1 %v312_v24  ;;  %565 = vmatpush.msra.mxu3 %v312_v24 }
 0x115   : > { %520 = vrot.lane.b32.xlu0 %v518_v26, %s2219_s21  ;;  %477 = vrot.lane.b32.xlu2 %v2315_v12, %s2220_s22  ;;  %v311_v26 = vld [vmem:[#allocation2 + $0x8] sm:$0xff] }
 0x116   : > { %v416_v40 = vpop.permute.xlu1 %415  ;;  %379 = vmatpush.msra.mxu0 %v311_v26  ;;  %504 = vmatpush.msra.mxu2 %v311_v26 }
 0x117   : > { %442 = vmatpush.msra.mxu1 %v311_v26  ;;  %566 = vmatpush.msra.mxu3 %v311_v26 }
 0x11e   : > { %v482_v41 = vpop.permute.xlu1 %481 }
 0x13f   : > { %323 = vadd.xlane.f32.xlu0 %v322_v28  ;;  %v310_v28 = vld [vmem:[#allocation2] sm:$0xff] }
 0x140   : > { %380 = vmatpush.msra.mxu0 %v310_v28  ;;  %505 = vmatpush.msra.mxu2 %v310_v28 }
 0x141   : > { %443 = vmatpush.msra.mxu1 %v310_v28  ;;  %567 = vmatpush.msra.mxu3 %v310_v28 }
 0x153   : > { %419 = vrot.lane.b32.xlu0 %v2340_v27, %s2219_s21 }
 0x167   : > { %v459_v29 = vpop.permute.xlu2 %458 }
 0x168   : > { %v461_v30 = vsel %vm321_vm0, %v459_v29, 0.0 }
 0x169   : > { %462 = vadd.xlane.f32.xlu1 %v461_v30 }
 0x16f   : > { %v478_v45 = vpop.permute.xlu2 %477 }
 0x177   : > { %v397_v31 = vpop.permute.xlu0 %396 }
 0x178   : > { %v399_v32 = vsel %vm321_vm0, %v397_v31, 0.0 }
 0x179   : > { %400 = vadd.xlane.f32.xlu2 %v399_v32 }
 0x187   : > { %v521_v33 = vpop.permute.xlu0 %520 }
 0x188   : > { %v523_v34 = vsel %vm321_vm0, %v521_v33, 0.0 }
 0x189   : > { %524 = vadd.xlane.f32.xlu1 %v523_v34 }
 0x191   : > { %543 = vrot.lane.b32.xlu2 %v2340_v27, %s2218_s20 }
 0x1a2   : > { %539 = vrot.lane.b32.xlu1 %v2315_v12, %s2218_s20 }
 0x1b2   : > { %v324_v35 = vpop.xlane.xlu0 %323 }
 0x1b3   : > { %v332_v36 = vmul.f32 %v2319_v14, %v324_v35 }
 0x1b5   : > { %v2355_v37 = vsub.f32 %v320_v0, %v332_v36 }
 0x1b7   : > { %v334_v38 = vmul.f32 %v2355_v37, %v2355_v37 }
 0x1b9   : > { %v335_v39 = vsel %vm321_vm0, %v334_v38, 0.0 }
 0x1ba   : > { %336 = vadd.xlane.f32.xlu0 %v335_v39 }
 0x1c5   : > { %v420_v7 = vpop.permute.xlu0 %419 }
 0x1dc   : > { %v463_v42 = vpop.xlane.xlu1 %462 }
 0x1dd   : > { %v464_v43 = vmul.f32 %v463_v42, %v2319_v14 }
 0x1df   : > { %v465_v44 = vadd.f32 1e-05, %v464_v43 }
 0x1e1   : > { %2114 = vrsqrt.f32 %v465_v44  ;;  %vm472_vm3 = vweird.f32 %v465_v44 }
 0x1e7   : > { %v2115_v46 = vpop.eup %2114 }
 0x1e8   : > { %v467_v47 = vmul.f32 %v2115_v46, %v465_v44  ;;  %vm473_vm2 = vweird.f32 %v2115_v46 }
 0x1e9   : > { %vm474_vm4 = vmor %vm472_vm3, %vm473_vm2 }
 0x1ea   : > { %v468_v48 = vmul.f32 %v2115_v46, %v467_v47 }
 0x1ec   : > { %v469_v49 = vmul.f32 0.5, %v468_v48  ;;  %v401_v50 = vpop.xlane.xlu2 %400 }
 0x1ed   : > { %v402_v51 = vmul.f32 %v401_v50, %v2319_v14 }
 0x1ee   : > { %v470_v52 = vsub.f32 1.5, %v469_v49 }
 0x1ef   : > { %v403_v53 = vadd.f32 1e-05, %v402_v51 }
 0x1f0   : > { %v471_v54 = vmul.f32 %v2115_v46, %v470_v52 }
 0x1f1   : > { %2116 = vrsqrt.f32 %v403_v53  ;;  %vm410_vm6 = vweird.f32 %v403_v53 }
 0x1f2   : > { %v475_v55 = vsel %vm474_vm4, %v2115_v46, %v471_v54 }
 0x1f3   : > { %v476_v56 = vmul.f32 %v475_v55, %v455_v21 }
 0x1f4   : > { %v544_v20 = vpop.permute.xlu2 %543 }
 0x1f5   : > { %v480_v57 = vmul.f32 %v478_v45, %v476_v56 }
 0x1f7   : > { %v2117_v58 = vpop.eup %2116  ;;  %v2362_v59 = vadd.f32 %v482_v41, %v480_v57 }
 0x1f8   : > { %v405_v60 = vmul.f32 %v2117_v58, %v403_v53  ;;  %vm411_vm5 = vweird.f32 %v2117_v58 }
 0x1f9   : > { %486 = vrot.lane.b32.xlu2 %v2362_v59, %s2220_s22  ;;  %vm412_vm7 = vmor %vm410_vm6, %vm411_vm5 }
 0x1fa   : > { %v406_v61 = vmul.f32 %v2117_v58, %v405_v60 }
 0x1fc   : > { %v407_v62 = vmul.f32 0.5, %v406_v61  ;;  %v525_v63 = vpop.xlane.xlu1 %524 }
 0x1fd   : > { %v526_v0 = vmul.f32 %v525_v63, %v2319_v14 }
 0x1fe   : > { %v408_v1 = vsub.f32 1.5, %v407_v62 }
 0x1ff   : > { %v527_v2 = vadd.f32 1e-05, %v526_v0 }
 0x200   : > { %v409_v3 = vmul.f32 %v2117_v58, %v408_v1 }
 0x201   : > { %2118 = vrsqrt.f32 %v527_v2  ;;  %vm534_vm9 = vweird.f32 %v527_v2 }
 0x202   : > { %v413_v4 = vsel %vm412_vm7, %v2117_v58, %v409_v3 }
 0x203   : > { %v414_v5 = vmul.f32 %v413_v4, %v2322_v17 }
 0x205   : > { %v418_v6 = vmul.f32 %v416_v40, %v414_v5 }
 0x207   : > { %v2119_v8 = vpop.eup %2118  ;;  %v2368_v9 = vadd.f32 %v420_v7, %v418_v6 }
 0x208   : > { %v529_v10 = vmul.f32 %v2119_v8, %v527_v2  ;;  %vm535_vm8 = vweird.f32 %v2119_v8 }
 0x209   : > { %424 = vrot.lane.b32.xlu1 %v2368_v9, %s2218_s20  ;;  %vm536_vm10 = vmor %vm534_vm9, %vm535_vm8 }
 0x20a   : > { %v530_v11 = vmul.f32 %v2119_v8, %v529_v10 }
 0x20c   : > { %v531_v13 = vmul.f32 0.5, %v530_v11 }
 0x20e   : > { %v532_v15 = vsub.f32 1.5, %v531_v13 }
 0x210   : > { %v533_v16 = vmul.f32 %v2119_v8, %v532_v15 }
 0x212   : > { %v537_v18 = vsel %vm536_vm10, %v2119_v8, %v533_v16 }
 0x213   : > { %v538_v19 = vmul.f32 %v537_v18, %v2330_v25 }
 0x214   : > { %v540_v17 = vpop.permute.xlu1 %539 }
 0x215   : > { %v542_v21 = vmul.f32 %v540_v17, %v538_v19 }
 0x217   : > { %v2373_v22 = vadd.f32 %v544_v20, %v542_v21 }
 0x219   : > { %548 = vrot.lane.b32.xlu1 %v2373_v22, %s2219_s21 }
 0x22d   : > { %v337_v25 = vpop.xlane.xlu0 %336 }
 0x22e   : > { %v338_v29 = vmul.f32 %v337_v25, %v2319_v14 }
 0x230   : > { %v339_v30 = vadd.f32 1e-05, %v338_v29 }
 0x232   : > { %2120 = vrsqrt.f32 %v339_v30  ;;  %vm346_vm12 = vweird.f32 %v339_v30 }
 0x238   : > { %v2121_v31 = vpop.eup %2120 }
 0x239   : > { %v341_v32 = vmul.f32 %v2121_v31, %v339_v30  ;;  %vm347_vm11 = vweird.f32 %v2121_v31 }
 0x23a   : > { %vm348_vm13 = vmor %vm346_vm12, %vm347_vm11 }
 0x23b   : > { %v342_v33 = vmul.f32 %v2121_v31, %v341_v32 }
 0x23d   : > { %v343_v34 = vmul.f32 0.5, %v342_v33 }
 0x23f   : > { %v344_v35 = vsub.f32 1.5, %v343_v34 }
 0x241   : > { %v345_v36 = vmul.f32 %v2121_v31, %v344_v35 }
 0x243   : > { %v349_v38 = vsel %vm348_vm13, %v2121_v31, %v345_v36 }
 0x244   : > { %v350_v39 = vmul.f32 %v349_v38, %v2355_v37  ;;  %v2110_v37 = vld [vmem:[%s2614_s4] ss:$0 sm:$0xff] }
 0x246   : > { %v354_v40 = vmul.f32 %v2315_v12, %v350_v39 }
 0x248   : > { %v2381_v41 = vadd.f32 %v2340_v27, %v354_v40 }
 0x24a   : > { %1994 = vmatmul.msk.f32.vlgmr.msra.gmra.mxu0 %vm321_vm0, %v2381_v41 }
 0x253   : > { %v487_v14 = vpop.permute.xlu2 %486 }
 0x254   : > { %1996 = vmatmul.msk.f32.vlgmr.msra.gmra.mxu2 %vm321_vm0, %v487_v14 }
 0x27b   : > { %v425_v42 = vpop.permute.xlu1 %424 }
 0x27c   : > { %1995 = vmatmul.msk.f32.vlgmr.msra.gmra.mxu1 %vm321_vm0, %v425_v42 }
 0x28b   : > { %v549_v43 = vpop.permute.xlu1 %548 }
 0x28c   : > { %1997 = vmatmul.msk.f32.vlgmr.msra.gmra.mxu3 %vm321_vm0, %v549_v43 }
 0x2c7   : > { %v382_v12 = vpop.f32.mrf.mxu0 }
 0x2c8   : > { %v2391_v44 = vadd.f32 %v2110_v37, %v382_v12 }
 0x2ca   : > { %602 = vrot.lane.b32.xlu0 %v2391_v44, %s2218_s20  ;;  %659 = vrot.lane.b32.xlu1 %v2391_v44, %s2222_s8 }
 0x2cb   : > { %630 = vrot.lane.b32.xlu2 %v2391_v44, %s2223_s9 }
 0x2d2   : > { %575 = vrot.lane.b32.xlu1 %v2391_v44, %s2224_s10 }
 0x2d3   : > { %628 = vrot.lane.b32.xlu2 %v2391_v44, %s2225_s11 }
 0x2d7   : > { %v507_v46 = vpop.f32.mrf.mxu2 }
 0x2d8   : > { %v2413_v47 = vadd.f32 %v2110_v37, %v507_v46 }
 0x2da   : > { %573 = vrot.lane.b32.xlu1 %v2391_v44, %s2226_s12 }
 0x2db   : > { %657 = vrot.lane.b32.xlu2 %v2391_v44, %s2227_s13 }
 0x2f9   : > { %v445_v27 = vpop.f32.mrf.mxu1 }
 0x2fa   : > { %v2405_v45 = vadd.f32 %v2110_v37, %v445_v27 }
 0x2fc   : > { %727 = vrot.lane.b32.xlu0 %v2405_v45, %s2218_s20  ;;  %784 = vrot.lane.b32.xlu1 %v2405_v45, %s2222_s8 }
 0x2fd   : > { %755 = vrot.lane.b32.xlu2 %v2405_v45, %s2223_s9 }
 0x304   : > { %880 = vrot.lane.b32.xlu0 %v2413_v47, %s2223_s9  ;;  %701 = vrot.lane.b32.xlu1 %v2405_v45, %s2224_s10 }
 0x305   : > { %753 = vrot.lane.b32.xlu2 %v2405_v45, %s2225_s11 }
 0x30c   : > { %826 = vrot.lane.b32.xlu0 %v2413_v47, %s2224_s10  ;;  %699 = vrot.lane.b32.xlu1 %v2405_v45, %s2226_s12 }
 0x30d   : > { %782 = vrot.lane.b32.xlu2 %v2405_v45, %s2227_s13 }
 0x30f   : > { %v569_v48 = vpop.f32.mrf.mxu3 }
 0x310   : > { %v2430_v49 = vadd.f32 %v2110_v37, %v569_v48 }
 0x314   : > { %824 = vrot.lane.b32.xlu0 %v2413_v47, %s2226_s12  ;;  %878 = vrot.lane.b32.xlu1 %v2413_v47, %s2225_s11 }
 0x315   : > { %909 = vrot.lane.b32.xlu2 %v2413_v47, %s2222_s8 }
 0x31c   : > { %1003 = vrot.lane.b32.xlu0 %v2430_v49, %s2225_s11  ;;  %907 = vrot.lane.b32.xlu1 %v2413_v47, %s2227_s13 }
 0x31d   : > { %852 = vrot.lane.b32.xlu2 %v2413_v47, %s2218_s20 }
 0x324   : > { %1032 = vrot.lane.b32.xlu0 %v2430_v49, %s2227_s13  ;;  %1034 = vrot.lane.b32.xlu1 %v2430_v49, %s2222_s8 }
 0x325   : > { %1005 = vrot.lane.b32.xlu2 %v2430_v49, %s2223_s9  ;;  %v631_v50 = vpop.permute.xlu2 %630 }
 0x326   : > { %2002 = vmatpush.xpose.msk.msrb.mxu2 %vm577_vm14, %v631_v50 }
 0x32c   : > { %977 = vrot.lane.b32.xlu1 %v2430_v49, %s2218_s20 }
 0x32d   : > { %951 = vrot.lane.b32.xlu2 %v2430_v49, %s2224_s10  ;;  %v629_v51 = vpop.permute.xlu2 %628 }
 0x32e   : > { %2003 = vmatmul.msk.f32.vlgmr.msrb.gmra.mxu2 %vm577_vm14, %v629_v51 }
 0x335   : > { %949 = vrot.lane.b32.xlu2 %v2430_v49, %s2226_s12  ;;  %v658_v54 = vpop.permute.xlu2 %657 }
 0x33c   : > { %v603_v52 = vpop.permute.xlu0 %602  ;;  %v660_v53 = vpop.permute.xlu1 %659 }
 0x33d   : > { %2000 = vmatpush.xpose.msk.msrb.mxu1 %vm577_vm14, %v603_v52  ;;  %2004 = vmatpush.xpose.msk.msrb.mxu3 %vm577_vm14, %v660_v53 }
 0x340   : > { %2001 = vmatmul.msk.f32.vlgmr.msrb.gmra.mxu1 %vm577_vm14, %v2391_v44  ;;  %2005 = vmatmul.msk.f32.vlgmr.msrb.gmra.mxu3 %vm577_vm14, %v658_v54  ;;  %v2506_v54 = vld [vmem:[%s2616_s6] ss:$0 sm:$0xff] }
 0x344   : > { %v576_v55 = vpop.permute.xlu1 %575 }
 0x345   : > { %1998 = vmatpush.xpose.msk.msrb.mxu0 %vm577_vm14, %v576_v55 }
 0x34c   : > { %v574_v56 = vpop.permute.xlu1 %573 }
 0x34d   : > { %1999 = vmatmul.msk.f32.vlgmr.msrb.gmra.mxu0 %vm577_vm14, %v574_v56 }
 0x357   : > { %v756_v57 = vpop.permute.xlu2 %755 }
 0x358   : > { %2010 = vmatpush.xpose.msk.msra.mxu2 %vm577_vm14, %v756_v57 }
 0x35f   : > { %v754_v58 = vpop.permute.xlu2 %753 }
 0x360   : > { %2011 = vmatmul.msk.f32.vlgmr.msra.gmra.mxu2 %vm577_vm14, %v754_v58 }
 0x367   : > { %v783_v60 = vpop.permute.xlu2 %782 }
 0x36e   : > { %v728_v61 = vpop.permute.xlu0 %727  ;;  %v785_v62 = vpop.permute.xlu1 %784 }
 0x36f   : > { %v910_v63 = vpop.permute.xlu2 %909  ;;  %2008 = vmatpush.xpose.msk.msra.mxu1 %vm577_vm14, %v728_v61  ;;  %2012 = vmatpush.xpose.msk.msra.mxu3 %vm577_vm14, %v785_v62 }
 0x372   : > { %2009 = vmatmul.msk.f32.vlgmr.msra.gmra.mxu1 %vm577_vm14, %v2405_v45  ;;  %2013 = vmatmul.msk.f32.vlgmr.msra.gmra.mxu3 %vm577_vm14, %v783_v60 }
 0x373   : > { %2020 = vmatpush.xpose.msk.msrb.mxu3 %vm577_vm14, %v910_v63 }
 0x376   : > { %v881_v0 = vpop.permute.xlu0 %880  ;;  %v702_v1 = vpop.permute.xlu1 %701 }
 0x377   : > { %v853_v2 = vpop.permute.xlu2 %852  ;;  %2006 = vmatpush.xpose.msk.msra.mxu0 %vm577_vm14, %v702_v1  ;;  %2018 = vmatpush.xpose.msk.msrb.mxu2 %vm577_vm14, %v881_v0 }
 0x378   : > { %2016 = vmatpush.xpose.msk.msrb.mxu1 %vm577_vm14, %v853_v2 }
 0x37b   : > { %2017 = vmatmul.msk.f32.vlgmr.msrb.gmra.mxu1 %vm577_vm14, %v2413_v47 }
 0x37e   : > { %v827_v3 = vpop.permute.xlu0 %826  ;;  %v700_v4 = vpop.permute.xlu1 %699 }
 0x37f   : > { %v1006_v5 = vpop.permute.xlu2 %1005  ;;  %2007 = vmatmul.msk.f32.vlgmr.msra.gmra.mxu0 %vm577_vm14, %v700_v4 }
 0x380   : > { %2014 = vmatpush.xpose.msk.msrb.mxu0 %vm577_vm14, %v827_v3  ;;  %2026 = vmatpush.xpose.msk.msra.mxu2 %vm577_vm14, %v1006_v5 }
 0x386   : > { %v825_v6 = vpop.permute.xlu0 %824  ;;  %v879_v7 = vpop.permute.xlu1 %878 }
 0x387   : > { %v952_v8 = vpop.permute.xlu2 %951  ;;  %2015 = vmatmul.msk.f32.vlgmr.msrb.gmra.mxu0 %vm577_vm14, %v825_v6  ;;  %2019 = vmatmul.msk.f32.vlgmr.msrb.gmra.mxu2 %vm577_vm14, %v879_v7 }
 0x388   : > { %2022 = vmatpush.xpose.msk.msra.mxu0 %vm577_vm14, %v952_v8 }
 0x38e   : > { %v1004_v10 = vpop.permute.xlu0 %1003  ;;  %v908_v11 = vpop.permute.xlu1 %907 }
 0x38f   : > { %v950_v13 = vpop.permute.xlu2 %949  ;;  %2021 = vmatmul.msk.f32.vlgmr.msrb.gmra.mxu3 %vm577_vm14, %v908_v11  ;;  %2027 = vmatmul.msk.f32.vlgmr.msra.gmra.mxu2 %vm577_vm14, %v1004_v10 }
 0x390   : > { %2023 = vmatmul.msk.f32.vlgmr.msra.gmra.mxu0 %vm577_vm14, %v950_v13 }
 0x396   : > { %v1035_v15 = vpop.permute.xlu1 %1034  ;;  %v1033_v16 = vpop.permute.xlu0 %1032 }
 0x397   : > { %2028 = vmatpush.xpose.msk.msra.mxu3 %vm577_vm14, %v1035_v15 }
 0x39a   : > { %2029 = vmatmul.msk.f32.vlgmr.msra.gmra.mxu3 %vm577_vm14, %v1033_v16 }
 0x39e   : > { %v978_v18 = vpop.permute.xlu1 %977 }
 0x39f   : > { %2024 = vmatpush.xpose.msk.msra.mxu1 %vm577_vm14, %v978_v18 }
 0x3a2   : > { %2025 = vmatmul.msk.f32.vlgmr.msra.gmra.mxu1 %vm577_vm14, %v2430_v49 }
 0x3b1   : > { %v653_v21 = vpop.f32.mrf.mxu2 }
 0x3bd   : > { %v625_v19 = vpop.f32.mrf.mxu1 }
 0x3c3   : > { %v682_v24 = vpop.f32.mrf.mxu3 }
 0x3ca   : > { %v599_v17 = vpop.f32.mrf.mxu0 }
 0x3cb   : > { %v626_v20 = vadd.f32 %v625_v19, %v599_v17 }
 0x3cd   : > { %v656_v23 = vadd.f32 %v653_v21, %v626_v20 }
 0x3cf   : > { %v685_v26 = vadd.f32 %v682_v24, %v656_v23 }
 0x3d1   : > { %v686_v28 = vmul.f32 0.17677669, %v685_v26 }
 0x3d3   : > { %v687_v25 = vsel %vm577_vm14, %v686_v28, -inf }
 0x3d4   : > { %688 = vmax.xlane.f32.xlu2 %v687_v25 }
 0x3e3   : > { %v778_v32 = vpop.f32.mrf.mxu2 }
 0x3ec   : > { %1227 = vrot.lane.b32.xlu2 %v2391_v44, %s2228_s14 }
 0x3ef   : > { %v750_v29 = vpop.f32.mrf.mxu1 }
 0x3f4   : > { %1177 = vrot.lane.b32.xlu2 %v2391_v44, %s2229_s15 }
 0x3f5   : > { %v807_v34 = vpop.f32.mrf.mxu3 }
 0x3f8   : > { %v875_v40 = vpop.f32.mrf.mxu1 }
 0x3fc   : > { %v724_v30 = vpop.f32.mrf.mxu0 }
 0x3fd   : > { %v751_v31 = vadd.f32 %v750_v29, %v724_v30 }
 0x3ff   : > { %v781_v33 = vadd.f32 %v778_v32, %v751_v31 }
 0x401   : > { %v810_v35 = vadd.f32 %v807_v34, %v781_v33 }
 0x403   : > { %v811_v36 = vmul.f32 0.17677669, %v810_v35 }
 0x404   : > { %v849_v39 = vpop.f32.mrf.mxu0 }
 0x405   : > { %v812_v38 = vsel %vm577_vm14, %v811_v36, -inf  ;;  %v876_v42 = vadd.f32 %v875_v40, %v849_v39 }
 0x406   : > { %813 = vmax.xlane.f32.xlu1 %v812_v38 }
 0x40a   : > { %v903_v14 = vpop.f32.mrf.mxu2 }
 0x40b   : > { %v906_v43 = vadd.f32 %v903_v14, %v876_v42 }
 0x40d   : > { %v974_v56 = vpop.f32.mrf.mxu0 }
 0x412   : > { %v932_v37 = vpop.f32.mrf.mxu3  ;;  %v1028_v58 = vpop.f32.mrf.mxu2 }
 0x413   : > { %v935_v12 = vadd.f32 %v932_v37, %v906_v43 }
 0x415   : > { %v936_v27 = vmul.f32 0.17677669, %v935_v12 }
 0x417   : > { %v937_v46 = vsel %vm577_vm14, %v936_v27, -inf }
 0x418   : > { %938 = vmax.xlane.f32.xlu1 %v937_v46 }
 0x41d   : > { %v1057_v61 = vpop.f32.mrf.mxu3 }
 0x41f   : > { %v1000_v55 = vpop.f32.mrf.mxu1 }
 0x420   : > { %v1001_v57 = vadd.f32 %v1000_v55, %v974_v56 }
 0x422   : > { %v1031_v60 = vadd.f32 %v1028_v58, %v1001_v57 }
 0x424   : > { %v1060_v62 = vadd.f32 %v1057_v61, %v1031_v60 }
 0x426   : > { %v1061_v63 = vmul.f32 0.17677669, %v1060_v62 }
 0x428   : > { %v1062_v0 = vsel %vm577_vm14, %v1061_v63, -inf }
 0x431   : > { %1127 = vrot.lane.b32.xlu1 %v2391_v44, %s2230_s17 }
 0x439   : > { %1333 = vrot.lane.b32.xlu1 %v2405_v45, %s2230_s17 }
 0x441   : > { %1435 = vrot.lane.b32.xlu1 %v2405_v45, %s2228_s14 }
 0x447   : > { %v689_v48 = vpop.xlane.xlu2 %688 }
 0x448   : > { %v690_v50 = vsub.f32 %v686_v28, %v689_v48  ;;  %v2534_v28 = vld [vmem:[#allocation4] sm:$0xff]  ;;  %v316_v48 = vld [vmem:[#allocation4 + $0x8] sm:$0xff] }
 0x449   : > { %1384 = vrot.lane.b32.xlu1 %v2405_v45, %s2229_s15  ;;  %1121 = vmatpush.msrb.mxu1 %v2534_v28 }
 0x44a   : > { %v691_v51 = vmul.f32 1.442695, %v690_v50  ;;  %1171 = vmatpush.msrb.mxu3 %v316_v48  ;;  %v317_v50 = vld [vmem:[#allocation4 + $0x10] sm:$0xff] }
 0x44b   : > { %1221 = vmatpush.msra.mxu1 %v317_v50 }
 0x44c   : > { %2122 = vpow2.f32 %v691_v51  ;;  %v318_v51 = vld [vmem:[#allocation4 + $0x18] sm:$0xff] }
 0x44d   : > { %1271 = vmatpush.msra.mxu3 %v318_v51 }
 0x44f   : > { %v1228_v4 = vpop.permute.xlu2 %1227 }
 0x451   : > { %1753 = vrot.lane.b32.xlu1 %v2430_v49, %s2230_s17 }
 0x452   : > { %v2123_v52 = vpop.eup %2122 }
 0x453   : > { %v693_v53 = vsel %vm577_vm14, %v2123_v52, 0.0 }
 0x454   : > { %694 = vadd.xlane.f32.xlu0 %v693_v53 }
 0x457   : > { %v1178_v19 = vpop.permute.xlu2 %1177 }
 0x459   : > { %1702 = vrot.lane.b32.xlu1 %v2430_v49, %s2220_s22 }
 0x461   : > { %1698 = vrot.lane.b32.xlu1 %v2506_v54, %s2218_s20 }
 0x468   : > { %1077 = vrot.lane.b32.xlu0 %v2391_v44, %s2220_s22 }
 0x479   : > { %v814_v1 = vpop.xlane.xlu1 %813 }
 0x47a   : > { %v815_v44 = vsub.f32 %v811_v36, %v814_v1 }
 0x47c   : > { %v816_v5 = vmul.f32 1.442695, %v815_v44 }
 0x47e   : > { %2124 = vpow2.f32 %v816_v5 }
 0x484   : > { %v2125_v8 = vpop.eup %2124 }
 0x485   : > { %v818_v11 = vsel %vm577_vm14, %v2125_v8, 0.0 }
 0x48b   : > { %v939_v2 = vpop.xlane.xlu1 %938 }
 0x48c   : > { %v940_v6 = vsub.f32 %v936_v27, %v939_v2 }
 0x48e   : > { %v941_v7 = vmul.f32 1.442695, %v940_v6  ;;  %v1076_v6 = vadd.f32 %v2506_v54, %v2381_v41 }
 0x490   : > { %2126 = vpow2.f32 %v941_v7 }
 0x492   : > { %1063 = vmax.xlane.f32.xlu0 %v1062_v0 }
 0x496   : > { %v2127_v13 = vpop.eup %2126 }
 0x497   : > { %v943_v16 = vsel %vm577_vm14, %v2127_v13, 0.0 }
 0x4a3   : > { %v1128_v3 = vpop.permute.xlu1 %1127 }
 0x4a4   : > { %1148 = vmatpush.msrb.mxu2 %v1128_v3 }
 0x4a6   : > { %1248 = vmatpush.msra.mxu2 %v1228_v4  ;;  %1282 = vrot.lane.b32.xlu0 %v2405_v45, %s2220_s22 }
 0x4ab   : > { %v1334_v25 = vpop.permute.xlu1 %1333 }
 0x4b3   : > { %v1436_v31 = vpop.permute.xlu1 %1435 }
 0x4bb   : > { %v1385_v35 = vpop.permute.xlu1 %1384 }
 0x4c3   : > { %v1754_v42 = vpop.permute.xlu1 %1753 }
 0x4c7   : > { %v695_v10 = vpop.xlane.xlu0 %694 }
 0x4c8   : > { %2128 = vrcp.f32 %v695_v10 }
 0x4cb   : > { %v1703_v12 = vpop.permute.xlu1 %1702 }
 0x4ce   : > { %v2129_v15 = vpop.eup %2128 }
 0x4cf   : > { %v2517_v18 = vmul.f32 %v2129_v15, %v2123_v52 }
 0x4d0   : > { %819 = vadd.xlane.f32.xlu0 %v818_v11 }
 0x4d8   : > { %944 = vadd.xlane.f32.xlu0 %v943_v16 }
 0x4da   : > { %v1078_v45 = vpop.permute.xlu0 %1077 }
 0x4db   : > { %1098 = vmatpush.msrb.mxu0 %v1078_v45 }
 0x4dc   : > { %2030 = vmatmul.msk.f32.vlgmr.msrb.gmra.mxu0 %vm577_vm14, %v2517_v18 }
 0x4dd   : > { %1198 = vmatpush.msra.mxu0 %v1178_v19 }
 0x4ec   : > { %1645 = vrot.lane.b32.xlu0 %v2413_v47, %s2228_s14 }
 0x4f4   : > { %1594 = vrot.lane.b32.xlu0 %v2413_v47, %s2229_s15 }
 0x4fc   : > { %1804 = vrot.lane.b32.xlu0 %v2430_v49, %s2229_s15 }
 0x504   : > { %1488 = vrot.lane.b32.xlu0 %v2506_v54, %s2220_s22 }
 0x505   : > { %v1064_v17 = vpop.xlane.xlu0 %1063 }
 0x506   : > { %v1065_v20 = vsub.f32 %v1061_v63, %v1064_v17 }
 0x508   : > { %v1066_v21 = vmul.f32 1.442695, %v1065_v20 }
 0x50a   : > { %2130 = vpow2.f32 %v1066_v21 }
 0x510   : > { %v2131_v23 = vpop.eup %2130 }
 0x511   : > { %v1068_v24 = vsel %vm577_vm14, %v2131_v23, 0.0 }
 0x512   : > { %1069 = vadd.xlane.f32.xlu2 %v1068_v24 }
 0x518   : > { %v1283_v26 = vpop.permute.xlu0 %1282 }
 0x519   : > { %1300 = vmatpush.msrb.mxu0 %v1283_v26 }
 0x52a   : > { %1543 = vrot.lane.b32.xlu2 %v2413_v47, %s2230_s17 }
 0x532   : > { %1492 = vrot.lane.b32.xlu2 %v2413_v47, %s2220_s22 }
 0x53a   : > { %1855 = vrot.lane.b32.xlu2 %v2430_v49, %s2228_s14 }
 0x542   : > { %1278 = vrot.lane.b32.xlu2 %v2506_v54, %s2219_s21 }
 0x543   : > { %v820_v29 = vpop.xlane.xlu0 %819 }
 0x544   : > { %2132 = vrcp.f32 %v820_v29 }
 0x54a   : > { %v2133_v30 = vpop.eup %2132 }
 0x54b   : > { %v822_v32 = vmul.f32 %v2133_v30, %v2125_v8  ;;  %v945_v33 = vpop.xlane.xlu0 %944 }
 0x54c   : > { %2134 = vrcp.f32 %v945_v33 }
 0x54d   : > { %2032 = vmatmul.msk.f32.vlgmr.msrb.gmra.mxu2 %vm577_vm14, %v822_v32 }
 0x54e   : > { %1351 = vmatpush.msrb.mxu2 %v1334_v25 }
 0x552   : > { %v2135_v47 = vpop.eup %2134 }
 0x553   : > { %v947_v34 = vmul.f32 %v2135_v47, %v2127_v13 }
 0x555   : > { %2034 = vmatmul.msk.f32.vlgmr.msra.gmra.mxu0 %vm577_vm14, %v947_v34 }
 0x556   : > { %1402 = vmatpush.msra.mxu0 %v1385_v35 }
 0x559   : > { %v1100_v49 = vpop.f32.mrf.mxu0 }
 0x55a   : > { %2031 = vmatmul.msk.f32.vlgmr.msrb.gmra.mxu1 %vm577_vm14, %v1100_v49 }
 0x55b   : > { %1323 = vmatpush.msrb.mxu1 %v2534_v28 }
 0x55d   : > { %2038 = vmatmul.msk.f32.vlgmr.msrb.gmra.mxu0 %vm577_vm14, %v2517_v18 }
 0x55e   : > { %v1646_v38 = vpop.permute.xlu0 %1645 }
 0x565   : > { %2042 = vmatmul.msk.f32.vlgmr.msra.gmra.mxu0 %vm577_vm14, %v947_v34 }
 0x566   : > { %v1595_v43 = vpop.permute.xlu0 %1594 }
 0x56e   : > { %v1805_v27 = vpop.permute.xlu0 %1804 }
 0x576   : > { %v1489_v25 = vpop.permute.xlu0 %1488 }
 0x585   : > { %v1070_v36 = vpop.xlane.xlu2 %1069 }
 0x586   : > { %2136 = vrcp.f32 %v1070_v36 }
 0x58c   : > { %v2137_v39 = vpop.eup %2136 }
 0x58d   : > { %v1072_v40 = vmul.f32 %v2137_v39, %v2131_v23  ;;  %v1544_v14 = vpop.permute.xlu2 %1543  ;;  %v1491_v39 = vadd.f32 %v1489_v25, %v2362_v59 }
 0x58f   : > { %2036 = vmatmul.msk.f32.vlgmr.msra.gmra.mxu2 %vm577_vm14, %v1072_v40 }
 0x590   : > { %1453 = vmatpush.msra.mxu2 %v1436_v31 }
 0x595   : > { %v1493_v37 = vpop.permute.xlu2 %1492 }
 0x596   : > { %1510 = vmatpush.msrb.mxu0 %v1493_v37 }
 0x597   : > { %2040 = vmatmul.msk.f32.vlgmr.msrb.gmra.mxu2 %vm577_vm14, %v822_v32  ;;  %2046 = vmatmul.msk.f32.vlgmr.msrb.gmra.mxu0 %vm577_vm14, %v2517_v18 }
 0x598   : > { %1561 = vmatpush.msrb.mxu2 %v1544_v14  ;;  %1612 = vmatpush.msra.mxu0 %v1595_v43 }
 0x59a   : > { %1720 = vmatpush.msrb.mxu0 %v1703_v12 }
 0x59d   : > { %v1856_v46 = vpop.permute.xlu2 %1855 }
 0x59f   : > { %2044 = vmatmul.msk.f32.vlgmr.msra.gmra.mxu2 %vm577_vm14, %v1072_v40  ;;  %2050 = vmatmul.msk.f32.vlgmr.msra.gmra.mxu0 %vm577_vm14, %v947_v34 }
 0x5a0   : > { %1663 = vmatpush.msra.mxu2 %v1646_v38  ;;  %1822 = vmatpush.msra.mxu0 %v1805_v27 }
 0x5a5   : > { %v1279_v29 = vpop.permute.xlu2 %1278 }
 0x5a6   : > { %v1281_v31 = vadd.f32 %v1279_v29, %v2368_v9 }
 0x5a7   : > { %2048 = vmatmul.msk.f32.vlgmr.msrb.gmra.mxu2 %vm577_vm14, %v822_v32  ;;  %2054 = vmatmul.msk.f32.vlgmr.msrb.gmra.mxu0 %vm577_vm14, %v2517_v18 }
 0x5a8   : > { %1771 = vmatpush.msrb.mxu2 %v1754_v42 }
 0x5af   : > { %2052 = vmatmul.msk.f32.vlgmr.msra.gmra.mxu2 %vm577_vm14, %v1072_v40  ;;  %2058 = vmatmul.msk.f32.vlgmr.msra.gmra.mxu0 %vm577_vm14, %v947_v34 }
 0x5b0   : > { %1873 = vmatpush.msra.mxu2 %v1856_v46 }
 0x5b7   : > { %2056 = vmatmul.msk.f32.vlgmr.msrb.gmra.mxu2 %vm577_vm14, %v822_v32 }
 0x5bf   : > { %2060 = vmatmul.msk.f32.vlgmr.msra.gmra.mxu2 %vm577_vm14, %v1072_v40 }
 0x5d0   : > { %v1150_v52 = vpop.f32.mrf.mxu2 }
 0x5d1   : > { %2033 = vmatmul.msk.f32.vlgmr.msrb.gmra.mxu3 %vm577_vm14, %v1150_v52 }
 0x5d2   : > { %v1200_v53 = vpop.f32.mrf.mxu0  ;;  %1374 = vmatpush.msrb.mxu3 %v316_v48 }
 0x5d3   : > { %2035 = vmatmul.msk.f32.vlgmr.msra.gmra.mxu1 %vm577_vm14, %v1200_v53 }
 0x5d4   : > { %1425 = vmatpush.msra.mxu1 %v317_v50 }
 0x5d7   : > { %v1123_v44 = vpop.f32.mrf.mxu1 }
 0x5d8   : > { %v1126_v7 = vadd.f32 %v1123_v44, %v1076_v6 }
 0x5da   : > { %v1302_v55 = vpop.f32.mrf.mxu0 }
 0x5db   : > { %2039 = vmatmul.msk.f32.vlgmr.msrb.gmra.mxu1 %vm577_vm14, %v1302_v55 }
 0x5dc   : > { %1533 = vmatpush.msrb.mxu1 %v2534_v28 }
 0x5e2   : > { %v1404_v56 = vpop.f32.mrf.mxu0 }
 0x5e3   : > { %2043 = vmatmul.msk.f32.vlgmr.msra.gmra.mxu1 %vm577_vm14, %v1404_v56 }
 0x5e4   : > { %1635 = vmatpush.msra.mxu1 %v317_v50 }
 0x612   : > { %v1250_v57 = vpop.f32.mrf.mxu2 }
 0x613   : > { %2037 = vmatmul.msk.f32.vlgmr.msra.gmra.mxu3 %vm577_vm14, %v1250_v57 }
 0x614   : > { %v1512_v58 = vpop.f32.mrf.mxu0  ;;  %1476 = vmatpush.msra.mxu3 %v318_v51 }
 0x615   : > { %2047 = vmatmul.msk.f32.vlgmr.msrb.gmra.mxu1 %vm577_vm14, %v1512_v58 }
 0x616   : > { %1743 = vmatpush.msrb.mxu1 %v2534_v28  ;;  %v1699_v28 = vpop.permute.xlu1 %1698 }
 0x617   : > { %v1701_v46 = vadd.f32 %v1699_v28, %v2373_v22 }
 0x61a   : > { %v1353_v60 = vpop.f32.mrf.mxu2 }
 0x61b   : > { %2041 = vmatmul.msk.f32.vlgmr.msrb.gmra.mxu3 %vm577_vm14, %v1353_v60 }
 0x61c   : > { %v1614_v61 = vpop.f32.mrf.mxu0  ;;  %1584 = vmatpush.msrb.mxu3 %v316_v48 }
 0x61d   : > { %2051 = vmatmul.msk.f32.vlgmr.msra.gmra.mxu1 %vm577_vm14, %v1614_v61 }
 0x61e   : > { %1845 = vmatpush.msra.mxu1 %v317_v50 }
 0x622   : > { %v1455_v62 = vpop.f32.mrf.mxu2 }
 0x623   : > { %2045 = vmatmul.msk.f32.vlgmr.msra.gmra.mxu3 %vm577_vm14, %v1455_v62 }
 0x624   : > { %v1722_v63 = vpop.f32.mrf.mxu0  ;;  %1686 = vmatpush.msra.mxu3 %v318_v51 }
 0x625   : > { %2055 = vmatmul.msk.f32.vlgmr.msrb.gmra.mxu1 %vm577_vm14, %v1722_v63 }
 0x62a   : > { %v1563_v0 = vpop.f32.mrf.mxu2 }
 0x62b   : > { %2049 = vmatmul.msk.f32.vlgmr.msrb.gmra.mxu3 %vm577_vm14, %v1563_v0 }
 0x62c   : > { %v1824_v1 = vpop.f32.mrf.mxu0  ;;  %1794 = vmatpush.msrb.mxu3 %v316_v48 }
 0x62d   : > { %2059 = vmatmul.msk.f32.vlgmr.msra.gmra.mxu1 %vm577_vm14, %v1824_v1 }
 0x632   : > { %v1665_v2 = vpop.f32.mrf.mxu2 }
 0x633   : > { %2053 = vmatmul.msk.f32.vlgmr.msra.gmra.mxu3 %vm577_vm14, %v1665_v2 }
 0x634   : > { %1896 = vmatpush.msra.mxu3 %v318_v51 }
 0x63a   : > { %v1773_v3 = vpop.f32.mrf.mxu2 }
 0x63b   : > { %2057 = vmatmul.msk.f32.vlgmr.msrb.gmra.mxu3 %vm577_vm14, %v1773_v3 }
 0x642   : > { %v1875_v4 = vpop.f32.mrf.mxu2 }
 0x643   : > { %2061 = vmatmul.msk.f32.vlgmr.msra.gmra.mxu3 %vm577_vm14, %v1875_v4 }
 0x650   : > { %v1223_v5 = vpop.f32.mrf.mxu1 }
 0x654   : > { %v1173_v8 = vpop.f32.mrf.mxu3 }
 0x655   : > { %v1176_v10 = vadd.f32 %v1173_v8, %v1126_v7 }
 0x657   : > { %v1226_v11 = vadd.f32 %v1223_v5, %v1176_v10 }
 0x658   : > { %v1325_v13 = vpop.f32.mrf.mxu1 }
 0x659   : > { %1329 = vrot.lane.b32.xlu1 %v1325_v13, %s2219_s21 }
 0x660   : > { %v1427_v15 = vpop.f32.mrf.mxu1 }
 0x661   : > { %1431 = vrot.lane.b32.xlu2 %v1427_v15, %s2219_s21 }
 0x692   : > { %v1535_v16 = vpop.f32.mrf.mxu1 }
 0x693   : > { %1539 = vrot.lane.b32.xlu2 %v1535_v16, %s2220_s22 }
 0x696   : > { %v1273_v41 = vpop.f32.mrf.mxu3 }
 0x697   : > { %v1276_v54 = vadd.f32 %v1273_v41, %v1226_v11 }
 0x699   : > { %1277 = vst.msk [vmem:[%s2588_s26] sm:$0xff] %vm321_vm0, %v1276_v54  ;;  %vm1696_vm0 = vcmask 785920  }
 0x69a   : > { %v1637_v45 = vpop.f32.mrf.mxu1 }
 0x69e   : > { %v1376_v18 = vpop.f32.mrf.mxu3 }
 0x69f   : > { %1380 = vrot.lane.b32.xlu0 %v1376_v18, %s2219_s21 }
 0x6a2   : > { %v1745_v17 = vpop.f32.mrf.mxu1 }
 0x6a6   : > { %v1478_v19 = vpop.f32.mrf.mxu3 }
 0x6a7   : > { %1482 = vrot.lane.b32.xlu1 %v1478_v19, %s2219_s21  ;;  %1641 = vrot.lane.b32.xlu0 %v1637_v45, %s2220_s22 }
 0x6aa   : > { %v1847_v21 = vpop.f32.mrf.mxu1 }
 0x6ae   : > { %v1586_v20 = vpop.f32.mrf.mxu3 }
 0x6af   : > { %1590 = vrot.lane.b32.xlu1 %v1586_v20, %s2220_s22  ;;  %1749 = vrot.lane.b32.xlu0 %v1745_v17, %s2218_s20 }
 0x6b6   : > { %v1688_v23 = vpop.f32.mrf.mxu3 }
 0x6b7   : > { %1692 = vrot.lane.b32.xlu2 %v1688_v23, %s2220_s22  ;;  %1851 = vrot.lane.b32.xlu1 %v1847_v21, %s2218_s20 }
 0x6bb   : > { %v1432_v34 = vpop.permute.xlu2 %1431 }
 0x6be   : > { %v1796_v24 = vpop.f32.mrf.mxu3 }
 0x6bf   : > { %1800 = vrot.lane.b32.xlu2 %v1796_v24, %s2218_s20 }
 0x6c6   : > { %v1898_v26 = vpop.f32.mrf.mxu3 }
 0x6c7   : > { %1902 = vrot.lane.b32.xlu0 %v1898_v26, %s2218_s20 }
 0x6cb   : > { %v1330_v30 = vpop.permute.xlu1 %1329 }
 0x6cc   : > { %v1332_v33 = vadd.f32 %v1330_v30, %v1281_v31 }
 0x6ed   : > { %v1540_v38 = vpop.permute.xlu2 %1539 }
 0x6ee   : > { %v1542_v40 = vadd.f32 %v1540_v38, %v1491_v39 }
 0x711   : > { %v1381_v32 = vpop.permute.xlu0 %1380  ;;  %v1693_v9 = vpop.permute.xlu2 %1692 }
 0x712   : > { %v1383_v47 = vadd.f32 %v1381_v32, %v1332_v33 }
 0x714   : > { %v1434_v35 = vadd.f32 %v1432_v34, %v1383_v47 }
 0x719   : > { %v1483_v49 = vpop.permute.xlu1 %1482  ;;  %v1642_v43 = vpop.permute.xlu0 %1641 }
 0x71a   : > { %v1485_v36 = vadd.f32 %v1483_v49, %v1434_v35  ;;  %v1801_v50 = vpop.permute.xlu2 %1800 }
 0x71c   : > { %1487 = vst.msk [vmem:[%s2588_s26] sm:$0xff] %vm1486_vm15, %v1485_v36 }
 0x721   : > { %v1591_v14 = vpop.permute.xlu1 %1590  ;;  %v1750_v27 = vpop.permute.xlu0 %1749 }
 0x722   : > { %v1593_v42 = vadd.f32 %v1591_v14, %v1542_v40  ;;  %v1752_v48 = vadd.f32 %v1750_v27, %v1701_v46 }
 0x724   : > { %v1644_v37 = vadd.f32 %v1642_v43, %v1593_v42  ;;  %v1803_v52 = vadd.f32 %v1801_v50, %v1752_v48 }
 0x726   : > { %v1695_v12 = vadd.f32 %v1693_v9, %v1644_v37 }
 0x728   : > { %1697 = vst.msk [vmem:[%s2588_s26] sm:$0xff] %vm1696_vm0, %v1695_v12 }
 0x729   : > { %v1852_v51 = vpop.permute.xlu1 %1851 }
 0x72a   : > { %v1854_v53 = vadd.f32 %v1852_v51, %v1803_v52 }
 0x739   : > { %v1903_v59 = vpop.permute.xlu0 %1902 }
 0x73a   : > { %v1905_v55 = vadd.f32 %v1903_v59, %v1854_v53 }
 0x73c   : > { %1907 = vst.msk [vmem:[%s2588_s26] sm:$0xff] %vm1906_vm1, %v1905_v55 }
 0x73d PF: > { %s19_s24 = sadd.s32 1, %s2212_s24  }
 0x73e   : > { %p16_p7 = scmp.ge.s32.totalorder %s19_s24, 4  }
 0x740   :  { %18 = sbr.rel (!%p16_p7) target bundleno = 2 (0x2), region = 87 }
 0x745   :  { %1927 = vsyncpa [#allocation3], 1 }
 0x746   :  { %1929 = vsyncpa [#allocation3 + $0x1], 1 }
 0x747   :  { %1930 = vsyncpa [#allocation5], 1 }

// kernel: coattention_encoder.9
= control target key start
LH: loop header
LB: loop body
LE: loop exit
PB: predicated region body
PF: predicated region fallthrough
CT: control target
= control target key end

     0   :  { %s2116_s24 = smov 0   ;;  %s2460_s0 = inlined_call_operand.vmem [shape: f32[2,8,128], index: 0, kind: input, shape index: {}]   ;;  %s2461_s1 = inlined_call_operand.vmem [shape: f32[1,32], index: 1, kind: input, shape index: {}]   ;;  %s2462_s2 = inlined_call_operand.vmem [shape: f32[1,32], index: 2, kind: input, shape index: {}]   ;;  %s2463_s3 = inlined_call_operand.vmem [shape: f32[32,96], index: 3, kind: input, shape index: {}]   ;;  %s2464_s4 = inlined_call_operand.vmem [shape: f32[1,96], index: 4, kind: input, shape index: {}]   ;;  %s2465_s5 = inlined_call_operand.vmem [shape: f32[32,32], index: 5, kind: input, shape index: {}]   ;;  %s2466_s6 = inlined_call_operand.vmem [shape: f32[1,32], index: 6, kind: input, shape index: {}]   ;;  %s2467_s7 = inlined_call_operand.vmem [shape: f32[2,8,128], index: 7, kind: output, shape index: {}]  }
   0x1 LB: > { %s1927_s25 = sadd.s32 4294967295, %s2061_s24   ;;  %p1931_p0 = scmp.ge.s32.totalorder %s2061_s24, 1  ;;  %s2061_s24 = sphi %s2116_s24, %s17_s24  }
   0x2   : > { %p236_p1 = scmp.lt.s32.totalorder %s2061_s24, 3 }
   0x4   : > { %p237_p2 = pnand %p1931_p0, %p236_p1 }
   0x5   : > { %p266_p3 = scmp.lt.s32.totalorder (!%p237_p2), %s1927_s25, 1  ;;  %s2063_s30 = smov (!%p237_p2), 96  }
   0x6   : > { %240 = sbr.rel (%p237_p2) target bundleno = 1845 (0x735), region = 48  ;;  %s2064_s8 = smov (!%p237_p2), 32  }
   0x7   : > { %s2065_s9 = smov (!%p237_p2), 64   ;;  %s2067_s27 = smov (!%p237_p2), 72  }
   0x8   : > { %s2068_s28 = smov (!%p237_p2), 80   ;;  %s2070_s10 = smov (!%p237_p2), 112  }
   0x9   : > { %s2071_s11 = smov (!%p237_p2), 120   ;;  %s2072_s12 = smov (!%p237_p2), 104  }
   0xa   : > { %s2073_s13 = smov (!%p237_p2), 40   ;;  %s2074_s14 = smov (!%p237_p2), 48  }
   0xb   : > { %s2469_s25 = smov (!%p266_p3, %s1927_s25), 1  ;;  %vm287_vm0 = vcmask 261120   ;;  %v2066_v7 = vmov 32.0   ;;  %v2141_v12 = vld [vmem:[%s2461_s1] ss:$0 sm:$0xff]  ;;  %vm543_vm14 = vcmask 64512  }
   0xc   : > { %s1932_s26 = sshll.u32 %s2469_s25, 3  ;;  %2029 = vrcp.f32 %v2066_v7  ;;  %v2148_v14 = vld [vmem:[%s2462_s2] ss:$0 sm:$0xff]  ;;  %s2075_s15 = smov 56   ;;  %vm1452_vm15 = vcmask 523520  }
   0xd   : > { %s269_s29 = scalar_lea.vmem %s2460_s0, %s1932_s26 }
   0xe   : > { %v286_v0 = vld [vmem:[%s269_s29] sm:$0xff]  ;;  %s2069_s29 = smov 88  }
   0xf   : > { %352 = vrot.lane.b32.xlu0 %v286_v0, %s2063_s30  ;;  %476 = vrot.lane.b32.xlu1 %v286_v0, %s2064_s8  ;;  %v288_v28 = vsel %vm287_vm0, %v286_v0, 0.0 }
  0x12   : > { %v2030_v8 = vpop.eup %2029 }
  0x13   : > { %v292_v9 = vmul.f32 32.0, %v2030_v8  ;;  %vm296_vm1 = vweird.f32 %v2030_v8 }
  0x15   : > { %v293_v10 = vsub.f32 1.0, %v292_v9 }
  0x17   : > { %414 = vrot.lane.b32.xlu0 %v286_v0, %s2065_s9  ;;  %v294_v11 = vmul.f32 %v2030_v8, %v293_v10 }
  0x19   : > { %v295_v13 = vadd.f32 %v2030_v8, %v294_v11 }
  0x1b   : > { %v2150_v15 = vsel %vm296_vm1, %v2030_v8, %v295_v13  ;;  %vm1872_vm1 = vcmask 1048320  }
  0x81   : > { %v353_v1 = vpop.permute.xlu0 %352  ;;  %v477_v5 = vpop.permute.xlu1 %476 }
  0x82   : > { %v355_v2 = vsel %vm287_vm0, %v353_v1, 0.0  ;;  %v479_v6 = vsel %vm287_vm0, %v477_v5, 0.0 }
  0x83   : > { %356 = vadd.xlane.f32.xlu1 %v355_v2 }
  0x89   : > { %v415_v3 = vpop.permute.xlu0 %414 }
  0x8a   : > { %v417_v4 = vsel %vm287_vm0, %v415_v3, 0.0 }
  0x8b   : > { %418 = vadd.xlane.f32.xlu2 %v417_v4 }
  0x93   : > { %480 = vadd.xlane.f32.xlu2 %v479_v6 }
  0x9c   : > { %381 = vrot.lane.b32.xlu1 %v2141_v12, %s2064_s8 }
  0xa4   : > { %447 = vrot.lane.b32.xlu1 %v2148_v14, %s2065_s9 }
  0xf6   : > { %v357_v16 = vpop.xlane.xlu1 %356 }
  0xf7   : > { %v358_v17 = vmul.f32 %v357_v16, %v2150_v15 }
  0xf9   : > { %v2155_v18 = vsub.f32 %v286_v0, %v358_v17 }
  0xfb   : > { %v360_v19 = vmul.f32 %v2155_v18, %v2155_v18 }
  0xfd   : > { %362 = vrot.lane.b32.xlu0 %v360_v19, %s2063_s30 }
  0xfe   : > { %v419_v20 = vpop.xlane.xlu2 %418 }
  0xff   : > { %v420_v21 = vmul.f32 %v419_v20, %v2150_v15 }
 0x101   : > { %v421_v22 = vsub.f32 %v286_v0, %v420_v21 }
 0x103   : > { %v422_v23 = vmul.f32 %v421_v22, %v421_v22 }
 0x105   : > { %424 = vrot.lane.b32.xlu2 %v422_v23, %s2065_s9 }
 0x106   : > { %v481_v24 = vpop.xlane.xlu2 %480 }
 0x107   : > { %v482_v25 = vmul.f32 %v481_v24, %v2150_v15  ;;  %v279_v24 = vld [vmem:[%s2463_s3 + $0x18] sm:$0xff] }
 0x108   : > { %343 = vmatpush.msra.mxu0 %v279_v24  ;;  %468 = vmatpush.msra.mxu2 %v279_v24 }
 0x109   : > { %v2163_v26 = vsub.f32 %v286_v0, %v482_v25  ;;  %v278_v25 = vld [vmem:[%s2463_s3 + $0x10] sm:$0xff]  ;;  %406 = vmatpush.msra.mxu1 %v279_v24  ;;  %530 = vmatpush.msra.mxu3 %v279_v24 }
 0x10a   : > { %344 = vmatpush.msra.mxu0 %v278_v25  ;;  %469 = vmatpush.msra.mxu2 %v278_v25 }
 0x10b   : > { %v484_v27 = vmul.f32 %v2163_v26, %v2163_v26  ;;  %407 = vmatpush.msra.mxu1 %v278_v25  ;;  %531 = vmatpush.msra.mxu3 %v278_v25 }
 0x10d   : > { %486 = vrot.lane.b32.xlu0 %v484_v27, %s2064_s8  ;;  %443 = vrot.lane.b32.xlu2 %v2141_v12, %s2065_s9  ;;  %v276_v27 = vld [vmem:[%s2463_s3] sm:$0xff] }
 0x10e   : > { %v382_v40 = vpop.permute.xlu1 %381 }
 0x116   : > { %v448_v41 = vpop.permute.xlu1 %447 }
 0x137   : > { %289 = vadd.xlane.f32.xlu0 %v288_v28 }
 0x14b   : > { %385 = vrot.lane.b32.xlu0 %v2148_v14, %s2064_s8 }
 0x15f   : > { %v425_v29 = vpop.permute.xlu2 %424 }
 0x160   : > { %v427_v30 = vsel %vm287_vm0, %v425_v29, 0.0 }
 0x161   : > { %428 = vadd.xlane.f32.xlu1 %v427_v30 }
 0x167   : > { %v444_v45 = vpop.permute.xlu2 %443 }
 0x16f   : > { %v363_v31 = vpop.permute.xlu0 %362 }
 0x170   : > { %v365_v32 = vsel %vm287_vm0, %v363_v31, 0.0 }
 0x171   : > { %366 = vadd.xlane.f32.xlu2 %v365_v32 }
 0x17f   : > { %v487_v33 = vpop.permute.xlu0 %486 }
 0x180   : > { %v489_v34 = vsel %vm287_vm0, %v487_v33, 0.0 }
 0x181   : > { %490 = vadd.xlane.f32.xlu1 %v489_v34 }
 0x189   : > { %509 = vrot.lane.b32.xlu2 %v2148_v14, %s2063_s30 }
 0x19a   : > { %505 = vrot.lane.b32.xlu1 %v2141_v12, %s2063_s30 }
 0x1aa   : > { %v290_v35 = vpop.xlane.xlu0 %289 }
 0x1ab   : > { %v298_v36 = vmul.f32 %v2150_v15, %v290_v35 }
 0x1ad   : > { %v2181_v37 = vsub.f32 %v286_v0, %v298_v36 }
 0x1af   : > { %v300_v38 = vmul.f32 %v2181_v37, %v2181_v37 }
 0x1b1   : > { %v301_v39 = vsel %vm287_vm0, %v300_v38, 0.0 }
 0x1b2   : > { %302 = vadd.xlane.f32.xlu0 %v301_v39 }
 0x1bd   : > { %v386_v7 = vpop.permute.xlu0 %385 }
 0x1d4   : > { %v429_v42 = vpop.xlane.xlu1 %428 }
 0x1d5   : > { %v430_v43 = vmul.f32 %v429_v42, %v2150_v15 }
 0x1d7   : > { %v431_v44 = vadd.f32 1e-05, %v430_v43 }
 0x1d9   : > { %2031 = vrsqrt.f32 %v431_v44  ;;  %vm438_vm3 = vweird.f32 %v431_v44 }
 0x1df   : > { %v2032_v46 = vpop.eup %2031 }
 0x1e0   : > { %v433_v47 = vmul.f32 %v2032_v46, %v431_v44  ;;  %vm439_vm2 = vweird.f32 %v2032_v46 }
 0x1e1   : > { %vm440_vm4 = vmor %vm438_vm3, %vm439_vm2 }
 0x1e2   : > { %v434_v48 = vmul.f32 %v2032_v46, %v433_v47 }
 0x1e4   : > { %v435_v49 = vmul.f32 0.5, %v434_v48  ;;  %v367_v50 = vpop.xlane.xlu2 %366 }
 0x1e5   : > { %v368_v51 = vmul.f32 %v367_v50, %v2150_v15 }
 0x1e6   : > { %v436_v52 = vsub.f32 1.5, %v435_v49 }
 0x1e7   : > { %v369_v53 = vadd.f32 1e-05, %v368_v51 }
 0x1e8   : > { %v437_v54 = vmul.f32 %v2032_v46, %v436_v52 }
 0x1e9   : > { %2033 = vrsqrt.f32 %v369_v53  ;;  %vm376_vm6 = vweird.f32 %v369_v53 }
 0x1ea   : > { %v441_v55 = vsel %vm440_vm4, %v2032_v46, %v437_v54 }
 0x1eb   : > { %v442_v56 = vmul.f32 %v441_v55, %v421_v22 }
 0x1ec   : > { %v510_v21 = vpop.permute.xlu2 %509 }
 0x1ed   : > { %v446_v57 = vmul.f32 %v444_v45, %v442_v56 }
 0x1ef   : > { %v2034_v58 = vpop.eup %2033  ;;  %v2188_v59 = vadd.f32 %v448_v41, %v446_v57 }
 0x1f0   : > { %v371_v60 = vmul.f32 %v2034_v58, %v369_v53  ;;  %vm377_vm5 = vweird.f32 %v2034_v58 }
 0x1f1   : > { %452 = vrot.lane.b32.xlu2 %v2188_v59, %s2065_s9  ;;  %vm378_vm7 = vmor %vm376_vm6, %vm377_vm5 }
 0x1f2   : > { %v372_v61 = vmul.f32 %v2034_v58, %v371_v60 }
 0x1f4   : > { %v373_v62 = vmul.f32 0.5, %v372_v61  ;;  %v491_v63 = vpop.xlane.xlu1 %490 }
 0x1f5   : > { %v492_v0 = vmul.f32 %v491_v63, %v2150_v15 }
 0x1f6   : > { %v374_v1 = vsub.f32 1.5, %v373_v62 }
 0x1f7   : > { %v493_v2 = vadd.f32 1e-05, %v492_v0 }
 0x1f8   : > { %v375_v3 = vmul.f32 %v2034_v58, %v374_v1 }
 0x1f9   : > { %2035 = vrsqrt.f32 %v493_v2  ;;  %vm500_vm9 = vweird.f32 %v493_v2 }
 0x1fa   : > { %v379_v4 = vsel %vm378_vm7, %v2034_v58, %v375_v3 }
 0x1fb   : > { %v380_v5 = vmul.f32 %v379_v4, %v2155_v18 }
 0x1fd   : > { %v384_v6 = vmul.f32 %v382_v40, %v380_v5 }
 0x1ff   : > { %v2036_v8 = vpop.eup %2035  ;;  %v2194_v9 = vadd.f32 %v386_v7, %v384_v6 }
 0x200   : > { %v495_v10 = vmul.f32 %v2036_v8, %v493_v2  ;;  %vm501_vm8 = vweird.f32 %v2036_v8 }
 0x201   : > { %390 = vrot.lane.b32.xlu1 %v2194_v9, %s2063_s30  ;;  %vm502_vm10 = vmor %vm500_vm9, %vm501_vm8 }
 0x202   : > { %v496_v11 = vmul.f32 %v2036_v8, %v495_v10 }
 0x204   : > { %v497_v13 = vmul.f32 0.5, %v496_v11 }
 0x206   : > { %v498_v16 = vsub.f32 1.5, %v497_v13 }
 0x208   : > { %v499_v17 = vmul.f32 %v2036_v8, %v498_v16 }
 0x20a   : > { %v503_v19 = vsel %vm502_vm10, %v2036_v8, %v499_v17 }
 0x20b   : > { %v504_v20 = vmul.f32 %v503_v19, %v2163_v26  ;;  %v277_v26 = vld [vmem:[%s2463_s3 + $0x8] sm:$0xff] }
 0x20c   : > { %v506_v18 = vpop.permute.xlu1 %505  ;;  %345 = vmatpush.msra.mxu0 %v277_v26  ;;  %470 = vmatpush.msra.mxu2 %v277_v26 }
 0x20d   : > { %v508_v22 = vmul.f32 %v506_v18, %v504_v20  ;;  %408 = vmatpush.msra.mxu1 %v277_v26  ;;  %532 = vmatpush.msra.mxu3 %v277_v26 }
 0x20e   : > { %346 = vmatpush.msra.mxu0 %v276_v27  ;;  %471 = vmatpush.msra.mxu2 %v276_v27 }
 0x20f   : > { %v2199_v23 = vadd.f32 %v510_v21, %v508_v22  ;;  %409 = vmatpush.msra.mxu1 %v276_v27  ;;  %533 = vmatpush.msra.mxu3 %v276_v27 }
 0x211   : > { %514 = vrot.lane.b32.xlu1 %v2199_v23, %s2064_s8 }
 0x225   : > { %v303_v28 = vpop.xlane.xlu0 %302 }
 0x226   : > { %v304_v29 = vmul.f32 %v303_v28, %v2150_v15 }
 0x228   : > { %v305_v30 = vadd.f32 1e-05, %v304_v29 }
 0x22a   : > { %2037 = vrsqrt.f32 %v305_v30  ;;  %vm312_vm12 = vweird.f32 %v305_v30 }
 0x230   : > { %v2038_v31 = vpop.eup %2037 }
 0x231   : > { %v307_v32 = vmul.f32 %v2038_v31, %v305_v30  ;;  %vm313_vm11 = vweird.f32 %v2038_v31 }
 0x232   : > { %vm314_vm13 = vmor %vm312_vm12, %vm313_vm11 }
 0x233   : > { %v308_v33 = vmul.f32 %v2038_v31, %v307_v32 }
 0x235   : > { %v309_v34 = vmul.f32 0.5, %v308_v33 }
 0x237   : > { %v310_v35 = vsub.f32 1.5, %v309_v34 }
 0x239   : > { %v311_v36 = vmul.f32 %v2038_v31, %v310_v35 }
 0x23b   : > { %v315_v38 = vsel %vm314_vm13, %v2038_v31, %v311_v36 }
 0x23c   : > { %v316_v39 = vmul.f32 %v315_v38, %v2181_v37  ;;  %v2027_v37 = vld [vmem:[%s2464_s4] ss:$0 sm:$0xff] }
 0x23e   : > { %v320_v40 = vmul.f32 %v2141_v12, %v316_v39 }
 0x240   : > { %v2219_v41 = vadd.f32 %v2148_v14, %v320_v40 }
 0x242   : > { %1934 = vmatmul.msk.f32.vlgmr.msra.gmra.mxu0 %vm287_vm0, %v2219_v41 }
 0x24b   : > { %v453_v15 = vpop.permute.xlu2 %452 }
 0x24c   : > { %1936 = vmatmul.msk.f32.vlgmr.msra.gmra.mxu2 %vm287_vm0, %v453_v15 }
 0x273   : > { %v391_v42 = vpop.permute.xlu1 %390 }
 0x274   : > { %1935 = vmatmul.msk.f32.vlgmr.msra.gmra.mxu1 %vm287_vm0, %v391_v42 }
 0x283   : > { %v515_v43 = vpop.permute.xlu1 %514 }
 0x284   : > { %1937 = vmatmul.msk.f32.vlgmr.msra.gmra.mxu3 %vm287_vm0, %v515_v43 }
 0x2bf   : > { %v348_v12 = vpop.f32.mrf.mxu0 }
 0x2c0   : > { %v2229_v44 = vadd.f32 %v2027_v37, %v348_v12 }
 0x2c2   : > { %568 = vrot.lane.b32.xlu0 %v2229_v44, %s2063_s30  ;;  %625 = vrot.lane.b32.xlu1 %v2229_v44, %s2067_s27 }
 0x2c3   : > { %596 = vrot.lane.b32.xlu2 %v2229_v44, %s2068_s28 }
 0x2ca   : > { %541 = vrot.lane.b32.xlu1 %v2229_v44, %s2069_s29 }
 0x2cb   : > { %594 = vrot.lane.b32.xlu2 %v2229_v44, %s2070_s10 }
 0x2cf   : > { %v473_v46 = vpop.f32.mrf.mxu2 }
 0x2d0   : > { %v2251_v47 = vadd.f32 %v2027_v37, %v473_v46 }
 0x2d2   : > { %539 = vrot.lane.b32.xlu1 %v2229_v44, %s2071_s11 }
 0x2d3   : > { %623 = vrot.lane.b32.xlu2 %v2229_v44, %s2072_s12 }
 0x2f1   : > { %v411_v14 = vpop.f32.mrf.mxu1 }
 0x2f2   : > { %v2243_v45 = vadd.f32 %v2027_v37, %v411_v14 }
 0x2f4   : > { %693 = vrot.lane.b32.xlu0 %v2243_v45, %s2063_s30  ;;  %750 = vrot.lane.b32.xlu1 %v2243_v45, %s2067_s27 }
 0x2f5   : > { %721 = vrot.lane.b32.xlu2 %v2243_v45, %s2068_s28 }
 0x2fc   : > { %846 = vrot.lane.b32.xlu0 %v2251_v47, %s2068_s28  ;;  %667 = vrot.lane.b32.xlu1 %v2243_v45, %s2069_s29 }
 0x2fd   : > { %719 = vrot.lane.b32.xlu2 %v2243_v45, %s2070_s10 }
 0x304   : > { %792 = vrot.lane.b32.xlu0 %v2251_v47, %s2069_s29  ;;  %665 = vrot.lane.b32.xlu1 %v2243_v45, %s2071_s11 }
 0x305   : > { %748 = vrot.lane.b32.xlu2 %v2243_v45, %s2072_s12 }
 0x307   : > { %v535_v48 = vpop.f32.mrf.mxu3 }
 0x308   : > { %v2268_v49 = vadd.f32 %v2027_v37, %v535_v48 }
 0x30c   : > { %790 = vrot.lane.b32.xlu0 %v2251_v47, %s2071_s11  ;;  %844 = vrot.lane.b32.xlu1 %v2251_v47, %s2070_s10 }
 0x30d   : > { %875 = vrot.lane.b32.xlu2 %v2251_v47, %s2067_s27 }
 0x314   : > { %969 = vrot.lane.b32.xlu0 %v2268_v49, %s2070_s10  ;;  %873 = vrot.lane.b32.xlu1 %v2251_v47, %s2072_s12 }
 0x315   : > { %818 = vrot.lane.b32.xlu2 %v2251_v47, %s2063_s30 }
 0x31c   : > { %998 = vrot.lane.b32.xlu0 %v2268_v49, %s2072_s12  ;;  %1000 = vrot.lane.b32.xlu1 %v2268_v49, %s2067_s27 }
 0x31d   : > { %971 = vrot.lane.b32.xlu2 %v2268_v49, %s2068_s28  ;;  %v597_v50 = vpop.permute.xlu2 %596 }
 0x31e   : > { %1942 = vmatpush.xpose.msk.msrb.mxu2 %vm543_vm14, %v597_v50 }
 0x324   : > { %943 = vrot.lane.b32.xlu1 %v2268_v49, %s2063_s30 }
 0x325   : > { %917 = vrot.lane.b32.xlu2 %v2268_v49, %s2069_s29  ;;  %v595_v51 = vpop.permute.xlu2 %594 }
 0x326   : > { %1943 = vmatmul.msk.f32.vlgmr.msrb.gmra.mxu2 %vm543_vm14, %v595_v51 }
 0x32d   : > { %915 = vrot.lane.b32.xlu2 %v2268_v49, %s2071_s11  ;;  %v624_v54 = vpop.permute.xlu2 %623  ;;  %s2438_s11 = scalar_lea.vmem %s2467_s7, %s1932_s26 }
 0x334   : > { %v569_v52 = vpop.permute.xlu0 %568  ;;  %v626_v53 = vpop.permute.xlu1 %625 }
 0x335   : > { %1940 = vmatpush.xpose.msk.msrb.mxu1 %vm543_vm14, %v569_v52  ;;  %1944 = vmatpush.xpose.msk.msrb.mxu3 %vm543_vm14, %v626_v53 }
 0x338   : > { %1941 = vmatmul.msk.f32.vlgmr.msrb.gmra.mxu1 %vm543_vm14, %v2229_v44  ;;  %1945 = vmatmul.msk.f32.vlgmr.msrb.gmra.mxu3 %vm543_vm14, %v624_v54  ;;  %v2344_v54 = vld [vmem:[%s2466_s6] ss:$0 sm:$0xff] }
 0x33c   : > { %v542_v55 = vpop.permute.xlu1 %541 }
 0x33d   : > { %1938 = vmatpush.xpose.msk.msrb.mxu0 %vm543_vm14, %v542_v55 }
 0x344   : > { %v540_v56 = vpop.permute.xlu1 %539 }
 0x345   : > { %1939 = vmatmul.msk.f32.vlgmr.msrb.gmra.mxu0 %vm543_vm14, %v540_v56 }
 0x34f   : > { %v722_v57 = vpop.permute.xlu2 %721 }
 0x350   : > { %1950 = vmatpush.xpose.msk.msra.mxu2 %vm543_vm14, %v722_v57 }
 0x357   : > { %v720_v58 = vpop.permute.xlu2 %719 }
 0x358   : > { %1951 = vmatmul.msk.f32.vlgmr.msra.gmra.mxu2 %vm543_vm14, %v720_v58 }
 0x35f   : > { %v749_v60 = vpop.permute.xlu2 %748 }
 0x366   : > { %v694_v61 = vpop.permute.xlu0 %693  ;;  %v751_v62 = vpop.permute.xlu1 %750 }
 0x367   : > { %v876_v63 = vpop.permute.xlu2 %875  ;;  %1948 = vmatpush.xpose.msk.msra.mxu1 %vm543_vm14, %v694_v61  ;;  %1952 = vmatpush.xpose.msk.msra.mxu3 %vm543_vm14, %v751_v62 }
 0x36a   : > { %1949 = vmatmul.msk.f32.vlgmr.msra.gmra.mxu1 %vm543_vm14, %v2243_v45  ;;  %1953 = vmatmul.msk.f32.vlgmr.msra.gmra.mxu3 %vm543_vm14, %v749_v60 }
 0x36b   : > { %1960 = vmatpush.xpose.msk.msrb.mxu3 %vm543_vm14, %v876_v63 }
 0x36e   : > { %v847_v0 = vpop.permute.xlu0 %846  ;;  %v668_v1 = vpop.permute.xlu1 %667 }
 0x36f   : > { %v819_v2 = vpop.permute.xlu2 %818  ;;  %1946 = vmatpush.xpose.msk.msra.mxu0 %vm543_vm14, %v668_v1  ;;  %1958 = vmatpush.xpose.msk.msrb.mxu2 %vm543_vm14, %v847_v0 }
 0x370   : > { %1956 = vmatpush.xpose.msk.msrb.mxu1 %vm543_vm14, %v819_v2 }
 0x373   : > { %1957 = vmatmul.msk.f32.vlgmr.msrb.gmra.mxu1 %vm543_vm14, %v2251_v47 }
 0x376   : > { %v793_v3 = vpop.permute.xlu0 %792  ;;  %v666_v4 = vpop.permute.xlu1 %665 }
 0x377   : > { %v972_v5 = vpop.permute.xlu2 %971  ;;  %1947 = vmatmul.msk.f32.vlgmr.msra.gmra.mxu0 %vm543_vm14, %v666_v4 }
 0x378   : > { %1954 = vmatpush.xpose.msk.msrb.mxu0 %vm543_vm14, %v793_v3  ;;  %1966 = vmatpush.xpose.msk.msra.mxu2 %vm543_vm14, %v972_v5 }
 0x37e   : > { %v791_v6 = vpop.permute.xlu0 %790  ;;  %v845_v7 = vpop.permute.xlu1 %844 }
 0x37f   : > { %v918_v8 = vpop.permute.xlu2 %917  ;;  %1955 = vmatmul.msk.f32.vlgmr.msrb.gmra.mxu0 %vm543_vm14, %v791_v6  ;;  %1959 = vmatmul.msk.f32.vlgmr.msrb.gmra.mxu2 %vm543_vm14, %v845_v7 }
 0x380   : > { %1962 = vmatpush.xpose.msk.msra.mxu0 %vm543_vm14, %v918_v8 }
 0x386   : > { %v970_v10 = vpop.permute.xlu0 %969  ;;  %v874_v11 = vpop.permute.xlu1 %873 }
 0x387   : > { %v916_v13 = vpop.permute.xlu2 %915  ;;  %1961 = vmatmul.msk.f32.vlgmr.msrb.gmra.mxu3 %vm543_vm14, %v874_v11  ;;  %1967 = vmatmul.msk.f32.vlgmr.msra.gmra.mxu2 %vm543_vm14, %v970_v10 }
 0x388   : > { %1963 = vmatmul.msk.f32.vlgmr.msra.gmra.mxu0 %vm543_vm14, %v916_v13 }
 0x38e   : > { %v1001_v16 = vpop.permute.xlu1 %1000  ;;  %v999_v17 = vpop.permute.xlu0 %998 }
 0x38f   : > { %1968 = vmatpush.xpose.msk.msra.mxu3 %vm543_vm14, %v1001_v16 }
 0x392   : > { %1969 = vmatmul.msk.f32.vlgmr.msra.gmra.mxu3 %vm543_vm14, %v999_v17 }
 0x396   : > { %v944_v19 = vpop.permute.xlu1 %943 }
 0x397   : > { %1964 = vmatpush.xpose.msk.msra.mxu1 %vm543_vm14, %v944_v19 }
 0x39a   : > { %1965 = vmatmul.msk.f32.vlgmr.msra.gmra.mxu1 %vm543_vm14, %v2268_v49 }
 0x3a9   : > { %v619_v22 = vpop.f32.mrf.mxu2 }
 0x3b5   : > { %v591_v20 = vpop.f32.mrf.mxu1 }
 0x3bb   : > { %v648_v25 = vpop.f32.mrf.mxu3 }
 0x3c2   : > { %v565_v18 = vpop.f32.mrf.mxu0 }
 0x3c3   : > { %v592_v21 = vadd.f32 %v591_v20, %v565_v18 }
 0x3c5   : > { %v622_v24 = vadd.f32 %v619_v22, %v592_v21 }
 0x3c7   : > { %v651_v26 = vadd.f32 %v648_v25, %v622_v24 }
 0x3c9   : > { %v652_v27 = vmul.f32 0.17677669, %v651_v26 }
 0x3cb   : > { %v653_v28 = vsel %vm543_vm14, %v652_v27, -inf }
 0x3cc   : > { %654 = vmax.xlane.f32.xlu2 %v653_v28 }
 0x3db   : > { %v744_v32 = vpop.f32.mrf.mxu2 }
 0x3e4   : > { %1193 = vrot.lane.b32.xlu2 %v2229_v44, %s2073_s13 }
 0x3e7   : > { %v716_v29 = vpop.f32.mrf.mxu1 }
 0x3ec   : > { %1143 = vrot.lane.b32.xlu2 %v2229_v44, %s2074_s14 }
 0x3ed   : > { %v773_v34 = vpop.f32.mrf.mxu3 }
 0x3f0   : > { %v841_v40 = vpop.f32.mrf.mxu1 }
 0x3f4   : > { %v690_v30 = vpop.f32.mrf.mxu0 }
 0x3f5   : > { %v717_v31 = vadd.f32 %v716_v29, %v690_v30 }
 0x3f7   : > { %v747_v33 = vadd.f32 %v744_v32, %v717_v31 }
 0x3f9   : > { %v776_v35 = vadd.f32 %v773_v34, %v747_v33 }
 0x3fb   : > { %v777_v36 = vmul.f32 0.17677669, %v776_v35 }
 0x3fc   : > { %v815_v39 = vpop.f32.mrf.mxu0 }
 0x3fd   : > { %v778_v38 = vsel %vm543_vm14, %v777_v36, -inf  ;;  %v842_v42 = vadd.f32 %v841_v40, %v815_v39 }
 0x3fe   : > { %779 = vmax.xlane.f32.xlu1 %v778_v38 }
 0x402   : > { %v869_v15 = vpop.f32.mrf.mxu2 }
 0x403   : > { %v872_v43 = vadd.f32 %v869_v15, %v842_v42 }
 0x405   : > { %v940_v56 = vpop.f32.mrf.mxu0 }
 0x40a   : > { %v898_v37 = vpop.f32.mrf.mxu3  ;;  %v994_v58 = vpop.f32.mrf.mxu2 }
 0x40b   : > { %v901_v12 = vadd.f32 %v898_v37, %v872_v43 }
 0x40d   : > { %v902_v14 = vmul.f32 0.17677669, %v901_v12 }
 0x40f   : > { %v903_v46 = vsel %vm543_vm14, %v902_v14, -inf }
 0x410   : > { %904 = vmax.xlane.f32.xlu1 %v903_v46 }
 0x415   : > { %v1023_v61 = vpop.f32.mrf.mxu3 }
 0x417   : > { %v966_v55 = vpop.f32.mrf.mxu1 }
 0x418   : > { %v967_v57 = vadd.f32 %v966_v55, %v940_v56 }
 0x41a   : > { %v997_v60 = vadd.f32 %v994_v58, %v967_v57 }
 0x41c   : > { %v1026_v62 = vadd.f32 %v1023_v61, %v997_v60 }
 0x41e   : > { %v1027_v63 = vmul.f32 0.17677669, %v1026_v62 }
 0x420   : > { %v1028_v0 = vsel %vm543_vm14, %v1027_v63, -inf }
 0x429   : > { %1093 = vrot.lane.b32.xlu1 %v2229_v44, %s2075_s15 }
 0x431   : > { %1299 = vrot.lane.b32.xlu1 %v2243_v45, %s2075_s15 }
 0x439   : > { %1401 = vrot.lane.b32.xlu1 %v2243_v45, %s2073_s13 }
 0x43f   : > { %v655_v48 = vpop.xlane.xlu2 %654 }
 0x440   : > { %v656_v50 = vsub.f32 %v652_v27, %v655_v48  ;;  %v2375_v27 = vld [vmem:[%s2465_s5] sm:$0xff]  ;;  %v282_v48 = vld [vmem:[%s2465_s5 + $0x8] sm:$0xff] }
 0x441   : > { %1350 = vrot.lane.b32.xlu1 %v2243_v45, %s2074_s14  ;;  %1087 = vmatpush.msrb.mxu1 %v2375_v27 }
 0x442   : > { %v657_v51 = vmul.f32 1.442695, %v656_v50  ;;  %1137 = vmatpush.msrb.mxu3 %v282_v48  ;;  %v283_v50 = vld [vmem:[%s2465_s5 + $0x10] sm:$0xff] }
 0x443   : > { %1187 = vmatpush.msra.mxu1 %v283_v50 }
 0x444   : > { %2039 = vpow2.f32 %v657_v51  ;;  %v284_v51 = vld [vmem:[%s2465_s5 + $0x18] sm:$0xff] }
 0x445   : > { %1237 = vmatpush.msra.mxu3 %v284_v51 }
 0x447   : > { %v1194_v4 = vpop.permute.xlu2 %1193 }
 0x449   : > { %1719 = vrot.lane.b32.xlu1 %v2268_v49, %s2075_s15 }
 0x44a   : > { %v2040_v52 = vpop.eup %2039 }
 0x44b   : > { %v659_v53 = vsel %vm543_vm14, %v2040_v52, 0.0 }
 0x44c   : > { %660 = vadd.xlane.f32.xlu0 %v659_v53 }
 0x44f   : > { %v1144_v20 = vpop.permute.xlu2 %1143 }
 0x451   : > { %1668 = vrot.lane.b32.xlu1 %v2268_v49, %s2065_s9 }
 0x459   : > { %1664 = vrot.lane.b32.xlu1 %v2344_v54, %s2063_s30 }
 0x460   : > { %1043 = vrot.lane.b32.xlu0 %v2229_v44, %s2065_s9 }
 0x471   : > { %v780_v1 = vpop.xlane.xlu1 %779 }
 0x472   : > { %v781_v44 = vsub.f32 %v777_v36, %v780_v1 }
 0x474   : > { %v782_v5 = vmul.f32 1.442695, %v781_v44 }
 0x476   : > { %2041 = vpow2.f32 %v782_v5 }
 0x47c   : > { %v2042_v8 = vpop.eup %2041 }
 0x47d   : > { %v784_v11 = vsel %vm543_vm14, %v2042_v8, 0.0 }
 0x483   : > { %v905_v2 = vpop.xlane.xlu1 %904 }
 0x484   : > { %v906_v6 = vsub.f32 %v902_v14, %v905_v2 }
 0x486   : > { %v907_v7 = vmul.f32 1.442695, %v906_v6  ;;  %v1042_v6 = vadd.f32 %v2344_v54, %v2219_v41 }
 0x488   : > { %2043 = vpow2.f32 %v907_v7 }
 0x48a   : > { %1029 = vmax.xlane.f32.xlu0 %v1028_v0 }
 0x48e   : > { %v2044_v13 = vpop.eup %2043 }
 0x48f   : > { %v909_v17 = vsel %vm543_vm14, %v2044_v13, 0.0 }
 0x49b   : > { %v1094_v3 = vpop.permute.xlu1 %1093 }
 0x49c   : > { %1114 = vmatpush.msrb.mxu2 %v1094_v3 }
 0x49e   : > { %1214 = vmatpush.msra.mxu2 %v1194_v4  ;;  %1248 = vrot.lane.b32.xlu0 %v2243_v45, %s2065_s9 }
 0x4a3   : > { %v1300_v28 = vpop.permute.xlu1 %1299 }
 0x4ab   : > { %v1402_v31 = vpop.permute.xlu1 %1401 }
 0x4b3   : > { %v1351_v35 = vpop.permute.xlu1 %1350 }
 0x4bb   : > { %v1720_v42 = vpop.permute.xlu1 %1719 }
 0x4bf   : > { %v661_v10 = vpop.xlane.xlu0 %660 }
 0x4c0   : > { %2045 = vrcp.f32 %v661_v10 }
 0x4c3   : > { %v1669_v12 = vpop.permute.xlu1 %1668 }
 0x4c6   : > { %v2046_v16 = vpop.eup %2045 }
 0x4c7   : > { %v2355_v19 = vmul.f32 %v2046_v16, %v2040_v52 }
 0x4c8   : > { %785 = vadd.xlane.f32.xlu0 %v784_v11 }
 0x4d0   : > { %910 = vadd.xlane.f32.xlu0 %v909_v17 }
 0x4d2   : > { %v1044_v45 = vpop.permute.xlu0 %1043 }
 0x4d3   : > { %1064 = vmatpush.msrb.mxu0 %v1044_v45 }
 0x4d4   : > { %1970 = vmatmul.msk.f32.vlgmr.msrb.gmra.mxu0 %vm543_vm14, %v2355_v19 }
 0x4d5   : > { %1164 = vmatpush.msra.mxu0 %v1144_v20 }
 0x4e4   : > { %1611 = vrot.lane.b32.xlu0 %v2251_v47, %s2073_s13 }
 0x4ec   : > { %1560 = vrot.lane.b32.xlu0 %v2251_v47, %s2074_s14 }
 0x4f4   : > { %1770 = vrot.lane.b32.xlu0 %v2268_v49, %s2074_s14 }
 0x4fc   : > { %1454 = vrot.lane.b32.xlu0 %v2344_v54, %s2065_s9 }
 0x4fd   : > { %v1030_v18 = vpop.xlane.xlu0 %1029 }
 0x4fe   : > { %v1031_v21 = vsub.f32 %v1027_v63, %v1030_v18 }
 0x500   : > { %v1032_v22 = vmul.f32 1.442695, %v1031_v21 }
 0x502   : > { %2047 = vpow2.f32 %v1032_v22 }
 0x508   : > { %v2048_v24 = vpop.eup %2047 }
 0x509   : > { %v1034_v25 = vsel %vm543_vm14, %v2048_v24, 0.0 }
 0x50a   : > { %1035 = vadd.xlane.f32.xlu2 %v1034_v25 }
 0x510   : > { %v1249_v26 = vpop.permute.xlu0 %1248 }
 0x511   : > { %1266 = vmatpush.msrb.mxu0 %v1249_v26 }
 0x522   : > { %1509 = vrot.lane.b32.xlu2 %v2251_v47, %s2075_s15 }
 0x52a   : > { %1458 = vrot.lane.b32.xlu2 %v2251_v47, %s2065_s9 }
 0x532   : > { %1821 = vrot.lane.b32.xlu2 %v2268_v49, %s2073_s13 }
 0x53a   : > { %1244 = vrot.lane.b32.xlu2 %v2344_v54, %s2064_s8 }
 0x53b   : > { %v786_v29 = vpop.xlane.xlu0 %785 }
 0x53c   : > { %2049 = vrcp.f32 %v786_v29 }
 0x542   : > { %v2050_v30 = vpop.eup %2049 }
 0x543   : > { %v788_v32 = vmul.f32 %v2050_v30, %v2042_v8  ;;  %v911_v47 = vpop.xlane.xlu0 %910 }
 0x544   : > { %2051 = vrcp.f32 %v911_v47 }
 0x545   : > { %1972 = vmatmul.msk.f32.vlgmr.msrb.gmra.mxu2 %vm543_vm14, %v788_v32 }
 0x546   : > { %1317 = vmatpush.msrb.mxu2 %v1300_v28 }
 0x54a   : > { %v2052_v33 = vpop.eup %2051 }
 0x54b   : > { %v913_v34 = vmul.f32 %v2052_v33, %v2044_v13 }
 0x54d   : > { %1974 = vmatmul.msk.f32.vlgmr.msra.gmra.mxu0 %vm543_vm14, %v913_v34 }
 0x54e   : > { %1368 = vmatpush.msra.mxu0 %v1351_v35 }
 0x551   : > { %v1066_v49 = vpop.f32.mrf.mxu0 }
 0x552   : > { %1971 = vmatmul.msk.f32.vlgmr.msrb.gmra.mxu1 %vm543_vm14, %v1066_v49 }
 0x553   : > { %1289 = vmatpush.msrb.mxu1 %v2375_v27 }
 0x555   : > { %1978 = vmatmul.msk.f32.vlgmr.msrb.gmra.mxu0 %vm543_vm14, %v2355_v19 }
 0x556   : > { %v1612_v38 = vpop.permute.xlu0 %1611 }
 0x55d   : > { %1982 = vmatmul.msk.f32.vlgmr.msra.gmra.mxu0 %vm543_vm14, %v913_v34 }
 0x55e   : > { %v1561_v43 = vpop.permute.xlu0 %1560 }
 0x566   : > { %v1771_v14 = vpop.permute.xlu0 %1770 }
 0x56e   : > { %v1455_v28 = vpop.permute.xlu0 %1454 }
 0x57d   : > { %v1036_v36 = vpop.xlane.xlu2 %1035 }
 0x57e   : > { %2053 = vrcp.f32 %v1036_v36 }
 0x584   : > { %v2054_v39 = vpop.eup %2053 }
 0x585   : > { %v1038_v40 = vmul.f32 %v2054_v39, %v2048_v24  ;;  %v1510_v15 = vpop.permute.xlu2 %1509  ;;  %v1457_v39 = vadd.f32 %v1455_v28, %v2188_v59 }
 0x587   : > { %1976 = vmatmul.msk.f32.vlgmr.msra.gmra.mxu2 %vm543_vm14, %v1038_v40 }
 0x588   : > { %1419 = vmatpush.msra.mxu2 %v1402_v31 }
 0x58d   : > { %v1459_v37 = vpop.permute.xlu2 %1458 }
 0x58e   : > { %1476 = vmatpush.msrb.mxu0 %v1459_v37 }
 0x58f   : > { %1980 = vmatmul.msk.f32.vlgmr.msrb.gmra.mxu2 %vm543_vm14, %v788_v32  ;;  %1986 = vmatmul.msk.f32.vlgmr.msrb.gmra.mxu0 %vm543_vm14, %v2355_v19 }
 0x590   : > { %1527 = vmatpush.msrb.mxu2 %v1510_v15  ;;  %1578 = vmatpush.msra.mxu0 %v1561_v43 }
 0x592   : > { %1686 = vmatpush.msrb.mxu0 %v1669_v12 }
 0x595   : > { %v1822_v46 = vpop.permute.xlu2 %1821 }
 0x597   : > { %1984 = vmatmul.msk.f32.vlgmr.msra.gmra.mxu2 %vm543_vm14, %v1038_v40  ;;  %1990 = vmatmul.msk.f32.vlgmr.msra.gmra.mxu0 %vm543_vm14, %v913_v34 }
 0x598   : > { %1629 = vmatpush.msra.mxu2 %v1612_v38  ;;  %1788 = vmatpush.msra.mxu0 %v1771_v14 }
 0x59d   : > { %v1245_v29 = vpop.permute.xlu2 %1244 }
 0x59e   : > { %v1247_v31 = vadd.f32 %v1245_v29, %v2194_v9 }
 0x59f   : > { %1988 = vmatmul.msk.f32.vlgmr.msrb.gmra.mxu2 %vm543_vm14, %v788_v32  ;;  %1994 = vmatmul.msk.f32.vlgmr.msrb.gmra.mxu0 %vm543_vm14, %v2355_v19 }
 0x5a0   : > { %1737 = vmatpush.msrb.mxu2 %v1720_v42 }
 0x5a7   : > { %1992 = vmatmul.msk.f32.vlgmr.msra.gmra.mxu2 %vm543_vm14, %v1038_v40  ;;  %1998 = vmatmul.msk.f32.vlgmr.msra.gmra.mxu0 %vm543_vm14, %v913_v34 }
 0x5a8   : > { %1839 = vmatpush.msra.mxu2 %v1822_v46 }
 0x5af   : > { %1996 = vmatmul.msk.f32.vlgmr.msrb.gmra.mxu2 %vm543_vm14, %v788_v32 }
 0x5b7   : > { %2000 = vmatmul.msk.f32.vlgmr.msra.gmra.mxu2 %vm543_vm14, %v1038_v40 }
 0x5c8   : > { %v1116_v52 = vpop.f32.mrf.mxu2 }
 0x5c9   : > { %1973 = vmatmul.msk.f32.vlgmr.msrb.gmra.mxu3 %vm543_vm14, %v1116_v52 }
 0x5ca   : > { %v1166_v53 = vpop.f32.mrf.mxu0  ;;  %1340 = vmatpush.msrb.mxu3 %v282_v48 }
 0x5cb   : > { %1975 = vmatmul.msk.f32.vlgmr.msra.gmra.mxu1 %vm543_vm14, %v1166_v53 }
 0x5cc   : > { %1391 = vmatpush.msra.mxu1 %v283_v50 }
 0x5cf   : > { %v1089_v44 = vpop.f32.mrf.mxu1 }
 0x5d0   : > { %v1092_v7 = vadd.f32 %v1089_v44, %v1042_v6 }
 0x5d2   : > { %v1268_v55 = vpop.f32.mrf.mxu0 }
 0x5d3   : > { %1979 = vmatmul.msk.f32.vlgmr.msrb.gmra.mxu1 %vm543_vm14, %v1268_v55 }
 0x5d4   : > { %1499 = vmatpush.msrb.mxu1 %v2375_v27 }
 0x5da   : > { %v1370_v56 = vpop.f32.mrf.mxu0 }
 0x5db   : > { %1983 = vmatmul.msk.f32.vlgmr.msra.gmra.mxu1 %vm543_vm14, %v1370_v56 }
 0x5dc   : > { %1601 = vmatpush.msra.mxu1 %v283_v50 }
 0x60a   : > { %v1216_v57 = vpop.f32.mrf.mxu2 }
 0x60b   : > { %1977 = vmatmul.msk.f32.vlgmr.msra.gmra.mxu3 %vm543_vm14, %v1216_v57 }
 0x60c   : > { %v1478_v58 = vpop.f32.mrf.mxu0  ;;  %1442 = vmatpush.msra.mxu3 %v284_v51 }
 0x60d   : > { %1987 = vmatmul.msk.f32.vlgmr.msrb.gmra.mxu1 %vm543_vm14, %v1478_v58 }
 0x60e   : > { %1709 = vmatpush.msrb.mxu1 %v2375_v27  ;;  %v1665_v27 = vpop.permute.xlu1 %1664 }
 0x60f   : > { %v1667_v46 = vadd.f32 %v1665_v27, %v2199_v23 }
 0x612   : > { %v1319_v60 = vpop.f32.mrf.mxu2 }
 0x613   : > { %1981 = vmatmul.msk.f32.vlgmr.msrb.gmra.mxu3 %vm543_vm14, %v1319_v60 }
 0x614   : > { %v1580_v61 = vpop.f32.mrf.mxu0  ;;  %1550 = vmatpush.msrb.mxu3 %v282_v48 }
 0x615   : > { %1991 = vmatmul.msk.f32.vlgmr.msra.gmra.mxu1 %vm543_vm14, %v1580_v61 }
 0x616   : > { %1811 = vmatpush.msra.mxu1 %v283_v50 }
 0x61a   : > { %v1421_v62 = vpop.f32.mrf.mxu2 }
 0x61b   : > { %1985 = vmatmul.msk.f32.vlgmr.msra.gmra.mxu3 %vm543_vm14, %v1421_v62 }
 0x61c   : > { %v1688_v63 = vpop.f32.mrf.mxu0  ;;  %1652 = vmatpush.msra.mxu3 %v284_v51 }
 0x61d   : > { %1995 = vmatmul.msk.f32.vlgmr.msrb.gmra.mxu1 %vm543_vm14, %v1688_v63 }
 0x622   : > { %v1529_v0 = vpop.f32.mrf.mxu2 }
 0x623   : > { %1989 = vmatmul.msk.f32.vlgmr.msrb.gmra.mxu3 %vm543_vm14, %v1529_v0 }
 0x624   : > { %v1790_v1 = vpop.f32.mrf.mxu0  ;;  %1760 = vmatpush.msrb.mxu3 %v282_v48 }
 0x625   : > { %1999 = vmatmul.msk.f32.vlgmr.msra.gmra.mxu1 %vm543_vm14, %v1790_v1 }
 0x62a   : > { %v1631_v2 = vpop.f32.mrf.mxu2 }
 0x62b   : > { %1993 = vmatmul.msk.f32.vlgmr.msra.gmra.mxu3 %vm543_vm14, %v1631_v2 }
 0x62c   : > { %1862 = vmatpush.msra.mxu3 %v284_v51 }
 0x632   : > { %v1739_v3 = vpop.f32.mrf.mxu2 }
 0x633   : > { %1997 = vmatmul.msk.f32.vlgmr.msrb.gmra.mxu3 %vm543_vm14, %v1739_v3 }
 0x63a   : > { %v1841_v4 = vpop.f32.mrf.mxu2 }
 0x63b   : > { %2001 = vmatmul.msk.f32.vlgmr.msra.gmra.mxu3 %vm543_vm14, %v1841_v4 }
 0x648   : > { %v1189_v5 = vpop.f32.mrf.mxu1 }
 0x64c   : > { %v1139_v8 = vpop.f32.mrf.mxu3 }
 0x64d   : > { %v1142_v10 = vadd.f32 %v1139_v8, %v1092_v7 }
 0x64f   : > { %v1192_v11 = vadd.f32 %v1189_v5, %v1142_v10 }
 0x650   : > { %v1291_v13 = vpop.f32.mrf.mxu1 }
 0x651   : > { %1295 = vrot.lane.b32.xlu1 %v1291_v13, %s2064_s8 }
 0x658   : > { %v1393_v16 = vpop.f32.mrf.mxu1 }
 0x659   : > { %1397 = vrot.lane.b32.xlu2 %v1393_v16, %s2064_s8 }
 0x68a   : > { %v1501_v17 = vpop.f32.mrf.mxu1 }
 0x68b   : > { %1505 = vrot.lane.b32.xlu2 %v1501_v17, %s2065_s9 }
 0x68e   : > { %v1239_v41 = vpop.f32.mrf.mxu3 }
 0x68f   : > { %v1242_v54 = vadd.f32 %v1239_v41, %v1192_v11 }
 0x691   : > { %1243 = vst.msk [vmem:[%s2438_s11] sm:$0xff] %vm287_vm0, %v1242_v54  ;;  %vm1662_vm0 = vcmask 785920  }
 0x692   : > { %v1603_v45 = vpop.f32.mrf.mxu1 }
 0x696   : > { %v1342_v19 = vpop.f32.mrf.mxu3 }
 0x697   : > { %1346 = vrot.lane.b32.xlu0 %v1342_v19, %s2064_s8 }
 0x69a   : > { %v1711_v18 = vpop.f32.mrf.mxu1 }
 0x69e   : > { %v1444_v20 = vpop.f32.mrf.mxu3 }
 0x69f   : > { %1448 = vrot.lane.b32.xlu1 %v1444_v20, %s2064_s8  ;;  %1607 = vrot.lane.b32.xlu0 %v1603_v45, %s2065_s9 }
 0x6a2   : > { %v1813_v22 = vpop.f32.mrf.mxu1 }
 0x6a6   : > { %v1552_v21 = vpop.f32.mrf.mxu3 }
 0x6a7   : > { %1556 = vrot.lane.b32.xlu1 %v1552_v21, %s2065_s9  ;;  %1715 = vrot.lane.b32.xlu0 %v1711_v18, %s2063_s30 }
 0x6ae   : > { %v1654_v24 = vpop.f32.mrf.mxu3 }
 0x6af   : > { %1658 = vrot.lane.b32.xlu2 %v1654_v24, %s2065_s9  ;;  %1817 = vrot.lane.b32.xlu1 %v1813_v22, %s2063_s30 }
 0x6b3   : > { %v1398_v34 = vpop.permute.xlu2 %1397 }
 0x6b6   : > { %v1762_v25 = vpop.f32.mrf.mxu3 }
 0x6b7   : > { %1766 = vrot.lane.b32.xlu2 %v1762_v25, %s2063_s30 }
 0x6be   : > { %v1864_v26 = vpop.f32.mrf.mxu3 }
 0x6bf   : > { %1868 = vrot.lane.b32.xlu0 %v1864_v26, %s2063_s30 }
 0x6c3   : > { %v1296_v30 = vpop.permute.xlu1 %1295 }
 0x6c4   : > { %v1298_v47 = vadd.f32 %v1296_v30, %v1247_v31 }
 0x6e5   : > { %v1506_v38 = vpop.permute.xlu2 %1505 }
 0x6e6   : > { %v1508_v40 = vadd.f32 %v1506_v38, %v1457_v39 }
 0x709   : > { %v1347_v32 = vpop.permute.xlu0 %1346  ;;  %v1659_v9 = vpop.permute.xlu2 %1658 }
 0x70a   : > { %v1349_v33 = vadd.f32 %v1347_v32, %v1298_v47 }
 0x70c   : > { %v1400_v35 = vadd.f32 %v1398_v34, %v1349_v33 }
 0x711   : > { %v1449_v49 = vpop.permute.xlu1 %1448  ;;  %v1608_v43 = vpop.permute.xlu0 %1607 }
 0x712   : > { %v1451_v36 = vadd.f32 %v1449_v49, %v1400_v35  ;;  %v1767_v50 = vpop.permute.xlu2 %1766 }
 0x714   : > { %1453 = vst.msk [vmem:[%s2438_s11] sm:$0xff] %vm1452_vm15, %v1451_v36 }
 0x719   : > { %v1557_v15 = vpop.permute.xlu1 %1556  ;;  %v1716_v14 = vpop.permute.xlu0 %1715 }
 0x71a   : > { %v1559_v42 = vadd.f32 %v1557_v15, %v1508_v40  ;;  %v1718_v48 = vadd.f32 %v1716_v14, %v1667_v46 }
 0x71c   : > { %v1610_v37 = vadd.f32 %v1608_v43, %v1559_v42  ;;  %v1769_v52 = vadd.f32 %v1767_v50, %v1718_v48 }
 0x71e   : > { %v1661_v12 = vadd.f32 %v1659_v9, %v1610_v37 }
 0x720   : > { %1663 = vst.msk [vmem:[%s2438_s11] sm:$0xff] %vm1662_vm0, %v1661_v12 }
 0x721   : > { %v1818_v51 = vpop.permute.xlu1 %1817 }
 0x722   : > { %v1820_v53 = vadd.f32 %v1818_v51, %v1769_v52 }
 0x731   : > { %v1869_v59 = vpop.permute.xlu0 %1868 }
 0x732   : > { %v1871_v55 = vadd.f32 %v1869_v59, %v1820_v53 }
 0x734   : > { %1873 = vst.msk [vmem:[%s2438_s11] sm:$0xff] %vm1872_vm1, %v1871_v55 }
 0x735 PF: > { %s17_s24 = sadd.s32 1, %s2061_s24  }
 0x736   : > { %p14_p4 = scmp.ge.s32.totalorder %s17_s24, 4  }
 0x738   :  { %16 = sbr.rel (!%p14_p4) target bundleno = 1 (0x1), region = 78 }

// kernel: coattention_encoder.11
= control target key start
LH: loop header
LB: loop body
LE: loop exit
PB: predicated region body
PF: predicated region fallthrough
CT: control target
= control target key end

     0   :  { %8 = vsyncpa [#allocation3], 0  ;;  %s717_s0 = inlined_call_operand.vmem [shape: f32[2,8,128], index: 0, kind: input, shape index: {}]   ;;  %s718_s1 = inlined_call_operand.vmem [shape: f32[1,32], index: 1, kind: input, shape index: {}]   ;;  %s719_s2 = inlined_call_operand.vmem [shape: f32[1,32], index: 2, kind: input, shape index: {}]   ;;  %s720_s3 = inlined_call_operand.hbm [shape: f32[2,8,32], index: 3, kind: output, shape index: {}]  }
   0x1   :  { %10 = vsyncpa [#allocation3 + $0x1], 0  ;;  %s565_s12 = smov 0   ;;  %s567_s13 = smov 0  }
   0x2   :  { %s569_s14 = smov 0   ;;  %s571_s15 = smov 0  }
   0x3 LB: > { %s586_s16 = sadd.s32 4294967295, %s539_s15   ;;  %s412_s17 = sadd.s32 4294967294, %s539_s15   ;;  %s539_s15 = sphi %s571_s15, %s726_s15   ;;  %s535_s14 = sphi %s569_s14, %s725_s14   ;;  %s531_s13 = sphi %s567_s13, %s724_s13   ;;  %s527_s12 = sphi %s565_s12, %s723_s12  }
   0x4   : > { %s590_s18 = sadd.s32 1, %s539_s15   ;;  %s91_s19 = sadd.s32 1, %s535_s14 }
   0x5   : > { %s88_s20 = ssub.s32 %s539_s15, %s590_s18  ;;  %p101_p0 = scmp.ne.s32.totalorder %s535_s14, %s531_s13 }
   0x6   : > { %p89_p1 = scmp.eq.s32.totalorder %s88_s20, 0  ;;  %p102_p2 = scmp.eq.s32.totalorder %s586_s16, 1 }
   0x7   : > { %p107_p3 = scmp.ne.s32.totalorder %s531_s13, %s527_s12  ;;  %p108_p4 = scmp.eq.s32.totalorder %s412_s17, 1 }
   0x8   : > { %s601_s21 = scalar_select %p89_p1, %s535_s14, %s91_s19  }
   0x9   : > { %p603_p5 = por %p102_p2, %p101_p0  ;;  %p607_p6 = por %p108_p4, %p107_p3 }
   0xa   : > { %p415_p7 = scmp.ge.s32.totalorder %s539_s15, 1  ;;  %p139_p8 = scmp.lt.s32.totalorder %s539_s15, 3 }
   0xc   : > { %p140_p9 = pnand %p415_p7, %p139_p8 }
   0xd   : > { %p162_p10 = scmp.lt.s32.totalorder (!%p140_p9), %s586_s16, 1  ;;  %s541_s29 = smov (!%p140_p9), 96  }
   0xe   : > { %143 = sbr.rel (%p140_p9) target bundleno = 784 (0x310), region = 32  ;;  %s542_s30 = smov (!%p140_p9), 32  }
   0xf   : > { %s543_s4 = smov (!%p140_p9), 64   ;;  %s159_s9 = sand.u32 (!%p140_p9), 1, %s531_s13  }
  0x10   : > { %s416_s10 = sshll.u32 (!%p140_p9), %s159_s9, 3  ;;  %s419_s11 = sshll.u32 (!%p140_p9), %s586_s16, 3 }
  0x11   : > { %s348_s20 = scalar_lea.hbm (!%p140_p9), %s720_s3, %s419_s11 }
  0x12   : > { %s352_s26 = sshll.u32 (!%p140_p9), %s348_s20, 4  ;;  %s353_s26 = int_to_ptr.hbm [resolvable:$true] %s352_s26 }
  0x13   : > { %s163_s24 = scalar_select %p162_p10, %s586_s16, 1  ;;  %vm169_vm0 = vcmask 261120   ;;  %v544_v7 = vmov 32.0   ;;  %v644_v27 = vld [vmem:[%s718_s1] ss:$0 sm:$0xff] }
  0x14   : > { %467 = vrcp.f32 %v544_v7  ;;  %v654_v30 = vld [vmem:[%s719_s2] ss:$0 sm:$0xff]  ;;  %s338_s16 = scalar_lea.sflag [#allocation3], %s159_s9  ;;  %s491_s27 = sshra.s32 %s353_s26, 4  ;;  %s492_s27 = int_to_ptr.hbm [resolvable:$true] %s491_s27 }
  0x15   : > { %s417_s25 = sshll.u32 %s163_s24, 3  ;;  %s161_s24 = scalar_lea.vmem [#allocation2], %s416_s10 }
  0x16   : > { %s165_s28 = scalar_lea.vmem %s717_s0, %s417_s25  ;;  %s350_s25 = sshll.u32 %s161_s24, 4  ;;  %s351_s25 = int_to_ptr.vmem [resolvable:$true] %s350_s25 }
  0x17   : > { %v168_v0 = vld [vmem:[%s165_s28] sm:$0xff]  ;;  %s493_s28 = scalar_lea.hbm %s492_s27, 8  ;;  %p498_p0 = scmp.lt.s32.totalorder %s492_s27, %s720_s3 }
  0x18   : > { %209 = vrot.lane.b32.xlu0 %v168_v0, %s541_s29  ;;  %293 = vrot.lane.b32.xlu1 %v168_v0, %s542_s30  ;;  %v170_v26 = vsel %vm169_vm0, %v168_v0, 0.0  ;;  %p494_p11 = scmp.ne.s32.totalorder %s492_s27, %s493_s28 }
  0x1a   : > { %v468_v8 = vpop.eup %467  ;;  %p495_p12 = pnand %p494_p11, %p603_p5 }
  0x1b   : > { %v174_v9 = vmul.f32 32.0, %v468_v8  ;;  %vm178_vm1 = vweird.f32 %v468_v8 }
  0x1c   : > { %p496_p13 = pneg %p495_p12 }
  0x1d   : > { %v175_v10 = vsub.f32 1.0, %v174_v9 }
  0x1f   : > { %v176_v11 = vmul.f32 %v468_v8, %v175_v10 }
  0x20   : > { %251 = vrot.lane.b32.xlu0 %v168_v0, %s543_s4 }
  0x21   : > { %v177_v12 = vadd.f32 %v468_v8, %v176_v11 }
  0x23   : > { %v624_v13 = vsel %vm178_vm1, %v468_v8, %v177_v12 }
  0x8a   : > { %v210_v1 = vpop.permute.xlu0 %209  ;;  %v294_v5 = vpop.permute.xlu1 %293 }
  0x8b   : > { %v212_v2 = vsel %vm169_vm0, %v210_v1, 0.0  ;;  %v296_v6 = vsel %vm169_vm0, %v294_v5, 0.0 }
  0x8c   : > { %213 = vadd.xlane.f32.xlu1 %v212_v2 }
  0x92   : > { %v252_v3 = vpop.permute.xlu0 %251 }
  0x93   : > { %v254_v4 = vsel %vm169_vm0, %v252_v3, 0.0 }
  0x94   : > { %255 = vadd.xlane.f32.xlu2 %v254_v4 }
  0x9c   : > { %297 = vadd.xlane.f32.xlu2 %v296_v6 }
  0xff   : > { %v214_v14 = vpop.xlane.xlu1 %213 }
 0x100   : > { %v215_v15 = vmul.f32 %v214_v14, %v624_v13 }
 0x102   : > { %v216_v16 = vsub.f32 %v168_v0, %v215_v15 }
 0x104   : > { %v217_v17 = vmul.f32 %v216_v16, %v216_v16 }
 0x106   : > { %219 = vrot.lane.b32.xlu0 %v217_v17, %s541_s29 }
 0x107   : > { %v256_v18 = vpop.xlane.xlu2 %255 }
 0x108   : > { %v257_v19 = vmul.f32 %v256_v18, %v624_v13 }
 0x10a   : > { %v629_v20 = vsub.f32 %v168_v0, %v257_v19 }
 0x10c   : > { %v259_v21 = vmul.f32 %v629_v20, %v629_v20 }
 0x10e   : > { %261 = vrot.lane.b32.xlu2 %v259_v21, %s543_s4 }
 0x10f   : > { %v298_v22 = vpop.xlane.xlu2 %297 }
 0x110   : > { %v299_v23 = vmul.f32 %v298_v22, %v624_v13 }
 0x112   : > { %v635_v24 = vsub.f32 %v168_v0, %v299_v23 }
 0x114   : > { %v301_v25 = vmul.f32 %v635_v24, %v635_v24 }
 0x116   : > { %303 = vrot.lane.b32.xlu0 %v301_v25, %s542_s30 }
 0x140   : > { %171 = vadd.xlane.f32.xlu0 %v170_v26 }
 0x154   : > { %238 = vrot.lane.b32.xlu0 %v644_v27, %s542_s30 }
 0x15c   : > { %284 = vrot.lane.b32.xlu0 %v654_v30, %s543_s4 }
 0x164   : > { %326 = vrot.lane.b32.xlu0 %v654_v30, %s541_s29 }
 0x168   : > { %v262_v37 = vpop.permute.xlu2 %261 }
 0x169   : > { %v264_v38 = vsel %vm169_vm0, %v262_v37, 0.0 }
 0x178   : > { %v220_v28 = vpop.permute.xlu0 %219 }
 0x179   : > { %v222_v29 = vsel %vm169_vm0, %v220_v28, 0.0 }
 0x17a   : > { %223 = vadd.xlane.f32.xlu2 %v222_v29 }
 0x188   : > { %v304_v31 = vpop.permute.xlu0 %303 }
 0x189   : > { %v306_v39 = vsel %vm169_vm0, %v304_v31, 0.0 }
 0x192   : > { %280 = vrot.lane.b32.xlu2 %v644_v27, %s543_s4 }
 0x1b3   : > { %v172_v32 = vpop.xlane.xlu0 %171 }
 0x1b4   : > { %v180_v33 = vmul.f32 %v624_v13, %v172_v32 }
 0x1b6   : > { %v661_v34 = vsub.f32 %v168_v0, %v180_v33 }
 0x1b8   : > { %v182_v35 = vmul.f32 %v661_v34, %v661_v34 }
 0x1ba   : > { %v183_v36 = vsel %vm169_vm0, %v182_v35, 0.0 }
 0x1bb   : > { %184 = vadd.xlane.f32.xlu1 %v183_v36 }
 0x1c6   : > { %v239_v52 = vpop.permute.xlu0 %238 }
 0x1ce   : > { %v285_v9 = vpop.permute.xlu0 %284 }
 0x1d4   : > { %242 = vrot.lane.b32.xlu1 %v654_v30, %s542_s30 }
 0x1d6   : > { %v327_v21 = vpop.permute.xlu0 %326 }
 0x1ed   : > { %v224_v40 = vpop.xlane.xlu2 %223 }
 0x1ee   : > { %v225_v41 = vmul.f32 %v224_v40, %v624_v13 }
 0x1f0   : > { %v226_v42 = vadd.f32 1e-05, %v225_v41 }
 0x1f2   : > { %469 = vrsqrt.f32 %v226_v42  ;;  %vm233_vm3 = vweird.f32 %v226_v42 }
 0x1f5   : > { %v281_v7 = vpop.permute.xlu2 %280 }
 0x1f8   : > { %v470_v43 = vpop.eup %469 }
 0x1f9   : > { %v228_v44 = vmul.f32 %v470_v43, %v226_v42  ;;  %vm234_vm2 = vweird.f32 %v470_v43 }
 0x1fa   : > { %vm235_vm4 = vmor %vm233_vm3, %vm234_vm2 }
 0x1fb   : > { %v229_v45 = vmul.f32 %v470_v43, %v228_v44 }
 0x1fd   : > { %v230_v46 = vmul.f32 0.5, %v229_v45 }
 0x1fe   : > { %265 = vadd.xlane.f32.xlu1 %v264_v38 }
 0x1ff   : > { %v231_v47 = vsub.f32 1.5, %v230_v46 }
 0x201   : > { %v232_v48 = vmul.f32 %v470_v43, %v231_v47 }
 0x203   : > { %v236_v49 = vsel %vm235_vm4, %v470_v43, %v232_v48 }
 0x204   : > { %v237_v51 = vmul.f32 %v236_v49, %v216_v16 }
 0x206   : > { %307 = vadd.xlane.f32.xlu1 %v306_v39  ;;  %v241_v53 = vmul.f32 %v239_v52, %v237_v51 }
 0x21f   : > { %322 = vrot.lane.b32.xlu1 %v644_v27, %s541_s29 }
 0x22e   : > { %v185_v50 = vpop.xlane.xlu1 %184 }
 0x246   : > { %v243_v54 = vpop.permute.xlu1 %242 }
 0x247   : > { %v245_v55 = vadd.f32 %v243_v54, %v241_v53 }
 0x249   : > { %247 = vrot.lane.b32.xlu2 %v245_v55, %s541_s29 }
 0x271   : > { %v266_v56 = vpop.xlane.xlu1 %265 }
 0x272   : > { %v267_v57 = vmul.f32 %v266_v56, %v624_v13 }
 0x274   : > { %v268_v58 = vadd.f32 1e-05, %v267_v57 }
 0x276   : > { %471 = vrsqrt.f32 %v268_v58  ;;  %vm275_vm6 = vweird.f32 %v268_v58 }
 0x279   : > { %v308_v59 = vpop.xlane.xlu1 %307 }
 0x27a   : > { %v309_v60 = vmul.f32 %v308_v59, %v624_v13 }
 0x27c   : > { %v472_v61 = vpop.eup %471  ;;  %v310_v62 = vadd.f32 1e-05, %v309_v60 }
 0x27d   : > { %v270_v63 = vmul.f32 %v472_v61, %v268_v58  ;;  %vm276_vm5 = vweird.f32 %v472_v61 }
 0x27e   : > { %473 = vrsqrt.f32 %v310_v62  ;;  %vm277_vm7 = vmor %vm275_vm6, %vm276_vm5  ;;  %vm317_vm9 = vweird.f32 %v310_v62 }
 0x27f   : > { %v271_v0 = vmul.f32 %v472_v61, %v270_v63 }
 0x281   : > { %v272_v1 = vmul.f32 0.5, %v271_v0 }
 0x283   : > { %v273_v2 = vsub.f32 1.5, %v272_v1 }
 0x284   : > { %v474_v3 = vpop.eup %473 }
 0x285   : > { %v312_v4 = vmul.f32 %v474_v3, %v310_v62  ;;  %v274_v5 = vmul.f32 %v472_v61, %v273_v2  ;;  %vm318_vm8 = vweird.f32 %v474_v3 }
 0x286   : > { %vm319_vm10 = vmor %vm317_vm9, %vm318_vm8 }
 0x287   : > { %v313_v6 = vmul.f32 %v474_v3, %v312_v4  ;;  %v278_v8 = vsel %vm277_vm7, %v472_v61, %v274_v5 }
 0x288   : > { %v279_v10 = vmul.f32 %v278_v8, %v629_v20  ;;  %v186_v20 = vmul.f32 %v185_v50, %v624_v13 }
 0x289   : > { %v314_v11 = vmul.f32 0.5, %v313_v6 }
 0x28a   : > { %v283_v12 = vmul.f32 %v281_v7, %v279_v10  ;;  %v187_v25 = vadd.f32 1e-05, %v186_v20 }
 0x28b   : > { %v315_v14 = vsub.f32 1.5, %v314_v11 }
 0x28c   : > { %v287_v15 = vadd.f32 %v285_v9, %v283_v12  ;;  %475 = vrsqrt.f32 %v187_v25  ;;  %vm194_vm12 = vweird.f32 %v187_v25 }
 0x28d   : > { %v316_v16 = vmul.f32 %v474_v3, %v315_v14 }
 0x28e   : > { %289 = vrot.lane.b32.xlu1 %v287_v15, %s543_s4  ;;  %s497_s4 = scalar_lea.hbm %s720_s3, 16 }
 0x28f   : > { %v320_v17 = vsel %vm319_vm10, %v474_v3, %v316_v16  ;;  %p499_p1 = scmp.lt.s32.totalorder %s497_s4, %s493_s28 }
 0x290   : > { %v321_v18 = vmul.f32 %v320_v17, %v635_v24 }
 0x291   : > { %v323_v19 = vpop.permute.xlu1 %322  ;;  %p500_p2 = por %p499_p1, %p498_p0 }
 0x292   : > { %v325_v22 = vmul.f32 %v323_v19, %v321_v18  ;;  %v476_v26 = vpop.eup %475 }
 0x293   : > { %v189_v28 = vmul.f32 %v476_v26, %v187_v25  ;;  %vm195_vm11 = vweird.f32 %v476_v26  ;;  %p501_p3 = pnand %p500_p2, %p496_p13 }
 0x294   : > { %v329_v23 = vadd.f32 %v327_v21, %v325_v22  ;;  %vm196_vm13 = vmor %vm194_vm12, %vm195_vm11 }
 0x295   : > { %v190_v29 = vmul.f32 %v476_v26, %v189_v28 }
 0x296   : > { %331 = vrot.lane.b32.xlu0 %v329_v23, %s542_s30 }
 0x297   : > { %v191_v31 = vmul.f32 0.5, %v190_v29 }
 0x299   : > { %v192_v32 = vsub.f32 1.5, %v191_v31 }
 0x29b   : > { %v193_v33 = vmul.f32 %v476_v26, %v192_v32 }
 0x29d   : > { %v197_v24 = vsel %vm196_vm13, %v476_v26, %v193_v33 }
 0x29e   : > { %v198_v35 = vmul.f32 %v197_v24, %v661_v34 }
 0x2a0   : > { %v202_v36 = vmul.f32 %v644_v27, %v198_v35 }
 0x2a2   : > { %v206_v13 = vadd.f32 %v654_v30, %v202_v36 }
 0x2a3   : > { %v248_v37 = vpop.permute.xlu2 %247 }
 0x2a4   : > { %v250_v39 = vadd.f32 %v248_v37, %v206_v13 }
 0x300   : > { %v290_v38 = vpop.permute.xlu1 %289 }
 0x301   : > { %v292_v40 = vadd.f32 %v290_v38, %v250_v39 }
 0x308   : > { %v332_v41 = vpop.permute.xlu0 %331 }
 0x309   : > { %v334_v34 = vadd.f32 %v332_v41, %v292_v40 }
 0x30b   : > { %v335_v27 = vmul.f32 0.25, %v334_v34 }
 0x30d   : > { %336 = vst.msk [vmem:[%s161_s24] sm:$0xff] %vm169_vm0, %v335_v27 }
 0x30e   : > { %504 = shalt.err (!%p501_p3)
}
 0x30f   : > { %422 = dma.vmem_to_hbm [thread:$0]  (%p603_p5), %s351_s25, 128, %s353_s26, %s338_s16  }
 0x310 PF: > { %p428_p4 = scmp.ge.s32.totalorder %s539_s15, 2  ;;  %s364_s7 = sand.u32 1, %s527_s12  }
 0x311   : > { %s365_s8 = scalar_lea.sflag [#allocation3], %s364_s7 }
 0x312   : > { %p425_p7 = pnand %p428_p4, %p607_p6 }
 0x314   : > { %p426_p8 = pneg %p425_p7 }
 0x316   : > { %522 = dma.done.wait (%p426_p8), %s365_s8, 128  }
 0x317   : > { %524 = vsyncadd (%p426_p8), %s365_s8, 4294967168  ;;  %p13_p9 = scmp.ge.s32.totalorder %s590_s18, 4   ;;  %s723_s12 = smov %s531_s13 }
 0x318   : > { %s724_s13 = smov %s535_s14  ;;  %s725_s14 = smov %s601_s21 }
 0x319   : > { %s726_s15 = smov %s590_s18  ;;  %15 = sbr.rel (!%p13_p9) target bundleno = 3 (0x3), region = 67 }
 0x31e   :  { %371 = vsyncpa [#allocation3], 1 }
 0x31f   :  { %373 = vsyncpa [#allocation3 + $0x1], 1 }

</bundles_post_ra>
